<compile_context>
chip_gen: v6e
topology: v6e:2x2x1
jax: 0.10.0
libtpu: 0.0.40
codegen_flags: <defaults>
</compile_context>

<pallas_src>
import functools

import jax
import jax.numpy as jnp
from jax.experimental import pallas as pl
from jax.experimental.pallas import tpu as pltpu
import numpy as np

INPUT_SIZE = 10
HIDDEN = 32
NUM_LAYERS = 5
OUTPUT_SIZE = 1

# Deliberate MXU algorithm choice: 1-pass bf16-multiply / f32-accumulate.
_DOT = functools.partial(jnp.dot,
                         precision=jax.lax.Precision.DEFAULT,
                         preferred_element_type=jnp.float32)


def lstm_fc_kernel(x_ref, wih_ref, whh_ref, b_ref, fcw_ref, fcb_ref, out_ref,
                   *, T, B_pad):
    """Whole forward pass in one kernel (everything resident in VMEM).

    x_ref   : (T*Bp, H)   time-major, batch padded to Bp=8, features padded to H
    wih_ref : (L, H, 4H)  input weights (transposed); i/f/o columns pre-scaled 0.5
    whh_ref : (L, H, 4H)  recurrent weights (transposed); i/f/o columns 0.5-scaled
    b_ref   : (L, 1, 4H)  b_ih + b_hh; i/f/o entries pre-scaled by 0.5
    fcw_ref : (H, 1)      fc weight (transposed)
    fcb_ref : (1, 1)      fc bias
    out_ref : (Bp, 1)
    """
    H = HIDDEN
    L = wih_ref.shape[0]

    inp = x_ref[...]                                   # (T*Bp, H)
    last_h = None
    for l in range(L):                                 # unrolled: static indices
        wih = wih_ref[l]                               # (H, 4H)
        whh = whh_ref[l]                               # (H, 4H)
        bias = b_ref[l]                                # (1, 4H)

        # Hoisted input projection for the whole sequence: ONE MXU matmul,
        # bias folded in, result kept in vregs (8 f32 vregs) -- no VMEM scratch.
        pre = _DOT(inp, wih) + bias                    # (T*Bp, 4H)

        h = jnp.zeros((B_pad, H), jnp.float32)
        c = jnp.zeros((B_pad, H), jnp.float32)
        hs = []
        for t in range(T):                             # unrolled serial recurrence
            gates = pre[t * B_pad:(t + 1) * B_pad, :] + _DOT(h, whh)
            # Single full-tile EUP pass.  i/f/o lanes hold pre/2, so
            # sigmoid(pre) = 0.5*(1 + tanh(pre/2)); g lanes hold tanh(pre).
            tg = jnp.tanh(gates)                       # (Bp, 4H)
            u = 0.5 * tg + 0.5                         # VALU affine, full tile
            # PyTorch gate order: i, f, g, o
            i_g = u[:, 0:H]
            f_g = u[:, H:2 * H]
            o_g = u[:, 3 * H:4 * H]
            g_g = tg[:, 2 * H:3 * H]
            c = f_g * c + i_g * g_g
            h = o_g * jnp.tanh(c)
            if l < L - 1:                              # last layer: only final h
                hs.append(h)
        if l < L - 1:
            inp = jnp.concatenate(hs, axis=0)          # (T*Bp, H), stays in vregs
        last_h = h                                     # h at final time step

    # fc(lstm_out[:, -1, :])
    out_ref[...] = _DOT(last_h, fcw_ref[...]) + fcb_ref[...]


def lstm_model_forward(x, kparams):
    """x: (B, T, INPUT_SIZE) float32, batch_first like the PyTorch module.

    kparams must come from prepare_kernel_params (i/f/o gates pre-scaled)."""
    B, T, F = x.shape
    H = HIDDEN
    B_pad = ((B + 7) // 8) * 8                         # sublane-align the batch
    wih_t, whh_t, b, fcw, fcb = kparams

    # time-major, batch padded to B_pad, features zero-padded to H, flattened
    # to (T*B_pad, H) so each per-layer input projection is a single matmul.
    x_tm = jnp.zeros((T, B_pad, H), jnp.float32)
    x_tm = x_tm.at[:, :B, :F].set(jnp.transpose(x, (1, 0, 2)))
    x_flat = x_tm.reshape(T * B_pad, H)

    kernel = functools.partial(lstm_fc_kernel, T=T, B_pad=B_pad)

    out = pl.pallas_call(
        kernel,
        out_shape=jax.ShapeDtypeStruct((B_pad, OUTPUT_SIZE), jnp.float32),
        in_specs=[pl.BlockSpec(memory_space=pltpu.MemorySpace.VMEM)] * 6,
        out_specs=pl.BlockSpec(memory_space=pltpu.MemorySpace.VMEM),
    )(x_flat, wih_t, whh_t, b, fcw, fcb)
    return out[:B]


def init_params(key):
    """Canonical params mimicking nn.LSTM / nn.Linear uniform(-1/sqrt(H), 1/sqrt(H)).

    Returned unscaled (PyTorch semantics) -- used directly by the reference."""
    k = 1.0 / float(np.sqrt(HIDDEN))
    keys = jax.random.split(key, NUM_LAYERS * 4 + 2)
    wih_list, whh_list, b_list = [], [], []
    idx = 0
    for l in range(NUM_LAYERS):
        in_dim = INPUT_SIZE if l == 0 else HIDDEN
        w_ih = jax.random.uniform(keys[idx], (4 * HIDDEN, in_dim),
                                  minval=-k, maxval=k); idx += 1
        w_hh = jax.random.uniform(keys[idx], (4 * HIDDEN, HIDDEN),
                                  minval=-k, maxval=k); idx += 1
        b_ih = jax.random.uniform(keys[idx], (4 * HIDDEN,),
                                  minval=-k, maxval=k); idx += 1
        b_hh = jax.random.uniform(keys[idx], (4 * HIDDEN,),
                                  minval=-k, maxval=k); idx += 1
        # zero-pad layer-0 input-weight columns up to HIDDEN (exact: the padded
        # input features are zero, so the product is unchanged)
        w_ih_pad = jnp.zeros((4 * HIDDEN, HIDDEN)).at[:, :in_dim].set(w_ih)
        wih_list.append(w_ih_pad.T)                    # (H, 4H)
        whh_list.append(w_hh.T)                        # (H, 4H)
        b_list.append((b_ih + b_hh)[None, :])          # (1, 4H)
    fc_w = jax.random.uniform(keys[idx], (OUTPUT_SIZE, HIDDEN),
                              minval=-k, maxval=k); idx += 1
    fc_b = jax.random.uniform(keys[idx], (OUTPUT_SIZE,), minval=-k, maxval=k)
    return (jnp.stack(wih_list).astype(jnp.float32),   # (L, H, 4H)
            jnp.stack(whh_list).astype(jnp.float32),   # (L, H, 4H)
            jnp.stack(b_list).astype(jnp.float32),     # (L, 1, 4H)
            fc_w.T.astype(jnp.float32),                # (H, 1)
            fc_b[None, :].astype(jnp.float32))         # (1, 1)


def prepare_kernel_params(params):
    """One-time param transform for the kernel's single-tanh gate trick.

    i/f/o gate columns (0:H, H:2H, 3H:4H) of W_ih, W_hh and the bias are
    scaled by 0.5 so sigmoid(pre) = 0.5*(1 + tanh(pre/2)); g columns untouched.
    0.5 is a power of two, so the scaling is exact in bf16/f32."""
    wih_t, whh_t, b, fcw, fcb = params
    H = HIDDEN
    scale = jnp.full((4 * H,), 0.5, jnp.float32).at[2 * H:3 * H].set(1.0)
    return (wih_t * scale, whh_t * scale, b * scale, fcw, fcb)


def reference_forward(x, params):
    """Pure-JAX reference matching PyTorch LSTM semantics (for verification)."""
    wih_t, whh_t, b, fcw, fcb = params
    B, T, _ = x.shape
    H = HIDDEN
    seq = jnp.zeros((B, T, H)).at[:, :, :INPUT_SIZE].set(x)
    for l in range(NUM_LAYERS):
        h = jnp.zeros((B, H))
        c = jnp.zeros((B, H))
        outs = []
        for t in range(T):
            gates = seq[:, t, :] @ wih_t[l] + h @ whh_t[l] + b[l]
            i = jax.nn.sigmoid(gates[:, :H])
            f = jax.nn.sigmoid(gates[:, H:2 * H])
            g = jnp.tanh(gates[:, 2 * H:3 * H])
            o = jax.nn.sigmoid(gates[:, 3 * H:])
            c = f * c + i * g
            h = o * jnp.tanh(c)
            outs.append(h)
        seq = jnp.stack(outs, axis=1)
    return seq[:, -1, :] @ fcw + fcb


if __name__ == "__main__":
    key = jax.random.PRNGKey(0)
    k_param, k_x = jax.random.split(key)
    params = init_params(k_param)                 # canonical (PyTorch semantics)
    kparams = prepare_kernel_params(params)       # kernel-ready (gates prescaled)

    B, T = 2, 8
    x = jax.random.normal(k_x, (B, T, INPUT_SIZE), dtype=jnp.float32)

    out = lstm_model_forward(x, kparams)
    out = jax.block_until_ready(out)

    ref = reference_forward(x, params)
    np.testing.assert_allclose(np.asarray(out), np.asarray(ref),
                               rtol=1e-3, atol=2e-3)

    assert out.shape == (B, OUTPUT_SIZE)
    print("KERNEL_OK")
</pallas_src>

<mosaic_0001>
module attributes {stable_mosaic.version = 11 : i64} {
  func.func @lstm_fc_kernel(%arg0: memref<64x32xf32, #tpu.memory_space<vmem>>, %arg1: memref<5x32x128xf32, #tpu.memory_space<vmem>>, %arg2: memref<5x32x128xf32, #tpu.memory_space<vmem>>, %arg3: memref<5x1x128xf32, #tpu.memory_space<vmem>>, %arg4: memref<32x1xf32, #tpu.memory_space<vmem>>, %arg5: memref<1x1xf32, #tpu.memory_space<vmem>>, %arg6: memref<8x1xf32, #tpu.memory_space<vmem>>) attributes {dimension_semantics = [], scalar_prefetch = 0 : i64, scratch_operands = 0 : i64, tpu.core_type = #tpu.core_type<tc>} {
    %c0 = arith.constant 0 : index
    %c0_0 = arith.constant 0 : index
    %0 = vector.load %arg0[%c0, %c0_0] : memref<64x32xf32, #tpu.memory_space<vmem>>, vector<64x32xf32>
    %c0_1 = arith.constant 0 : index
    %c0_2 = arith.constant 0 : index
    %c0_3 = arith.constant 0 : index
    %1 = vector.load %arg1[%c0_1, %c0_2, %c0_3] : memref<5x32x128xf32, #tpu.memory_space<vmem>>, vector<1x32x128xf32>
    %2 = vector.shape_cast %1 : vector<1x32x128xf32> to vector<32x128xf32>
    %c0_4 = arith.constant 0 : index
    %c0_5 = arith.constant 0 : index
    %c0_6 = arith.constant 0 : index
    %3 = vector.load %arg2[%c0_4, %c0_5, %c0_6] : memref<5x32x128xf32, #tpu.memory_space<vmem>>, vector<1x32x128xf32>
    %4 = vector.shape_cast %3 : vector<1x32x128xf32> to vector<32x128xf32>
    %c0_7 = arith.constant 0 : index
    %c0_8 = arith.constant 0 : index
    %c0_9 = arith.constant 0 : index
    %5 = vector.load %arg3[%c0_7, %c0_8, %c0_9] : memref<5x1x128xf32, #tpu.memory_space<vmem>>, vector<1x1x128xf32>
    %6 = vector.shape_cast %5 : vector<1x1x128xf32> to vector<1x128xf32>
    %cst = arith.constant dense<0.000000e+00> : vector<64x128xf32>
    %7 = tpu.matmul %0, %2, %cst {dimension_numbers = #tpu.dot_dimension_numbers<[1], [0], [0], [1], [0, 0, 1, 1], [], []>} : vector<64x32xf32>, vector<32x128xf32>, vector<64x128xf32> -> vector<64x128xf32>
    %8 = vector.broadcast %6 : vector<1x128xf32> to vector<64x128xf32>
    %9 = arith.addf %7, %8 : vector<64x128xf32>
    %cst_10 = arith.constant 0.000000e+00 : f32
    %10 = vector.broadcast %cst_10 : f32 to vector<8x32xf32>
    %cst_11 = arith.constant 0.000000e+00 : f32
    %11 = vector.broadcast %cst_11 : f32 to vector<8x32xf32>
    %12 = vector.extract_strided_slice %9 {offsets = [0, 0], sizes = [8, 128], strides = [1, 1]} : vector<64x128xf32> to vector<8x128xf32>
    %cst_12 = arith.constant dense<0.000000e+00> : vector<8x128xf32>
    %13 = tpu.matmul %10, %4, %cst_12 {dimension_numbers = #tpu.dot_dimension_numbers<[1], [0], [0], [1], [0, 0, 1, 1], [], []>} : vector<8x32xf32>, vector<32x128xf32>, vector<8x128xf32> -> vector<8x128xf32>
    %14 = arith.addf %12, %13 : vector<8x128xf32>
    %15 = math.tanh %14 : vector<8x128xf32>
    %cst_13 = arith.constant 5.000000e-01 : f32
    %16 = vector.broadcast %cst_13 : f32 to vector<8x128xf32>
    %17 = arith.mulf %16, %15 : vector<8x128xf32>
    %cst_14 = arith.constant 5.000000e-01 : f32
    %18 = vector.broadcast %cst_14 : f32 to vector<8x128xf32>
    %19 = arith.addf %17, %18 : vector<8x128xf32>
    %20 = vector.extract_strided_slice %19 {offsets = [0, 0], sizes = [8, 32], strides = [1, 1]} : vector<8x128xf32> to vector<8x32xf32>
    %21 = vector.extract_strided_slice %19 {offsets = [0, 32], sizes = [8, 32], strides = [1, 1]} : vector<8x128xf32> to vector<8x32xf32>
    %22 = vector.extract_strided_slice %19 {offsets = [0, 96], sizes = [8, 32], strides = [1, 1]} : vector<8x128xf32> to vector<8x32xf32>
    %23 = vector.extract_strided_slice %15 {offsets = [0, 64], sizes = [8, 32], strides = [1, 1]} : vector<8x128xf32> to vector<8x32xf32>
    %24 = arith.mulf %21, %11 : vector<8x32xf32>
    %25 = arith.mulf %20, %23 : vector<8x32xf32>
    %26 = arith.addf %24, %25 : vector<8x32xf32>
    %27 = math.tanh %26 : vector<8x32xf32>
    %28 = arith.mulf %22, %27 : vector<8x32xf32>
    %29 = vector.extract_strided_slice %9 {offsets = [8, 0], sizes = [8, 128], strides = [1, 1]} : vector<64x128xf32> to vector<8x128xf32>
    %cst_15 = arith.constant dense<0.000000e+00> : vector<8x128xf32>
    %30 = tpu.matmul %28, %4, %cst_15 {dimension_numbers = #tpu.dot_dimension_numbers<[1], [0], [0], [1], [0, 0, 1, 1], [], []>} : vector<8x32xf32>, vector<32x128xf32>, vector<8x128xf32> -> vector<8x128xf32>
    %31 = arith.addf %29, %30 : vector<8x128xf32>
    %32 = math.tanh %31 : vector<8x128xf32>
    %cst_16 = arith.constant 5.000000e-01 : f32
    %33 = vector.broadcast %cst_16 : f32 to vector<8x128xf32>
    %34 = arith.mulf %33, %32 : vector<8x128xf32>
    %cst_17 = arith.constant 5.000000e-01 : f32
    %35 = vector.broadcast %cst_17 : f32 to vector<8x128xf32>
    %36 = arith.addf %34, %35 : vector<8x128xf32>
    %37 = vector.extract_strided_slice %36 {offsets = [0, 0], sizes = [8, 32], strides = [1, 1]} : vector<8x128xf32> to vector<8x32xf32>
    %38 = vector.extract_strided_slice %36 {offsets = [0, 32], sizes = [8, 32], strides = [1, 1]} : vector<8x128xf32> to vector<8x32xf32>
    %39 = vector.extract_strided_slice %36 {offsets = [0, 96], sizes = [8, 32], strides = [1, 1]} : vector<8x128xf32> to vector<8x32xf32>
    %40 = vector.extract_strided_slice %32 {offsets = [0, 64], sizes = [8, 32], strides = [1, 1]} : vector<8x128xf32> to vector<8x32xf32>
    %41 = arith.mulf %38, %26 : vector<8x32xf32>
    %42 = arith.mulf %37, %40 : vector<8x32xf32>
    %43 = arith.addf %41, %42 : vector<8x32xf32>
    %44 = math.tanh %43 : vector<8x32xf32>
    %45 = arith.mulf %39, %44 : vector<8x32xf32>
    %46 = vector.extract_strided_slice %9 {offsets = [16, 0], sizes = [8, 128], strides = [1, 1]} : vector<64x128xf32> to vector<8x128xf32>
    %cst_18 = arith.constant dense<0.000000e+00> : vector<8x128xf32>
    %47 = tpu.matmul %45, %4, %cst_18 {dimension_numbers = #tpu.dot_dimension_numbers<[1], [0], [0], [1], [0, 0, 1, 1], [], []>} : vector<8x32xf32>, vector<32x128xf32>, vector<8x128xf32> -> vector<8x128xf32>
    %48 = arith.addf %46, %47 : vector<8x128xf32>
    %49 = math.tanh %48 : vector<8x128xf32>
    %cst_19 = arith.constant 5.000000e-01 : f32
    %50 = vector.broadcast %cst_19 : f32 to vector<8x128xf32>
    %51 = arith.mulf %50, %49 : vector<8x128xf32>
    %cst_20 = arith.constant 5.000000e-01 : f32
    %52 = vector.broadcast %cst_20 : f32 to vector<8x128xf32>
    %53 = arith.addf %51, %52 : vector<8x128xf32>
    %54 = vector.extract_strided_slice %53 {offsets = [0, 0], sizes = [8, 32], strides = [1, 1]} : vector<8x128xf32> to vector<8x32xf32>
    %55 = vector.extract_strided_slice %53 {offsets = [0, 32], sizes = [8, 32], strides = [1, 1]} : vector<8x128xf32> to vector<8x32xf32>
    %56 = vector.extract_strided_slice %53 {offsets = [0, 96], sizes = [8, 32], strides = [1, 1]} : vector<8x128xf32> to vector<8x32xf32>
    %57 = vector.extract_strided_slice %49 {offsets = [0, 64], sizes = [8, 32], strides = [1, 1]} : vector<8x128xf32> to vector<8x32xf32>
    %58 = arith.mulf %55, %43 : vector<8x32xf32>
    %59 = arith.mulf %54, %57 : vector<8x32xf32>
    %60 = arith.addf %58, %59 : vector<8x32xf32>
    %61 = math.tanh %60 : vector<8x32xf32>
    %62 = arith.mulf %56, %61 : vector<8x32xf32>
    %63 = vector.extract_strided_slice %9 {offsets = [24, 0], sizes = [8, 128], strides = [1, 1]} : vector<64x128xf32> to vector<8x128xf32>
    %cst_21 = arith.constant dense<0.000000e+00> : vector<8x128xf32>
    %64 = tpu.matmul %62, %4, %cst_21 {dimension_numbers = #tpu.dot_dimension_numbers<[1], [0], [0], [1], [0, 0, 1, 1], [], []>} : vector<8x32xf32>, vector<32x128xf32>, vector<8x128xf32> -> vector<8x128xf32>
    %65 = arith.addf %63, %64 : vector<8x128xf32>
    %66 = math.tanh %65 : vector<8x128xf32>
    %cst_22 = arith.constant 5.000000e-01 : f32
    %67 = vector.broadcast %cst_22 : f32 to vector<8x128xf32>
    %68 = arith.mulf %67, %66 : vector<8x128xf32>
    %cst_23 = arith.constant 5.000000e-01 : f32
    %69 = vector.broadcast %cst_23 : f32 to vector<8x128xf32>
    %70 = arith.addf %68, %69 : vector<8x128xf32>
    %71 = vector.extract_strided_slice %70 {offsets = [0, 0], sizes = [8, 32], strides = [1, 1]} : vector<8x128xf32> to vector<8x32xf32>
    %72 = vector.extract_strided_slice %70 {offsets = [0, 32], sizes = [8, 32], strides = [1, 1]} : vector<8x128xf32> to vector<8x32xf32>
    %73 = vector.extract_strided_slice %70 {offsets = [0, 96], sizes = [8, 32], strides = [1, 1]} : vector<8x128xf32> to vector<8x32xf32>
    %74 = vector.extract_strided_slice %66 {offsets = [0, 64], sizes = [8, 32], strides = [1, 1]} : vector<8x128xf32> to vector<8x32xf32>
    %75 = arith.mulf %72, %60 : vector<8x32xf32>
    %76 = arith.mulf %71, %74 : vector<8x32xf32>
    %77 = arith.addf %75, %76 : vector<8x32xf32>
    %78 = math.tanh %77 : vector<8x32xf32>
    %79 = arith.mulf %73, %78 : vector<8x32xf32>
    %80 = vector.extract_strided_slice %9 {offsets = [32, 0], sizes = [8, 128], strides = [1, 1]} : vector<64x128xf32> to vector<8x128xf32>
    %cst_24 = arith.constant dense<0.000000e+00> : vector<8x128xf32>
    %81 = tpu.matmul %79, %4, %cst_24 {dimension_numbers = #tpu.dot_dimension_numbers<[1], [0], [0], [1], [0, 0, 1, 1], [], []>} : vector<8x32xf32>, vector<32x128xf32>, vector<8x128xf32> -> vector<8x128xf32>
    %82 = arith.addf %80, %81 : vector<8x128xf32>
    %83 = math.tanh %82 : vector<8x128xf32>
    %cst_25 = arith.constant 5.000000e-01 : f32
    %84 = vector.broadcast %cst_25 : f32 to vector<8x128xf32>
    %85 = arith.mulf %84, %83 : vector<8x128xf32>
    %cst_26 = arith.constant 5.000000e-01 : f32
    %86 = vector.broadcast %cst_26 : f32 to vector<8x128xf32>
    %87 = arith.addf %85, %86 : vector<8x128xf32>
    %88 = vector.extract_strided_slice %87 {offsets = [0, 0], sizes = [8, 32], strides = [1, 1]} : vector<8x128xf32> to vector<8x32xf32>
    %89 = vector.extract_strided_slice %87 {offsets = [0, 32], sizes = [8, 32], strides = [1, 1]} : vector<8x128xf32> to vector<8x32xf32>
    %90 = vector.extract_strided_slice %87 {offsets = [0, 96], sizes = [8, 32], strides = [1, 1]} : vector<8x128xf32> to vector<8x32xf32>
    %91 = vector.extract_strided_slice %83 {offsets = [0, 64], sizes = [8, 32], strides = [1, 1]} : vector<8x128xf32> to vector<8x32xf32>
    %92 = arith.mulf %89, %77 : vector<8x32xf32>
    %93 = arith.mulf %88, %91 : vector<8x32xf32>
    %94 = arith.addf %92, %93 : vector<8x32xf32>
    %95 = math.tanh %94 : vector<8x32xf32>
    %96 = arith.mulf %90, %95 : vector<8x32xf32>
    %97 = vector.extract_strided_slice %9 {offsets = [40, 0], sizes = [8, 128], strides = [1, 1]} : vector<64x128xf32> to vector<8x128xf32>
    %cst_27 = arith.constant dense<0.000000e+00> : vector<8x128xf32>
    %98 = tpu.matmul %96, %4, %cst_27 {dimension_numbers = #tpu.dot_dimension_numbers<[1], [0], [0], [1], [0, 0, 1, 1], [], []>} : vector<8x32xf32>, vector<32x128xf32>, vector<8x128xf32> -> vector<8x128xf32>
    %99 = arith.addf %97, %98 : vector<8x128xf32>
    %100 = math.tanh %99 : vector<8x128xf32>
    %cst_28 = arith.constant 5.000000e-01 : f32
    %101 = vector.broadcast %cst_28 : f32 to vector<8x128xf32>
    %102 = arith.mulf %101, %100 : vector<8x128xf32>
    %cst_29 = arith.constant 5.000000e-01 : f32
    %103 = vector.broadcast %cst_29 : f32 to vector<8x128xf32>
    %104 = arith.addf %102, %103 : vector<8x128xf32>
    %105 = vector.extract_strided_slice %104 {offsets = [0, 0], sizes = [8, 32], strides = [1, 1]} : vector<8x128xf32> to vector<8x32xf32>
    %106 = vector.extract_strided_slice %104 {offsets = [0, 32], sizes = [8, 32], strides = [1, 1]} : vector<8x128xf32> to vector<8x32xf32>
    %107 = vector.extract_strided_slice %104 {offsets = [0, 96], sizes = [8, 32], strides = [1, 1]} : vector<8x128xf32> to vector<8x32xf32>
    %108 = vector.extract_strided_slice %100 {offsets = [0, 64], sizes = [8, 32], strides = [1, 1]} : vector<8x128xf32> to vector<8x32xf32>
    %109 = arith.mulf %106, %94 : vector<8x32xf32>
    %110 = arith.mulf %105, %108 : vector<8x32xf32>
    %111 = arith.addf %109, %110 : vector<8x32xf32>
    %112 = math.tanh %111 : vector<8x32xf32>
    %113 = arith.mulf %107, %112 : vector<8x32xf32>
    %114 = vector.extract_strided_slice %9 {offsets = [48, 0], sizes = [8, 128], strides = [1, 1]} : vector<64x128xf32> to vector<8x128xf32>
    %cst_30 = arith.constant dense<0.000000e+00> : vector<8x128xf32>
    %115 = tpu.matmul %113, %4, %cst_30 {dimension_numbers = #tpu.dot_dimension_numbers<[1], [0], [0], [1], [0, 0, 1, 1], [], []>} : vector<8x32xf32>, vector<32x128xf32>, vector<8x128xf32> -> vector<8x128xf32>
    %116 = arith.addf %114, %115 : vector<8x128xf32>
    %117 = math.tanh %116 : vector<8x128xf32>
    %cst_31 = arith.constant 5.000000e-01 : f32
    %118 = vector.broadcast %cst_31 : f32 to vector<8x128xf32>
    %119 = arith.mulf %118, %117 : vector<8x128xf32>
    %cst_32 = arith.constant 5.000000e-01 : f32
    %120 = vector.broadcast %cst_32 : f32 to vector<8x128xf32>
    %121 = arith.addf %119, %120 : vector<8x128xf32>
    %122 = vector.extract_strided_slice %121 {offsets = [0, 0], sizes = [8, 32], strides = [1, 1]} : vector<8x128xf32> to vector<8x32xf32>
    %123 = vector.extract_strided_slice %121 {offsets = [0, 32], sizes = [8, 32], strides = [1, 1]} : vector<8x128xf32> to vector<8x32xf32>
    %124 = vector.extract_strided_slice %121 {offsets = [0, 96], sizes = [8, 32], strides = [1, 1]} : vector<8x128xf32> to vector<8x32xf32>
    %125 = vector.extract_strided_slice %117 {offsets = [0, 64], sizes = [8, 32], strides = [1, 1]} : vector<8x128xf32> to vector<8x32xf32>
    %126 = arith.mulf %123, %111 : vector<8x32xf32>
    %127 = arith.mulf %122, %125 : vector<8x32xf32>
    %128 = arith.addf %126, %127 : vector<8x32xf32>
    %129 = math.tanh %128 : vector<8x32xf32>
    %130 = arith.mulf %124, %129 : vector<8x32xf32>
    %131 = vector.extract_strided_slice %9 {offsets = [56, 0], sizes = [8, 128], strides = [1, 1]} : vector<64x128xf32> to vector<8x128xf32>
    %cst_33 = arith.constant dense<0.000000e+00> : vector<8x128xf32>
    %132 = tpu.matmul %130, %4, %cst_33 {dimension_numbers = #tpu.dot_dimension_numbers<[1], [0], [0], [1], [0, 0, 1, 1], [], []>} : vector<8x32xf32>, vector<32x128xf32>, vector<8x128xf32> -> vector<8x128xf32>
    %133 = arith.addf %131, %132 : vector<8x128xf32>
    %134 = math.tanh %133 : vector<8x128xf32>
    %cst_34 = arith.constant 5.000000e-01 : f32
    %135 = vector.broadcast %cst_34 : f32 to vector<8x128xf32>
    %136 = arith.mulf %135, %134 : vector<8x128xf32>
    %cst_35 = arith.constant 5.000000e-01 : f32
    %137 = vector.broadcast %cst_35 : f32 to vector<8x128xf32>
    %138 = arith.addf %136, %137 : vector<8x128xf32>
    %139 = vector.extract_strided_slice %138 {offsets = [0, 0], sizes = [8, 32], strides = [1, 1]} : vector<8x128xf32> to vector<8x32xf32>
    %140 = vector.extract_strided_slice %138 {offsets = [0, 32], sizes = [8, 32], strides = [1, 1]} : vector<8x128xf32> to vector<8x32xf32>
    %141 = vector.extract_strided_slice %138 {offsets = [0, 96], sizes = [8, 32], strides = [1, 1]} : vector<8x128xf32> to vector<8x32xf32>
    %142 = vector.extract_strided_slice %134 {offsets = [0, 64], sizes = [8, 32], strides = [1, 1]} : vector<8x128xf32> to vector<8x32xf32>
    %143 = arith.mulf %140, %128 : vector<8x32xf32>
    %144 = arith.mulf %139, %142 : vector<8x32xf32>
    %145 = arith.addf %143, %144 : vector<8x32xf32>
    %146 = math.tanh %145 : vector<8x32xf32>
    %147 = arith.mulf %141, %146 : vector<8x32xf32>
    %148 = tpu.concatenate %28, %45, %62, %79, %96, %113, %130, %147 in 0 : vector<8x32xf32>, vector<8x32xf32>, vector<8x32xf32>, vector<8x32xf32>, vector<8x32xf32>, vector<8x32xf32>, vector<8x32xf32>, vector<8x32xf32> -> vector<64x32xf32>
    %c1 = arith.constant 1 : index
    %c0_36 = arith.constant 0 : index
    %c0_37 = arith.constant 0 : index
    %149 = vector.load %arg1[%c1, %c0_36, %c0_37] : memref<5x32x128xf32, #tpu.memory_space<vmem>>, vector<1x32x128xf32>
    %150 = vector.shape_cast %149 : vector<1x32x128xf32> to vector<32x128xf32>
    %c1_38 = arith.constant 1 : index
    %c0_39 = arith.constant 0 : index
    %c0_40 = arith.constant 0 : index
    %151 = vector.load %arg2[%c1_38, %c0_39, %c0_40] : memref<5x32x128xf32, #tpu.memory_space<vmem>>, vector<1x32x128xf32>
    %152 = vector.shape_cast %151 : vector<1x32x128xf32> to vector<32x128xf32>
    %c1_41 = arith.constant 1 : index
    %c0_42 = arith.constant 0 : index
    %c0_43 = arith.constant 0 : index
    %153 = vector.load %arg3[%c1_41, %c0_42, %c0_43] : memref<5x1x128xf32, #tpu.memory_space<vmem>>, vector<1x1x128xf32>
    %154 = vector.shape_cast %153 : vector<1x1x128xf32> to vector<1x128xf32>
    %cst_44 = arith.constant dense<0.000000e+00> : vector<64x128xf32>
    %155 = tpu.matmul %148, %150, %cst_44 {dimension_numbers = #tpu.dot_dimension_numbers<[1], [0], [0], [1], [0, 0, 1, 1], [], []>} : vector<64x32xf32>, vector<32x128xf32>, vector<64x128xf32> -> vector<64x128xf32>
    %156 = vector.broadcast %154 : vector<1x128xf32> to vector<64x128xf32>
    %157 = arith.addf %155, %156 : vector<64x128xf32>
    %cst_45 = arith.constant 0.000000e+00 : f32
    %158 = vector.broadcast %cst_45 : f32 to vector<8x32xf32>
    %cst_46 = arith.constant 0.000000e+00 : f32
    %159 = vector.broadcast %cst_46 : f32 to vector<8x32xf32>
    %160 = vector.extract_strided_slice %157 {offsets = [0, 0], sizes = [8, 128], strides = [1, 1]} : vector<64x128xf32> to vector<8x128xf32>
    %cst_47 = arith.constant dense<0.000000e+00> : vector<8x128xf32>
    %161 = tpu.matmul %158, %152, %cst_47 {dimension_numbers = #tpu.dot_dimension_numbers<[1], [0], [0], [1], [0, 0, 1, 1], [], []>} : vector<8x32xf32>, vector<32x128xf32>, vector<8x128xf32> -> vector<8x128xf32>
    %162 = arith.addf %160, %161 : vector<8x128xf32>
    %163 = math.tanh %162 : vector<8x128xf32>
    %cst_48 = arith.constant 5.000000e-01 : f32
    %164 = vector.broadcast %cst_48 : f32 to vector<8x128xf32>
    %165 = arith.mulf %164, %163 : vector<8x128xf32>
    %cst_49 = arith.constant 5.000000e-01 : f32
    %166 = vector.broadcast %cst_49 : f32 to vector<8x128xf32>
    %167 = arith.addf %165, %166 : vector<8x128xf32>
    %168 = vector.extract_strided_slice %167 {offsets = [0, 0], sizes = [8, 32], strides = [1, 1]} : vector<8x128xf32> to vector<8x32xf32>
    %169 = vector.extract_strided_slice %167 {offsets = [0, 32], sizes = [8, 32], strides = [1, 1]} : vector<8x128xf32> to vector<8x32xf32>
    %170 = vector.extract_strided_slice %167 {offsets = [0, 96], sizes = [8, 32], strides = [1, 1]} : vector<8x128xf32> to vector<8x32xf32>
    %171 = vector.extract_strided_slice %163 {offsets = [0, 64], sizes = [8, 32], strides = [1, 1]} : vector<8x128xf32> to vector<8x32xf32>
    %172 = arith.mulf %169, %159 : vector<8x32xf32>
    %173 = arith.mulf %168, %171 : vector<8x32xf32>
    %174 = arith.addf %172, %173 : vector<8x32xf32>
    %175 = math.tanh %174 : vector<8x32xf32>
    %176 = arith.mulf %170, %175 : vector<8x32xf32>
    %177 = vector.extract_strided_slice %157 {offsets = [8, 0], sizes = [8, 128], strides = [1, 1]} : vector<64x128xf32> to vector<8x128xf32>
    %cst_50 = arith.constant dense<0.000000e+00> : vector<8x128xf32>
    %178 = tpu.matmul %176, %152, %cst_50 {dimension_numbers = #tpu.dot_dimension_numbers<[1], [0], [0], [1], [0, 0, 1, 1], [], []>} : vector<8x32xf32>, vector<32x128xf32>, vector<8x128xf32> -> vector<8x128xf32>
    %179 = arith.addf %177, %178 : vector<8x128xf32>
    %180 = math.tanh %179 : vector<8x128xf32>
    %cst_51 = arith.constant 5.000000e-01 : f32
    %181 = vector.broadcast %cst_51 : f32 to vector<8x128xf32>
    %182 = arith.mulf %181, %180 : vector<8x128xf32>
    %cst_52 = arith.constant 5.000000e-01 : f32
    %183 = vector.broadcast %cst_52 : f32 to vector<8x128xf32>
    %184 = arith.addf %182, %183 : vector<8x128xf32>
    %185 = vector.extract_strided_slice %184 {offsets = [0, 0], sizes = [8, 32], strides = [1, 1]} : vector<8x128xf32> to vector<8x32xf32>
    %186 = vector.extract_strided_slice %184 {offsets = [0, 32], sizes = [8, 32], strides = [1, 1]} : vector<8x128xf32> to vector<8x32xf32>
    %187 = vector.extract_strided_slice %184 {offsets = [0, 96], sizes = [8, 32], strides = [1, 1]} : vector<8x128xf32> to vector<8x32xf32>
    %188 = vector.extract_strided_slice %180 {offsets = [0, 64], sizes = [8, 32], strides = [1, 1]} : vector<8x128xf32> to vector<8x32xf32>
    %189 = arith.mulf %186, %174 : vector<8x32xf32>
    %190 = arith.mulf %185, %188 : vector<8x32xf32>
    %191 = arith.addf %189, %190 : vector<8x32xf32>
    %192 = math.tanh %191 : vector<8x32xf32>
    %193 = arith.mulf %187, %192 : vector<8x32xf32>
    %194 = vector.extract_strided_slice %157 {offsets = [16, 0], sizes = [8, 128], strides = [1, 1]} : vector<64x128xf32> to vector<8x128xf32>
    %cst_53 = arith.constant dense<0.000000e+00> : vector<8x128xf32>
    %195 = tpu.matmul %193, %152, %cst_53 {dimension_numbers = #tpu.dot_dimension_numbers<[1], [0], [0], [1], [0, 0, 1, 1], [], []>} : vector<8x32xf32>, vector<32x128xf32>, vector<8x128xf32> -> vector<8x128xf32>
    %196 = arith.addf %194, %195 : vector<8x128xf32>
    %197 = math.tanh %196 : vector<8x128xf32>
    %cst_54 = arith.constant 5.000000e-01 : f32
    %198 = vector.broadcast %cst_54 : f32 to vector<8x128xf32>
    %199 = arith.mulf %198, %197 : vector<8x128xf32>
    %cst_55 = arith.constant 5.000000e-01 : f32
    %200 = vector.broadcast %cst_55 : f32 to vector<8x128xf32>
    %201 = arith.addf %199, %200 : vector<8x128xf32>
    %202 = vector.extract_strided_slice %201 {offsets = [0, 0], sizes = [8, 32], strides = [1, 1]} : vector<8x128xf32> to vector<8x32xf32>
    %203 = vector.extract_strided_slice %201 {offsets = [0, 32], sizes = [8, 32], strides = [1, 1]} : vector<8x128xf32> to vector<8x32xf32>
    %204 = vector.extract_strided_slice %201 {offsets = [0, 96], sizes = [8, 32], strides = [1, 1]} : vector<8x128xf32> to vector<8x32xf32>
    %205 = vector.extract_strided_slice %197 {offsets = [0, 64], sizes = [8, 32], strides = [1, 1]} : vector<8x128xf32> to vector<8x32xf32>
    %206 = arith.mulf %203, %191 : vector<8x32xf32>
    %207 = arith.mulf %202, %205 : vector<8x32xf32>
    %208 = arith.addf %206, %207 : vector<8x32xf32>
    %209 = math.tanh %208 : vector<8x32xf32>
    %210 = arith.mulf %204, %209 : vector<8x32xf32>
    %211 = vector.extract_strided_slice %157 {offsets = [24, 0], sizes = [8, 128], strides = [1, 1]} : vector<64x128xf32> to vector<8x128xf32>
    %cst_56 = arith.constant dense<0.000000e+00> : vector<8x128xf32>
    %212 = tpu.matmul %210, %152, %cst_56 {dimension_numbers = #tpu.dot_dimension_numbers<[1], [0], [0], [1], [0, 0, 1, 1], [], []>} : vector<8x32xf32>, vector<32x128xf32>, vector<8x128xf32> -> vector<8x128xf32>
    %213 = arith.addf %211, %212 : vector<8x128xf32>
    %214 = math.tanh %213 : vector<8x128xf32>
    %cst_57 = arith.constant 5.000000e-01 : f32
    %215 = vector.broadcast %cst_57 : f32 to vector<8x128xf32>
    %216 = arith.mulf %215, %214 : vector<8x128xf32>
    %cst_58 = arith.constant 5.000000e-01 : f32
    %217 = vector.broadcast %cst_58 : f32 to vector<8x128xf32>
    %218 = arith.addf %216, %217 : vector<8x128xf32>
    %219 = vector.extract_strided_slice %218 {offsets = [0, 0], sizes = [8, 32], strides = [1, 1]} : vector<8x128xf32> to vector<8x32xf32>
    %220 = vector.extract_strided_slice %218 {offsets = [0, 32], sizes = [8, 32], strides = [1, 1]} : vector<8x128xf32> to vector<8x32xf32>
    %221 = vector.extract_strided_slice %218 {offsets = [0, 96], sizes = [8, 32], strides = [1, 1]} : vector<8x128xf32> to vector<8x32xf32>
    %222 = vector.extract_strided_slice %214 {offsets = [0, 64], sizes = [8, 32], strides = [1, 1]} : vector<8x128xf32> to vector<8x32xf32>
    %223 = arith.mulf %220, %208 : vector<8x32xf32>
    %224 = arith.mulf %219, %222 : vector<8x32xf32>
    %225 = arith.addf %223, %224 : vector<8x32xf32>
    %226 = math.tanh %225 : vector<8x32xf32>
    %227 = arith.mulf %221, %226 : vector<8x32xf32>
    %228 = vector.extract_strided_slice %157 {offsets = [32, 0], sizes = [8, 128], strides = [1, 1]} : vector<64x128xf32> to vector<8x128xf32>
    %cst_59 = arith.constant dense<0.000000e+00> : vector<8x128xf32>
    %229 = tpu.matmul %227, %152, %cst_59 {dimension_numbers = #tpu.dot_dimension_numbers<[1], [0], [0], [1], [0, 0, 1, 1], [], []>} : vector<8x32xf32>, vector<32x128xf32>, vector<8x128xf32> -> vector<8x128xf32>
    %230 = arith.addf %228, %229 : vector<8x128xf32>
    %231 = math.tanh %230 : vector<8x128xf32>
    %cst_60 = arith.constant 5.000000e-01 : f32
    %232 = vector.broadcast %cst_60 : f32 to vector<8x128xf32>
    %233 = arith.mulf %232, %231 : vector<8x128xf32>
    %cst_61 = arith.constant 5.000000e-01 : f32
    %234 = vector.broadcast %cst_61 : f32 to vector<8x128xf32>
    %235 = arith.addf %233, %234 : vector<8x128xf32>
    %236 = vector.extract_strided_slice %235 {offsets = [0, 0], sizes = [8, 32], strides = [1, 1]} : vector<8x128xf32> to vector<8x32xf32>
    %237 = vector.extract_strided_slice %235 {offsets = [0, 32], sizes = [8, 32], strides = [1, 1]} : vector<8x128xf32> to vector<8x32xf32>
    %238 = vector.extract_strided_slice %235 {offsets = [0, 96], sizes = [8, 32], strides = [1, 1]} : vector<8x128xf32> to vector<8x32xf32>
    %239 = vector.extract_strided_slice %231 {offsets = [0, 64], sizes = [8, 32], strides = [1, 1]} : vector<8x128xf32> to vector<8x32xf32>
    %240 = arith.mulf %237, %225 : vector<8x32xf32>
    %241 = arith.mulf %236, %239 : vector<8x32xf32>
    %242 = arith.addf %240, %241 : vector<8x32xf32>
    %243 = math.tanh %242 : vector<8x32xf32>
    %244 = arith.mulf %238, %243 : vector<8x32xf32>
    %245 = vector.extract_strided_slice %157 {offsets = [40, 0], sizes = [8, 128], strides = [1, 1]} : vector<64x128xf32> to vector<8x128xf32>
    %cst_62 = arith.constant dense<0.000000e+00> : vector<8x128xf32>
    %246 = tpu.matmul %244, %152, %cst_62 {dimension_numbers = #tpu.dot_dimension_numbers<[1], [0], [0], [1], [0, 0, 1, 1], [], []>} : vector<8x32xf32>, vector<32x128xf32>, vector<8x128xf32> -> vector<8x128xf32>
    %247 = arith.addf %245, %246 : vector<8x128xf32>
    %248 = math.tanh %247 : vector<8x128xf32>
    %cst_63 = arith.constant 5.000000e-01 : f32
    %249 = vector.broadcast %cst_63 : f32 to vector<8x128xf32>
    %250 = arith.mulf %249, %248 : vector<8x128xf32>
    %cst_64 = arith.constant 5.000000e-01 : f32
    %251 = vector.broadcast %cst_64 : f32 to vector<8x128xf32>
    %252 = arith.addf %250, %251 : vector<8x128xf32>
    %253 = vector.extract_strided_slice %252 {offsets = [0, 0], sizes = [8, 32], strides = [1, 1]} : vector<8x128xf32> to vector<8x32xf32>
    %254 = vector.extract_strided_slice %252 {offsets = [0, 32], sizes = [8, 32], strides = [1, 1]} : vector<8x128xf32> to vector<8x32xf32>
    %255 = vector.extract_strided_slice %252 {offsets = [0, 96], sizes = [8, 32], strides = [1, 1]} : vector<8x128xf32> to vector<8x32xf32>
    %256 = vector.extract_strided_slice %248 {offsets = [0, 64], sizes = [8, 32], strides = [1, 1]} : vector<8x128xf32> to vector<8x32xf32>
    %257 = arith.mulf %254, %242 : vector<8x32xf32>
    %258 = arith.mulf %253, %256 : vector<8x32xf32>
    %259 = arith.addf %257, %258 : vector<8x32xf32>
    %260 = math.tanh %259 : vector<8x32xf32>
    %261 = arith.mulf %255, %260 : vector<8x32xf32>
    %262 = vector.extract_strided_slice %157 {offsets = [48, 0], sizes = [8, 128], strides = [1, 1]} : vector<64x128xf32> to vector<8x128xf32>
    %cst_65 = arith.constant dense<0.000000e+00> : vector<8x128xf32>
    %263 = tpu.matmul %261, %152, %cst_65 {dimension_numbers = #tpu.dot_dimension_numbers<[1], [0], [0], [1], [0, 0, 1, 1], [], []>} : vector<8x32xf32>, vector<32x128xf32>, vector<8x128xf32> -> vector<8x128xf32>
    %264 = arith.addf %262, %263 : vector<8x128xf32>
    %265 = math.tanh %264 : vector<8x128xf32>
    %cst_66 = arith.constant 5.000000e-01 : f32
    %266 = vector.broadcast %cst_66 : f32 to vector<8x128xf32>
    %267 = arith.mulf %266, %265 : vector<8x128xf32>
    %cst_67 = arith.constant 5.000000e-01 : f32
    %268 = vector.broadcast %cst_67 : f32 to vector<8x128xf32>
    %269 = arith.addf %267, %268 : vector<8x128xf32>
    %270 = vector.extract_strided_slice %269 {offsets = [0, 0], sizes = [8, 32], strides = [1, 1]} : vector<8x128xf32> to vector<8x32xf32>
    %271 = vector.extract_strided_slice %269 {offsets = [0, 32], sizes = [8, 32], strides = [1, 1]} : vector<8x128xf32> to vector<8x32xf32>
    %272 = vector.extract_strided_slice %269 {offsets = [0, 96], sizes = [8, 32], strides = [1, 1]} : vector<8x128xf32> to vector<8x32xf32>
    %273 = vector.extract_strided_slice %265 {offsets = [0, 64], sizes = [8, 32], strides = [1, 1]} : vector<8x128xf32> to vector<8x32xf32>
    %274 = arith.mulf %271, %259 : vector<8x32xf32>
    %275 = arith.mulf %270, %273 : vector<8x32xf32>
    %276 = arith.addf %274, %275 : vector<8x32xf32>
    %277 = math.tanh %276 : vector<8x32xf32>
    %278 = arith.mulf %272, %277 : vector<8x32xf32>
    %279 = vector.extract_strided_slice %157 {offsets = [56, 0], sizes = [8, 128], strides = [1, 1]} : vector<64x128xf32> to vector<8x128xf32>
    %cst_68 = arith.constant dense<0.000000e+00> : vector<8x128xf32>
    %280 = tpu.matmul %278, %152, %cst_68 {dimension_numbers = #tpu.dot_dimension_numbers<[1], [0], [0], [1], [0, 0, 1, 1], [], []>} : vector<8x32xf32>, vector<32x128xf32>, vector<8x128xf32> -> vector<8x128xf32>
    %281 = arith.addf %279, %280 : vector<8x128xf32>
    %282 = math.tanh %281 : vector<8x128xf32>
    %cst_69 = arith.constant 5.000000e-01 : f32
    %283 = vector.broadcast %cst_69 : f32 to vector<8x128xf32>
    %284 = arith.mulf %283, %282 : vector<8x128xf32>
    %cst_70 = arith.constant 5.000000e-01 : f32
    %285 = vector.broadcast %cst_70 : f32 to vector<8x128xf32>
    %286 = arith.addf %284, %285 : vector<8x128xf32>
    %287 = vector.extract_strided_slice %286 {offsets = [0, 0], sizes = [8, 32], strides = [1, 1]} : vector<8x128xf32> to vector<8x32xf32>
    %288 = vector.extract_strided_slice %286 {offsets = [0, 32], sizes = [8, 32], strides = [1, 1]} : vector<8x128xf32> to vector<8x32xf32>
    %289 = vector.extract_strided_slice %286 {offsets = [0, 96], sizes = [8, 32], strides = [1, 1]} : vector<8x128xf32> to vector<8x32xf32>
    %290 = vector.extract_strided_slice %282 {offsets = [0, 64], sizes = [8, 32], strides = [1, 1]} : vector<8x128xf32> to vector<8x32xf32>
    %291 = arith.mulf %288, %276 : vector<8x32xf32>
    %292 = arith.mulf %287, %290 : vector<8x32xf32>
    %293 = arith.addf %291, %292 : vector<8x32xf32>
    %294 = math.tanh %293 : vector<8x32xf32>
    %295 = arith.mulf %289, %294 : vector<8x32xf32>
    %296 = tpu.concatenate %176, %193, %210, %227, %244, %261, %278, %295 in 0 : vector<8x32xf32>, vector<8x32xf32>, vector<8x32xf32>, vector<8x32xf32>, vector<8x32xf32>, vector<8x32xf32>, vector<8x32xf32>, vector<8x32xf32> -> vector<64x32xf32>
    %c2 = arith.constant 2 : index
    %c0_71 = arith.constant 0 : index
    %c0_72 = arith.constant 0 : index
    %297 = vector.load %arg1[%c2, %c0_71, %c0_72] : memref<5x32x128xf32, #tpu.memory_space<vmem>>, vector<1x32x128xf32>
    %298 = vector.shape_cast %297 : vector<1x32x128xf32> to vector<32x128xf32>
    %c2_73 = arith.constant 2 : index
    %c0_74 = arith.constant 0 : index
    %c0_75 = arith.constant 0 : index
    %299 = vector.load %arg2[%c2_73, %c0_74, %c0_75] : memref<5x32x128xf32, #tpu.memory_space<vmem>>, vector<1x32x128xf32>
    %300 = vector.shape_cast %299 : vector<1x32x128xf32> to vector<32x128xf32>
    %c2_76 = arith.constant 2 : index
    %c0_77 = arith.constant 0 : index
    %c0_78 = arith.constant 0 : index
    %301 = vector.load %arg3[%c2_76, %c0_77, %c0_78] : memref<5x1x128xf32, #tpu.memory_space<vmem>>, vector<1x1x128xf32>
    %302 = vector.shape_cast %301 : vector<1x1x128xf32> to vector<1x128xf32>
    %cst_79 = arith.constant dense<0.000000e+00> : vector<64x128xf32>
    %303 = tpu.matmul %296, %298, %cst_79 {dimension_numbers = #tpu.dot_dimension_numbers<[1], [0], [0], [1], [0, 0, 1, 1], [], []>} : vector<64x32xf32>, vector<32x128xf32>, vector<64x128xf32> -> vector<64x128xf32>
    %304 = vector.broadcast %302 : vector<1x128xf32> to vector<64x128xf32>
    %305 = arith.addf %303, %304 : vector<64x128xf32>
    %cst_80 = arith.constant 0.000000e+00 : f32
    %306 = vector.broadcast %cst_80 : f32 to vector<8x32xf32>
    %cst_81 = arith.constant 0.000000e+00 : f32
    %307 = vector.broadcast %cst_81 : f32 to vector<8x32xf32>
    %308 = vector.extract_strided_slice %305 {offsets = [0, 0], sizes = [8, 128], strides = [1, 1]} : vector<64x128xf32> to vector<8x128xf32>
    %cst_82 = arith.constant dense<0.000000e+00> : vector<8x128xf32>
    %309 = tpu.matmul %306, %300, %cst_82 {dimension_numbers = #tpu.dot_dimension_numbers<[1], [0], [0], [1], [0, 0, 1, 1], [], []>} : vector<8x32xf32>, vector<32x128xf32>, vector<8x128xf32> -> vector<8x128xf32>
    %310 = arith.addf %308, %309 : vector<8x128xf32>
    %311 = math.tanh %310 : vector<8x128xf32>
    %cst_83 = arith.constant 5.000000e-01 : f32
    %312 = vector.broadcast %cst_83 : f32 to vector<8x128xf32>
    %313 = arith.mulf %312, %311 : vector<8x128xf32>
    %cst_84 = arith.constant 5.000000e-01 : f32
    %314 = vector.broadcast %cst_84 : f32 to vector<8x128xf32>
    %315 = arith.addf %313, %314 : vector<8x128xf32>
    %316 = vector.extract_strided_slice %315 {offsets = [0, 0], sizes = [8, 32], strides = [1, 1]} : vector<8x128xf32> to vector<8x32xf32>
    %317 = vector.extract_strided_slice %315 {offsets = [0, 32], sizes = [8, 32], strides = [1, 1]} : vector<8x128xf32> to vector<8x32xf32>
    %318 = vector.extract_strided_slice %315 {offsets = [0, 96], sizes = [8, 32], strides = [1, 1]} : vector<8x128xf32> to vector<8x32xf32>
    %319 = vector.extract_strided_slice %311 {offsets = [0, 64], sizes = [8, 32], strides = [1, 1]} : vector<8x128xf32> to vector<8x32xf32>
    %320 = arith.mulf %317, %307 : vector<8x32xf32>
    %321 = arith.mulf %316, %319 : vector<8x32xf32>
    %322 = arith.addf %320, %321 : vector<8x32xf32>
    %323 = math.tanh %322 : vector<8x32xf32>
    %324 = arith.mulf %318, %323 : vector<8x32xf32>
    %325 = vector.extract_strided_slice %305 {offsets = [8, 0], sizes = [8, 128], strides = [1, 1]} : vector<64x128xf32> to vector<8x128xf32>
    %cst_85 = arith.constant dense<0.000000e+00> : vector<8x128xf32>
    %326 = tpu.matmul %324, %300, %cst_85 {dimension_numbers = #tpu.dot_dimension_numbers<[1], [0], [0], [1], [0, 0, 1, 1], [], []>} : vector<8x32xf32>, vector<32x128xf32>, vector<8x128xf32> -> vector<8x128xf32>
    %327 = arith.addf %325, %326 : vector<8x128xf32>
    %328 = math.tanh %327 : vector<8x128xf32>
    %cst_86 = arith.constant 5.000000e-01 : f32
    %329 = vector.broadcast %cst_86 : f32 to vector<8x128xf32>
    %330 = arith.mulf %329, %328 : vector<8x128xf32>
    %cst_87 = arith.constant 5.000000e-01 : f32
    %331 = vector.broadcast %cst_87 : f32 to vector<8x128xf32>
    %332 = arith.addf %330, %331 : vector<8x128xf32>
    %333 = vector.extract_strided_slice %332 {offsets = [0, 0], sizes = [8, 32], strides = [1, 1]} : vector<8x128xf32> to vector<8x32xf32>
    %334 = vector.extract_strided_slice %332 {offsets = [0, 32], sizes = [8, 32], strides = [1, 1]} : vector<8x128xf32> to vector<8x32xf32>
    %335 = vector.extract_strided_slice %332 {offsets = [0, 96], sizes = [8, 32], strides = [1, 1]} : vector<8x128xf32> to vector<8x32xf32>
    %336 = vector.extract_strided_slice %328 {offsets = [0, 64], sizes = [8, 32], strides = [1, 1]} : vector<8x128xf32> to vector<8x32xf32>
    %337 = arith.mulf %334, %322 : vector<8x32xf32>
    %338 = arith.mulf %333, %336 : vector<8x32xf32>
    %339 = arith.addf %337, %338 : vector<8x32xf32>
    %340 = math.tanh %339 : vector<8x32xf32>
    %341 = arith.mulf %335, %340 : vector<8x32xf32>
    %342 = vector.extract_strided_slice %305 {offsets = [16, 0], sizes = [8, 128], strides = [1, 1]} : vector<64x128xf32> to vector<8x128xf32>
    %cst_88 = arith.constant dense<0.000000e+00> : vector<8x128xf32>
    %343 = tpu.matmul %341, %300, %cst_88 {dimension_numbers = #tpu.dot_dimension_numbers<[1], [0], [0], [1], [0, 0, 1, 1], [], []>} : vector<8x32xf32>, vector<32x128xf32>, vector<8x128xf32> -> vector<8x128xf32>
    %344 = arith.addf %342, %343 : vector<8x128xf32>
    %345 = math.tanh %344 : vector<8x128xf32>
    %cst_89 = arith.constant 5.000000e-01 : f32
    %346 = vector.broadcast %cst_89 : f32 to vector<8x128xf32>
    %347 = arith.mulf %346, %345 : vector<8x128xf32>
    %cst_90 = arith.constant 5.000000e-01 : f32
    %348 = vector.broadcast %cst_90 : f32 to vector<8x128xf32>
    %349 = arith.addf %347, %348 : vector<8x128xf32>
    %350 = vector.extract_strided_slice %349 {offsets = [0, 0], sizes = [8, 32], strides = [1, 1]} : vector<8x128xf32> to vector<8x32xf32>
    %351 = vector.extract_strided_slice %349 {offsets = [0, 32], sizes = [8, 32], strides = [1, 1]} : vector<8x128xf32> to vector<8x32xf32>
    %352 = vector.extract_strided_slice %349 {offsets = [0, 96], sizes = [8, 32], strides = [1, 1]} : vector<8x128xf32> to vector<8x32xf32>
    %353 = vector.extract_strided_slice %345 {offsets = [0, 64], sizes = [8, 32], strides = [1, 1]} : vector<8x128xf32> to vector<8x32xf32>
    %354 = arith.mulf %351, %339 : vector<8x32xf32>
    %355 = arith.mulf %350, %353 : vector<8x32xf32>
    %356 = arith.addf %354, %355 : vector<8x32xf32>
    %357 = math.tanh %356 : vector<8x32xf32>
    %358 = arith.mulf %352, %357 : vector<8x32xf32>
    %359 = vector.extract_strided_slice %305 {offsets = [24, 0], sizes = [8, 128], strides = [1, 1]} : vector<64x128xf32> to vector<8x128xf32>
    %cst_91 = arith.constant dense<0.000000e+00> : vector<8x128xf32>
    %360 = tpu.matmul %358, %300, %cst_91 {dimension_numbers = #tpu.dot_dimension_numbers<[1], [0], [0], [1], [0, 0, 1, 1], [], []>} : vector<8x32xf32>, vector<32x128xf32>, vector<8x128xf32> -> vector<8x128xf32>
    %361 = arith.addf %359, %360 : vector<8x128xf32>
    %362 = math.tanh %361 : vector<8x128xf32>
    %cst_92 = arith.constant 5.000000e-01 : f32
    %363 = vector.broadcast %cst_92 : f32 to vector<8x128xf32>
    %364 = arith.mulf %363, %362 : vector<8x128xf32>
    %cst_93 = arith.constant 5.000000e-01 : f32
    %365 = vector.broadcast %cst_93 : f32 to vector<8x128xf32>
    %366 = arith.addf %364, %365 : vector<8x128xf32>
    %367 = vector.extract_strided_slice %366 {offsets = [0, 0], sizes = [8, 32], strides = [1, 1]} : vector<8x128xf32> to vector<8x32xf32>
    %368 = vector.extract_strided_slice %366 {offsets = [0, 32], sizes = [8, 32], strides = [1, 1]} : vector<8x128xf32> to vector<8x32xf32>
    %369 = vector.extract_strided_slice %366 {offsets = [0, 96], sizes = [8, 32], strides = [1, 1]} : vector<8x128xf32> to vector<8x32xf32>
    %370 = vector.extract_strided_slice %362 {offsets = [0, 64], sizes = [8, 32], strides = [1, 1]} : vector<8x128xf32> to vector<8x32xf32>
    %371 = arith.mulf %368, %356 : vector<8x32xf32>
    %372 = arith.mulf %367, %370 : vector<8x32xf32>
    %373 = arith.addf %371, %372 : vector<8x32xf32>
    %374 = math.tanh %373 : vector<8x32xf32>
    %375 = arith.mulf %369, %374 : vector<8x32xf32>
    %376 = vector.extract_strided_slice %305 {offsets = [32, 0], sizes = [8, 128], strides = [1, 1]} : vector<64x128xf32> to vector<8x128xf32>
    %cst_94 = arith.constant dense<0.000000e+00> : vector<8x128xf32>
    %377 = tpu.matmul %375, %300, %cst_94 {dimension_numbers = #tpu.dot_dimension_numbers<[1], [0], [0], [1], [0, 0, 1, 1], [], []>} : vector<8x32xf32>, vector<32x128xf32>, vector<8x128xf32> -> vector<8x128xf32>
    %378 = arith.addf %376, %377 : vector<8x128xf32>
    %379 = math.tanh %378 : vector<8x128xf32>
    %cst_95 = arith.constant 5.000000e-01 : f32
    %380 = vector.broadcast %cst_95 : f32 to vector<8x128xf32>
    %381 = arith.mulf %380, %379 : vector<8x128xf32>
    %cst_96 = arith.constant 5.000000e-01 : f32
    %382 = vector.broadcast %cst_96 : f32 to vector<8x128xf32>
    %383 = arith.addf %381, %382 : vector<8x128xf32>
    %384 = vector.extract_strided_slice %383 {offsets = [0, 0], sizes = [8, 32], strides = [1, 1]} : vector<8x128xf32> to vector<8x32xf32>
    %385 = vector.extract_strided_slice %383 {offsets = [0, 32], sizes = [8, 32], strides = [1, 1]} : vector<8x128xf32> to vector<8x32xf32>
    %386 = vector.extract_strided_slice %383 {offsets = [0, 96], sizes = [8, 32], strides = [1, 1]} : vector<8x128xf32> to vector<8x32xf32>
    %387 = vector.extract_strided_slice %379 {offsets = [0, 64], sizes = [8, 32], strides = [1, 1]} : vector<8x128xf32> to vector<8x32xf32>
    %388 = arith.mulf %385, %373 : vector<8x32xf32>
    %389 = arith.mulf %384, %387 : vector<8x32xf32>
    %390 = arith.addf %388, %389 : vector<8x32xf32>
    %391 = math.tanh %390 : vector<8x32xf32>
    %392 = arith.mulf %386, %391 : vector<8x32xf32>
    %393 = vector.extract_strided_slice %305 {offsets = [40, 0], sizes = [8, 128], strides = [1, 1]} : vector<64x128xf32> to vector<8x128xf32>
    %cst_97 = arith.constant dense<0.000000e+00> : vector<8x128xf32>
    %394 = tpu.matmul %392, %300, %cst_97 {dimension_numbers = #tpu.dot_dimension_numbers<[1], [0], [0], [1], [0, 0, 1, 1], [], []>} : vector<8x32xf32>, vector<32x128xf32>, vector<8x128xf32> -> vector<8x128xf32>
    %395 = arith.addf %393, %394 : vector<8x128xf32>
    %396 = math.tanh %395 : vector<8x128xf32>
    %cst_98 = arith.constant 5.000000e-01 : f32
    %397 = vector.broadcast %cst_98 : f32 to vector<8x128xf32>
    %398 = arith.mulf %397, %396 : vector<8x128xf32>
    %cst_99 = arith.constant 5.000000e-01 : f32
    %399 = vector.broadcast %cst_99 : f32 to vector<8x128xf32>
    %400 = arith.addf %398, %399 : vector<8x128xf32>
    %401 = vector.extract_strided_slice %400 {offsets = [0, 0], sizes = [8, 32], strides = [1, 1]} : vector<8x128xf32> to vector<8x32xf32>
    %402 = vector.extract_strided_slice %400 {offsets = [0, 32], sizes = [8, 32], strides = [1, 1]} : vector<8x128xf32> to vector<8x32xf32>
    %403 = vector.extract_strided_slice %400 {offsets = [0, 96], sizes = [8, 32], strides = [1, 1]} : vector<8x128xf32> to vector<8x32xf32>
    %404 = vector.extract_strided_slice %396 {offsets = [0, 64], sizes = [8, 32], strides = [1, 1]} : vector<8x128xf32> to vector<8x32xf32>
    %405 = arith.mulf %402, %390 : vector<8x32xf32>
    %406 = arith.mulf %401, %404 : vector<8x32xf32>
    %407 = arith.addf %405, %406 : vector<8x32xf32>
    %408 = math.tanh %407 : vector<8x32xf32>
    %409 = arith.mulf %403, %408 : vector<8x32xf32>
    %410 = vector.extract_strided_slice %305 {offsets = [48, 0], sizes = [8, 128], strides = [1, 1]} : vector<64x128xf32> to vector<8x128xf32>
    %cst_100 = arith.constant dense<0.000000e+00> : vector<8x128xf32>
    %411 = tpu.matmul %409, %300, %cst_100 {dimension_numbers = #tpu.dot_dimension_numbers<[1], [0], [0], [1], [0, 0, 1, 1], [], []>} : vector<8x32xf32>, vector<32x128xf32>, vector<8x128xf32> -> vector<8x128xf32>
    %412 = arith.addf %410, %411 : vector<8x128xf32>
    %413 = math.tanh %412 : vector<8x128xf32>
    %cst_101 = arith.constant 5.000000e-01 : f32
    %414 = vector.broadcast %cst_101 : f32 to vector<8x128xf32>
    %415 = arith.mulf %414, %413 : vector<8x128xf32>
    %cst_102 = arith.constant 5.000000e-01 : f32
    %416 = vector.broadcast %cst_102 : f32 to vector<8x128xf32>
    %417 = arith.addf %415, %416 : vector<8x128xf32>
    %418 = vector.extract_strided_slice %417 {offsets = [0, 0], sizes = [8, 32], strides = [1, 1]} : vector<8x128xf32> to vector<8x32xf32>
    %419 = vector.extract_strided_slice %417 {offsets = [0, 32], sizes = [8, 32], strides = [1, 1]} : vector<8x128xf32> to vector<8x32xf32>
    %420 = vector.extract_strided_slice %417 {offsets = [0, 96], sizes = [8, 32], strides = [1, 1]} : vector<8x128xf32> to vector<8x32xf32>
    %421 = vector.extract_strided_slice %413 {offsets = [0, 64], sizes = [8, 32], strides = [1, 1]} : vector<8x128xf32> to vector<8x32xf32>
    %422 = arith.mulf %419, %407 : vector<8x32xf32>
    %423 = arith.mulf %418, %421 : vector<8x32xf32>
    %424 = arith.addf %422, %423 : vector<8x32xf32>
    %425 = math.tanh %424 : vector<8x32xf32>
    %426 = arith.mulf %420, %425 : vector<8x32xf32>
    %427 = vector.extract_strided_slice %305 {offsets = [56, 0], sizes = [8, 128], strides = [1, 1]} : vector<64x128xf32> to vector<8x128xf32>
    %cst_103 = arith.constant dense<0.000000e+00> : vector<8x128xf32>
    %428 = tpu.matmul %426, %300, %cst_103 {dimension_numbers = #tpu.dot_dimension_numbers<[1], [0], [0], [1], [0, 0, 1, 1], [], []>} : vector<8x32xf32>, vector<32x128xf32>, vector<8x128xf32> -> vector<8x128xf32>
    %429 = arith.addf %427, %428 : vector<8x128xf32>
    %430 = math.tanh %429 : vector<8x128xf32>
    %cst_104 = arith.constant 5.000000e-01 : f32
    %431 = vector.broadcast %cst_104 : f32 to vector<8x128xf32>
    %432 = arith.mulf %431, %430 : vector<8x128xf32>
    %cst_105 = arith.constant 5.000000e-01 : f32
    %433 = vector.broadcast %cst_105 : f32 to vector<8x128xf32>
    %434 = arith.addf %432, %433 : vector<8x128xf32>
    %435 = vector.extract_strided_slice %434 {offsets = [0, 0], sizes = [8, 32], strides = [1, 1]} : vector<8x128xf32> to vector<8x32xf32>
    %436 = vector.extract_strided_slice %434 {offsets = [0, 32], sizes = [8, 32], strides = [1, 1]} : vector<8x128xf32> to vector<8x32xf32>
    %437 = vector.extract_strided_slice %434 {offsets = [0, 96], sizes = [8, 32], strides = [1, 1]} : vector<8x128xf32> to vector<8x32xf32>
    %438 = vector.extract_strided_slice %430 {offsets = [0, 64], sizes = [8, 32], strides = [1, 1]} : vector<8x128xf32> to vector<8x32xf32>
    %439 = arith.mulf %436, %424 : vector<8x32xf32>
    %440 = arith.mulf %435, %438 : vector<8x32xf32>
    %441 = arith.addf %439, %440 : vector<8x32xf32>
    %442 = math.tanh %441 : vector<8x32xf32>
    %443 = arith.mulf %437, %442 : vector<8x32xf32>
    %444 = tpu.concatenate %324, %341, %358, %375, %392, %409, %426, %443 in 0 : vector<8x32xf32>, vector<8x32xf32>, vector<8x32xf32>, vector<8x32xf32>, vector<8x32xf32>, vector<8x32xf32>, vector<8x32xf32>, vector<8x32xf32> -> vector<64x32xf32>
    %c3 = arith.constant 3 : index
    %c0_106 = arith.constant 0 : index
    %c0_107 = arith.constant 0 : index
    %445 = vector.load %arg1[%c3, %c0_106, %c0_107] : memref<5x32x128xf32, #tpu.memory_space<vmem>>, vector<1x32x128xf32>
    %446 = vector.shape_cast %445 : vector<1x32x128xf32> to vector<32x128xf32>
    %c3_108 = arith.constant 3 : index
    %c0_109 = arith.constant 0 : index
    %c0_110 = arith.constant 0 : index
    %447 = vector.load %arg2[%c3_108, %c0_109, %c0_110] : memref<5x32x128xf32, #tpu.memory_space<vmem>>, vector<1x32x128xf32>
    %448 = vector.shape_cast %447 : vector<1x32x128xf32> to vector<32x128xf32>
    %c3_111 = arith.constant 3 : index
    %c0_112 = arith.constant 0 : index
    %c0_113 = arith.constant 0 : index
    %449 = vector.load %arg3[%c3_111, %c0_112, %c0_113] : memref<5x1x128xf32, #tpu.memory_space<vmem>>, vector<1x1x128xf32>
    %450 = vector.shape_cast %449 : vector<1x1x128xf32> to vector<1x128xf32>
    %cst_114 = arith.constant dense<0.000000e+00> : vector<64x128xf32>
    %451 = tpu.matmul %444, %446, %cst_114 {dimension_numbers = #tpu.dot_dimension_numbers<[1], [0], [0], [1], [0, 0, 1, 1], [], []>} : vector<64x32xf32>, vector<32x128xf32>, vector<64x128xf32> -> vector<64x128xf32>
    %452 = vector.broadcast %450 : vector<1x128xf32> to vector<64x128xf32>
    %453 = arith.addf %451, %452 : vector<64x128xf32>
    %cst_115 = arith.constant 0.000000e+00 : f32
    %454 = vector.broadcast %cst_115 : f32 to vector<8x32xf32>
    %cst_116 = arith.constant 0.000000e+00 : f32
    %455 = vector.broadcast %cst_116 : f32 to vector<8x32xf32>
    %456 = vector.extract_strided_slice %453 {offsets = [0, 0], sizes = [8, 128], strides = [1, 1]} : vector<64x128xf32> to vector<8x128xf32>
    %cst_117 = arith.constant dense<0.000000e+00> : vector<8x128xf32>
    %457 = tpu.matmul %454, %448, %cst_117 {dimension_numbers = #tpu.dot_dimension_numbers<[1], [0], [0], [1], [0, 0, 1, 1], [], []>} : vector<8x32xf32>, vector<32x128xf32>, vector<8x128xf32> -> vector<8x128xf32>
    %458 = arith.addf %456, %457 : vector<8x128xf32>
    %459 = math.tanh %458 : vector<8x128xf32>
    %cst_118 = arith.constant 5.000000e-01 : f32
    %460 = vector.broadcast %cst_118 : f32 to vector<8x128xf32>
    %461 = arith.mulf %460, %459 : vector<8x128xf32>
    %cst_119 = arith.constant 5.000000e-01 : f32
    %462 = vector.broadcast %cst_119 : f32 to vector<8x128xf32>
    %463 = arith.addf %461, %462 : vector<8x128xf32>
    %464 = vector.extract_strided_slice %463 {offsets = [0, 0], sizes = [8, 32], strides = [1, 1]} : vector<8x128xf32> to vector<8x32xf32>
    %465 = vector.extract_strided_slice %463 {offsets = [0, 32], sizes = [8, 32], strides = [1, 1]} : vector<8x128xf32> to vector<8x32xf32>
    %466 = vector.extract_strided_slice %463 {offsets = [0, 96], sizes = [8, 32], strides = [1, 1]} : vector<8x128xf32> to vector<8x32xf32>
    %467 = vector.extract_strided_slice %459 {offsets = [0, 64], sizes = [8, 32], strides = [1, 1]} : vector<8x128xf32> to vector<8x32xf32>
    %468 = arith.mulf %465, %455 : vector<8x32xf32>
    %469 = arith.mulf %464, %467 : vector<8x32xf32>
    %470 = arith.addf %468, %469 : vector<8x32xf32>
    %471 = math.tanh %470 : vector<8x32xf32>
    %472 = arith.mulf %466, %471 : vector<8x32xf32>
    %473 = vector.extract_strided_slice %453 {offsets = [8, 0], sizes = [8, 128], strides = [1, 1]} : vector<64x128xf32> to vector<8x128xf32>
    %cst_120 = arith.constant dense<0.000000e+00> : vector<8x128xf32>
    %474 = tpu.matmul %472, %448, %cst_120 {dimension_numbers = #tpu.dot_dimension_numbers<[1], [0], [0], [1], [0, 0, 1, 1], [], []>} : vector<8x32xf32>, vector<32x128xf32>, vector<8x128xf32> -> vector<8x128xf32>
    %475 = arith.addf %473, %474 : vector<8x128xf32>
    %476 = math.tanh %475 : vector<8x128xf32>
    %cst_121 = arith.constant 5.000000e-01 : f32
    %477 = vector.broadcast %cst_121 : f32 to vector<8x128xf32>
    %478 = arith.mulf %477, %476 : vector<8x128xf32>
    %cst_122 = arith.constant 5.000000e-01 : f32
    %479 = vector.broadcast %cst_122 : f32 to vector<8x128xf32>
    %480 = arith.addf %478, %479 : vector<8x128xf32>
    %481 = vector.extract_strided_slice %480 {offsets = [0, 0], sizes = [8, 32], strides = [1, 1]} : vector<8x128xf32> to vector<8x32xf32>
    %482 = vector.extract_strided_slice %480 {offsets = [0, 32], sizes = [8, 32], strides = [1, 1]} : vector<8x128xf32> to vector<8x32xf32>
    %483 = vector.extract_strided_slice %480 {offsets = [0, 96], sizes = [8, 32], strides = [1, 1]} : vector<8x128xf32> to vector<8x32xf32>
    %484 = vector.extract_strided_slice %476 {offsets = [0, 64], sizes = [8, 32], strides = [1, 1]} : vector<8x128xf32> to vector<8x32xf32>
    %485 = arith.mulf %482, %470 : vector<8x32xf32>
    %486 = arith.mulf %481, %484 : vector<8x32xf32>
    %487 = arith.addf %485, %486 : vector<8x32xf32>
    %488 = math.tanh %487 : vector<8x32xf32>
    %489 = arith.mulf %483, %488 : vector<8x32xf32>
    %490 = vector.extract_strided_slice %453 {offsets = [16, 0], sizes = [8, 128], strides = [1, 1]} : vector<64x128xf32> to vector<8x128xf32>
    %cst_123 = arith.constant dense<0.000000e+00> : vector<8x128xf32>
    %491 = tpu.matmul %489, %448, %cst_123 {dimension_numbers = #tpu.dot_dimension_numbers<[1], [0], [0], [1], [0, 0, 1, 1], [], []>} : vector<8x32xf32>, vector<32x128xf32>, vector<8x128xf32> -> vector<8x128xf32>
    %492 = arith.addf %490, %491 : vector<8x128xf32>
    %493 = math.tanh %492 : vector<8x128xf32>
    %cst_124 = arith.constant 5.000000e-01 : f32
    %494 = vector.broadcast %cst_124 : f32 to vector<8x128xf32>
    %495 = arith.mulf %494, %493 : vector<8x128xf32>
    %cst_125 = arith.constant 5.000000e-01 : f32
    %496 = vector.broadcast %cst_125 : f32 to vector<8x128xf32>
    %497 = arith.addf %495, %496 : vector<8x128xf32>
    %498 = vector.extract_strided_slice %497 {offsets = [0, 0], sizes = [8, 32], strides = [1, 1]} : vector<8x128xf32> to vector<8x32xf32>
    %499 = vector.extract_strided_slice %497 {offsets = [0, 32], sizes = [8, 32], strides = [1, 1]} : vector<8x128xf32> to vector<8x32xf32>
    %500 = vector.extract_strided_slice %497 {offsets = [0, 96], sizes = [8, 32], strides = [1, 1]} : vector<8x128xf32> to vector<8x32xf32>
    %501 = vector.extract_strided_slice %493 {offsets = [0, 64], sizes = [8, 32], strides = [1, 1]} : vector<8x128xf32> to vector<8x32xf32>
    %502 = arith.mulf %499, %487 : vector<8x32xf32>
    %503 = arith.mulf %498, %501 : vector<8x32xf32>
    %504 = arith.addf %502, %503 : vector<8x32xf32>
    %505 = math.tanh %504 : vector<8x32xf32>
    %506 = arith.mulf %500, %505 : vector<8x32xf32>
    %507 = vector.extract_strided_slice %453 {offsets = [24, 0], sizes = [8, 128], strides = [1, 1]} : vector<64x128xf32> to vector<8x128xf32>
    %cst_126 = arith.constant dense<0.000000e+00> : vector<8x128xf32>
    %508 = tpu.matmul %506, %448, %cst_126 {dimension_numbers = #tpu.dot_dimension_numbers<[1], [0], [0], [1], [0, 0, 1, 1], [], []>} : vector<8x32xf32>, vector<32x128xf32>, vector<8x128xf32> -> vector<8x128xf32>
    %509 = arith.addf %507, %508 : vector<8x128xf32>
    %510 = math.tanh %509 : vector<8x128xf32>
    %cst_127 = arith.constant 5.000000e-01 : f32
    %511 = vector.broadcast %cst_127 : f32 to vector<8x128xf32>
    %512 = arith.mulf %511, %510 : vector<8x128xf32>
    %cst_128 = arith.constant 5.000000e-01 : f32
    %513 = vector.broadcast %cst_128 : f32 to vector<8x128xf32>
    %514 = arith.addf %512, %513 : vector<8x128xf32>
    %515 = vector.extract_strided_slice %514 {offsets = [0, 0], sizes = [8, 32], strides = [1, 1]} : vector<8x128xf32> to vector<8x32xf32>
    %516 = vector.extract_strided_slice %514 {offsets = [0, 32], sizes = [8, 32], strides = [1, 1]} : vector<8x128xf32> to vector<8x32xf32>
    %517 = vector.extract_strided_slice %514 {offsets = [0, 96], sizes = [8, 32], strides = [1, 1]} : vector<8x128xf32> to vector<8x32xf32>
    %518 = vector.extract_strided_slice %510 {offsets = [0, 64], sizes = [8, 32], strides = [1, 1]} : vector<8x128xf32> to vector<8x32xf32>
    %519 = arith.mulf %516, %504 : vector<8x32xf32>
    %520 = arith.mulf %515, %518 : vector<8x32xf32>
    %521 = arith.addf %519, %520 : vector<8x32xf32>
    %522 = math.tanh %521 : vector<8x32xf32>
    %523 = arith.mulf %517, %522 : vector<8x32xf32>
    %524 = vector.extract_strided_slice %453 {offsets = [32, 0], sizes = [8, 128], strides = [1, 1]} : vector<64x128xf32> to vector<8x128xf32>
    %cst_129 = arith.constant dense<0.000000e+00> : vector<8x128xf32>
    %525 = tpu.matmul %523, %448, %cst_129 {dimension_numbers = #tpu.dot_dimension_numbers<[1], [0], [0], [1], [0, 0, 1, 1], [], []>} : vector<8x32xf32>, vector<32x128xf32>, vector<8x128xf32> -> vector<8x128xf32>
    %526 = arith.addf %524, %525 : vector<8x128xf32>
    %527 = math.tanh %526 : vector<8x128xf32>
    %cst_130 = arith.constant 5.000000e-01 : f32
    %528 = vector.broadcast %cst_130 : f32 to vector<8x128xf32>
    %529 = arith.mulf %528, %527 : vector<8x128xf32>
    %cst_131 = arith.constant 5.000000e-01 : f32
    %530 = vector.broadcast %cst_131 : f32 to vector<8x128xf32>
    %531 = arith.addf %529, %530 : vector<8x128xf32>
    %532 = vector.extract_strided_slice %531 {offsets = [0, 0], sizes = [8, 32], strides = [1, 1]} : vector<8x128xf32> to vector<8x32xf32>
    %533 = vector.extract_strided_slice %531 {offsets = [0, 32], sizes = [8, 32], strides = [1, 1]} : vector<8x128xf32> to vector<8x32xf32>
    %534 = vector.extract_strided_slice %531 {offsets = [0, 96], sizes = [8, 32], strides = [1, 1]} : vector<8x128xf32> to vector<8x32xf32>
    %535 = vector.extract_strided_slice %527 {offsets = [0, 64], sizes = [8, 32], strides = [1, 1]} : vector<8x128xf32> to vector<8x32xf32>
    %536 = arith.mulf %533, %521 : vector<8x32xf32>
    %537 = arith.mulf %532, %535 : vector<8x32xf32>
    %538 = arith.addf %536, %537 : vector<8x32xf32>
    %539 = math.tanh %538 : vector<8x32xf32>
    %540 = arith.mulf %534, %539 : vector<8x32xf32>
    %541 = vector.extract_strided_slice %453 {offsets = [40, 0], sizes = [8, 128], strides = [1, 1]} : vector<64x128xf32> to vector<8x128xf32>
    %cst_132 = arith.constant dense<0.000000e+00> : vector<8x128xf32>
    %542 = tpu.matmul %540, %448, %cst_132 {dimension_numbers = #tpu.dot_dimension_numbers<[1], [0], [0], [1], [0, 0, 1, 1], [], []>} : vector<8x32xf32>, vector<32x128xf32>, vector<8x128xf32> -> vector<8x128xf32>
    %543 = arith.addf %541, %542 : vector<8x128xf32>
    %544 = math.tanh %543 : vector<8x128xf32>
    %cst_133 = arith.constant 5.000000e-01 : f32
    %545 = vector.broadcast %cst_133 : f32 to vector<8x128xf32>
    %546 = arith.mulf %545, %544 : vector<8x128xf32>
    %cst_134 = arith.constant 5.000000e-01 : f32
    %547 = vector.broadcast %cst_134 : f32 to vector<8x128xf32>
    %548 = arith.addf %546, %547 : vector<8x128xf32>
    %549 = vector.extract_strided_slice %548 {offsets = [0, 0], sizes = [8, 32], strides = [1, 1]} : vector<8x128xf32> to vector<8x32xf32>
    %550 = vector.extract_strided_slice %548 {offsets = [0, 32], sizes = [8, 32], strides = [1, 1]} : vector<8x128xf32> to vector<8x32xf32>
    %551 = vector.extract_strided_slice %548 {offsets = [0, 96], sizes = [8, 32], strides = [1, 1]} : vector<8x128xf32> to vector<8x32xf32>
    %552 = vector.extract_strided_slice %544 {offsets = [0, 64], sizes = [8, 32], strides = [1, 1]} : vector<8x128xf32> to vector<8x32xf32>
    %553 = arith.mulf %550, %538 : vector<8x32xf32>
    %554 = arith.mulf %549, %552 : vector<8x32xf32>
    %555 = arith.addf %553, %554 : vector<8x32xf32>
    %556 = math.tanh %555 : vector<8x32xf32>
    %557 = arith.mulf %551, %556 : vector<8x32xf32>
    %558 = vector.extract_strided_slice %453 {offsets = [48, 0], sizes = [8, 128], strides = [1, 1]} : vector<64x128xf32> to vector<8x128xf32>
    %cst_135 = arith.constant dense<0.000000e+00> : vector<8x128xf32>
    %559 = tpu.matmul %557, %448, %cst_135 {dimension_numbers = #tpu.dot_dimension_numbers<[1], [0], [0], [1], [0, 0, 1, 1], [], []>} : vector<8x32xf32>, vector<32x128xf32>, vector<8x128xf32> -> vector<8x128xf32>
    %560 = arith.addf %558, %559 : vector<8x128xf32>
    %561 = math.tanh %560 : vector<8x128xf32>
    %cst_136 = arith.constant 5.000000e-01 : f32
    %562 = vector.broadcast %cst_136 : f32 to vector<8x128xf32>
    %563 = arith.mulf %562, %561 : vector<8x128xf32>
    %cst_137 = arith.constant 5.000000e-01 : f32
    %564 = vector.broadcast %cst_137 : f32 to vector<8x128xf32>
    %565 = arith.addf %563, %564 : vector<8x128xf32>
    %566 = vector.extract_strided_slice %565 {offsets = [0, 0], sizes = [8, 32], strides = [1, 1]} : vector<8x128xf32> to vector<8x32xf32>
    %567 = vector.extract_strided_slice %565 {offsets = [0, 32], sizes = [8, 32], strides = [1, 1]} : vector<8x128xf32> to vector<8x32xf32>
    %568 = vector.extract_strided_slice %565 {offsets = [0, 96], sizes = [8, 32], strides = [1, 1]} : vector<8x128xf32> to vector<8x32xf32>
    %569 = vector.extract_strided_slice %561 {offsets = [0, 64], sizes = [8, 32], strides = [1, 1]} : vector<8x128xf32> to vector<8x32xf32>
    %570 = arith.mulf %567, %555 : vector<8x32xf32>
    %571 = arith.mulf %566, %569 : vector<8x32xf32>
    %572 = arith.addf %570, %571 : vector<8x32xf32>
    %573 = math.tanh %572 : vector<8x32xf32>
    %574 = arith.mulf %568, %573 : vector<8x32xf32>
    %575 = vector.extract_strided_slice %453 {offsets = [56, 0], sizes = [8, 128], strides = [1, 1]} : vector<64x128xf32> to vector<8x128xf32>
    %cst_138 = arith.constant dense<0.000000e+00> : vector<8x128xf32>
    %576 = tpu.matmul %574, %448, %cst_138 {dimension_numbers = #tpu.dot_dimension_numbers<[1], [0], [0], [1], [0, 0, 1, 1], [], []>} : vector<8x32xf32>, vector<32x128xf32>, vector<8x128xf32> -> vector<8x128xf32>
    %577 = arith.addf %575, %576 : vector<8x128xf32>
    %578 = math.tanh %577 : vector<8x128xf32>
    %cst_139 = arith.constant 5.000000e-01 : f32
    %579 = vector.broadcast %cst_139 : f32 to vector<8x128xf32>
    %580 = arith.mulf %579, %578 : vector<8x128xf32>
    %cst_140 = arith.constant 5.000000e-01 : f32
    %581 = vector.broadcast %cst_140 : f32 to vector<8x128xf32>
    %582 = arith.addf %580, %581 : vector<8x128xf32>
    %583 = vector.extract_strided_slice %582 {offsets = [0, 0], sizes = [8, 32], strides = [1, 1]} : vector<8x128xf32> to vector<8x32xf32>
    %584 = vector.extract_strided_slice %582 {offsets = [0, 32], sizes = [8, 32], strides = [1, 1]} : vector<8x128xf32> to vector<8x32xf32>
    %585 = vector.extract_strided_slice %582 {offsets = [0, 96], sizes = [8, 32], strides = [1, 1]} : vector<8x128xf32> to vector<8x32xf32>
    %586 = vector.extract_strided_slice %578 {offsets = [0, 64], sizes = [8, 32], strides = [1, 1]} : vector<8x128xf32> to vector<8x32xf32>
    %587 = arith.mulf %584, %572 : vector<8x32xf32>
    %588 = arith.mulf %583, %586 : vector<8x32xf32>
    %589 = arith.addf %587, %588 : vector<8x32xf32>
    %590 = math.tanh %589 : vector<8x32xf32>
    %591 = arith.mulf %585, %590 : vector<8x32xf32>
    %592 = tpu.concatenate %472, %489, %506, %523, %540, %557, %574, %591 in 0 : vector<8x32xf32>, vector<8x32xf32>, vector<8x32xf32>, vector<8x32xf32>, vector<8x32xf32>, vector<8x32xf32>, vector<8x32xf32>, vector<8x32xf32> -> vector<64x32xf32>
    %c4 = arith.constant 4 : index
    %c0_141 = arith.constant 0 : index
    %c0_142 = arith.constant 0 : index
    %593 = vector.load %arg1[%c4, %c0_141, %c0_142] : memref<5x32x128xf32, #tpu.memory_space<vmem>>, vector<1x32x128xf32>
    %594 = vector.shape_cast %593 : vector<1x32x128xf32> to vector<32x128xf32>
    %c4_143 = arith.constant 4 : index
    %c0_144 = arith.constant 0 : index
    %c0_145 = arith.constant 0 : index
    %595 = vector.load %arg2[%c4_143, %c0_144, %c0_145] : memref<5x32x128xf32, #tpu.memory_space<vmem>>, vector<1x32x128xf32>
    %596 = vector.shape_cast %595 : vector<1x32x128xf32> to vector<32x128xf32>
    %c4_146 = arith.constant 4 : index
    %c0_147 = arith.constant 0 : index
    %c0_148 = arith.constant 0 : index
    %597 = vector.load %arg3[%c4_146, %c0_147, %c0_148] : memref<5x1x128xf32, #tpu.memory_space<vmem>>, vector<1x1x128xf32>
    %598 = vector.shape_cast %597 : vector<1x1x128xf32> to vector<1x128xf32>
    %cst_149 = arith.constant dense<0.000000e+00> : vector<64x128xf32>
    %599 = tpu.matmul %592, %594, %cst_149 {dimension_numbers = #tpu.dot_dimension_numbers<[1], [0], [0], [1], [0, 0, 1, 1], [], []>} : vector<64x32xf32>, vector<32x128xf32>, vector<64x128xf32> -> vector<64x128xf32>
    %600 = vector.broadcast %598 : vector<1x128xf32> to vector<64x128xf32>
    %601 = arith.addf %599, %600 : vector<64x128xf32>
    %cst_150 = arith.constant 0.000000e+00 : f32
    %602 = vector.broadcast %cst_150 : f32 to vector<8x32xf32>
    %cst_151 = arith.constant 0.000000e+00 : f32
    %603 = vector.broadcast %cst_151 : f32 to vector<8x32xf32>
    %604 = vector.extract_strided_slice %601 {offsets = [0, 0], sizes = [8, 128], strides = [1, 1]} : vector<64x128xf32> to vector<8x128xf32>
    %cst_152 = arith.constant dense<0.000000e+00> : vector<8x128xf32>
    %605 = tpu.matmul %602, %596, %cst_152 {dimension_numbers = #tpu.dot_dimension_numbers<[1], [0], [0], [1], [0, 0, 1, 1], [], []>} : vector<8x32xf32>, vector<32x128xf32>, vector<8x128xf32> -> vector<8x128xf32>
    %606 = arith.addf %604, %605 : vector<8x128xf32>
    %607 = math.tanh %606 : vector<8x128xf32>
    %cst_153 = arith.constant 5.000000e-01 : f32
    %608 = vector.broadcast %cst_153 : f32 to vector<8x128xf32>
    %609 = arith.mulf %608, %607 : vector<8x128xf32>
    %cst_154 = arith.constant 5.000000e-01 : f32
    %610 = vector.broadcast %cst_154 : f32 to vector<8x128xf32>
    %611 = arith.addf %609, %610 : vector<8x128xf32>
    %612 = vector.extract_strided_slice %611 {offsets = [0, 0], sizes = [8, 32], strides = [1, 1]} : vector<8x128xf32> to vector<8x32xf32>
    %613 = vector.extract_strided_slice %611 {offsets = [0, 32], sizes = [8, 32], strides = [1, 1]} : vector<8x128xf32> to vector<8x32xf32>
    %614 = vector.extract_strided_slice %611 {offsets = [0, 96], sizes = [8, 32], strides = [1, 1]} : vector<8x128xf32> to vector<8x32xf32>
    %615 = vector.extract_strided_slice %607 {offsets = [0, 64], sizes = [8, 32], strides = [1, 1]} : vector<8x128xf32> to vector<8x32xf32>
    %616 = arith.mulf %613, %603 : vector<8x32xf32>
    %617 = arith.mulf %612, %615 : vector<8x32xf32>
    %618 = arith.addf %616, %617 : vector<8x32xf32>
    %619 = math.tanh %618 : vector<8x32xf32>
    %620 = arith.mulf %614, %619 : vector<8x32xf32>
    %621 = vector.extract_strided_slice %601 {offsets = [8, 0], sizes = [8, 128], strides = [1, 1]} : vector<64x128xf32> to vector<8x128xf32>
    %cst_155 = arith.constant dense<0.000000e+00> : vector<8x128xf32>
    %622 = tpu.matmul %620, %596, %cst_155 {dimension_numbers = #tpu.dot_dimension_numbers<[1], [0], [0], [1], [0, 0, 1, 1], [], []>} : vector<8x32xf32>, vector<32x128xf32>, vector<8x128xf32> -> vector<8x128xf32>
    %623 = arith.addf %621, %622 : vector<8x128xf32>
    %624 = math.tanh %623 : vector<8x128xf32>
    %cst_156 = arith.constant 5.000000e-01 : f32
    %625 = vector.broadcast %cst_156 : f32 to vector<8x128xf32>
    %626 = arith.mulf %625, %624 : vector<8x128xf32>
    %cst_157 = arith.constant 5.000000e-01 : f32
    %627 = vector.broadcast %cst_157 : f32 to vector<8x128xf32>
    %628 = arith.addf %626, %627 : vector<8x128xf32>
    %629 = vector.extract_strided_slice %628 {offsets = [0, 0], sizes = [8, 32], strides = [1, 1]} : vector<8x128xf32> to vector<8x32xf32>
    %630 = vector.extract_strided_slice %628 {offsets = [0, 32], sizes = [8, 32], strides = [1, 1]} : vector<8x128xf32> to vector<8x32xf32>
    %631 = vector.extract_strided_slice %628 {offsets = [0, 96], sizes = [8, 32], strides = [1, 1]} : vector<8x128xf32> to vector<8x32xf32>
    %632 = vector.extract_strided_slice %624 {offsets = [0, 64], sizes = [8, 32], strides = [1, 1]} : vector<8x128xf32> to vector<8x32xf32>
    %633 = arith.mulf %630, %618 : vector<8x32xf32>
    %634 = arith.mulf %629, %632 : vector<8x32xf32>
    %635 = arith.addf %633, %634 : vector<8x32xf32>
    %636 = math.tanh %635 : vector<8x32xf32>
    %637 = arith.mulf %631, %636 : vector<8x32xf32>
    %638 = vector.extract_strided_slice %601 {offsets = [16, 0], sizes = [8, 128], strides = [1, 1]} : vector<64x128xf32> to vector<8x128xf32>
    %cst_158 = arith.constant dense<0.000000e+00> : vector<8x128xf32>
    %639 = tpu.matmul %637, %596, %cst_158 {dimension_numbers = #tpu.dot_dimension_numbers<[1], [0], [0], [1], [0, 0, 1, 1], [], []>} : vector<8x32xf32>, vector<32x128xf32>, vector<8x128xf32> -> vector<8x128xf32>
    %640 = arith.addf %638, %639 : vector<8x128xf32>
    %641 = math.tanh %640 : vector<8x128xf32>
    %cst_159 = arith.constant 5.000000e-01 : f32
    %642 = vector.broadcast %cst_159 : f32 to vector<8x128xf32>
    %643 = arith.mulf %642, %641 : vector<8x128xf32>
    %cst_160 = arith.constant 5.000000e-01 : f32
    %644 = vector.broadcast %cst_160 : f32 to vector<8x128xf32>
    %645 = arith.addf %643, %644 : vector<8x128xf32>
    %646 = vector.extract_strided_slice %645 {offsets = [0, 0], sizes = [8, 32], strides = [1, 1]} : vector<8x128xf32> to vector<8x32xf32>
    %647 = vector.extract_strided_slice %645 {offsets = [0, 32], sizes = [8, 32], strides = [1, 1]} : vector<8x128xf32> to vector<8x32xf32>
    %648 = vector.extract_strided_slice %645 {offsets = [0, 96], sizes = [8, 32], strides = [1, 1]} : vector<8x128xf32> to vector<8x32xf32>
    %649 = vector.extract_strided_slice %641 {offsets = [0, 64], sizes = [8, 32], strides = [1, 1]} : vector<8x128xf32> to vector<8x32xf32>
    %650 = arith.mulf %647, %635 : vector<8x32xf32>
    %651 = arith.mulf %646, %649 : vector<8x32xf32>
    %652 = arith.addf %650, %651 : vector<8x32xf32>
    %653 = math.tanh %652 : vector<8x32xf32>
    %654 = arith.mulf %648, %653 : vector<8x32xf32>
    %655 = vector.extract_strided_slice %601 {offsets = [24, 0], sizes = [8, 128], strides = [1, 1]} : vector<64x128xf32> to vector<8x128xf32>
    %cst_161 = arith.constant dense<0.000000e+00> : vector<8x128xf32>
    %656 = tpu.matmul %654, %596, %cst_161 {dimension_numbers = #tpu.dot_dimension_numbers<[1], [0], [0], [1], [0, 0, 1, 1], [], []>} : vector<8x32xf32>, vector<32x128xf32>, vector<8x128xf32> -> vector<8x128xf32>
    %657 = arith.addf %655, %656 : vector<8x128xf32>
    %658 = math.tanh %657 : vector<8x128xf32>
    %cst_162 = arith.constant 5.000000e-01 : f32
    %659 = vector.broadcast %cst_162 : f32 to vector<8x128xf32>
    %660 = arith.mulf %659, %658 : vector<8x128xf32>
    %cst_163 = arith.constant 5.000000e-01 : f32
    %661 = vector.broadcast %cst_163 : f32 to vector<8x128xf32>
    %662 = arith.addf %660, %661 : vector<8x128xf32>
    %663 = vector.extract_strided_slice %662 {offsets = [0, 0], sizes = [8, 32], strides = [1, 1]} : vector<8x128xf32> to vector<8x32xf32>
    %664 = vector.extract_strided_slice %662 {offsets = [0, 32], sizes = [8, 32], strides = [1, 1]} : vector<8x128xf32> to vector<8x32xf32>
    %665 = vector.extract_strided_slice %662 {offsets = [0, 96], sizes = [8, 32], strides = [1, 1]} : vector<8x128xf32> to vector<8x32xf32>
    %666 = vector.extract_strided_slice %658 {offsets = [0, 64], sizes = [8, 32], strides = [1, 1]} : vector<8x128xf32> to vector<8x32xf32>
    %667 = arith.mulf %664, %652 : vector<8x32xf32>
    %668 = arith.mulf %663, %666 : vector<8x32xf32>
    %669 = arith.addf %667, %668 : vector<8x32xf32>
    %670 = math.tanh %669 : vector<8x32xf32>
    %671 = arith.mulf %665, %670 : vector<8x32xf32>
    %672 = vector.extract_strided_slice %601 {offsets = [32, 0], sizes = [8, 128], strides = [1, 1]} : vector<64x128xf32> to vector<8x128xf32>
    %cst_164 = arith.constant dense<0.000000e+00> : vector<8x128xf32>
    %673 = tpu.matmul %671, %596, %cst_164 {dimension_numbers = #tpu.dot_dimension_numbers<[1], [0], [0], [1], [0, 0, 1, 1], [], []>} : vector<8x32xf32>, vector<32x128xf32>, vector<8x128xf32> -> vector<8x128xf32>
    %674 = arith.addf %672, %673 : vector<8x128xf32>
    %675 = math.tanh %674 : vector<8x128xf32>
    %cst_165 = arith.constant 5.000000e-01 : f32
    %676 = vector.broadcast %cst_165 : f32 to vector<8x128xf32>
    %677 = arith.mulf %676, %675 : vector<8x128xf32>
    %cst_166 = arith.constant 5.000000e-01 : f32
    %678 = vector.broadcast %cst_166 : f32 to vector<8x128xf32>
    %679 = arith.addf %677, %678 : vector<8x128xf32>
    %680 = vector.extract_strided_slice %679 {offsets = [0, 0], sizes = [8, 32], strides = [1, 1]} : vector<8x128xf32> to vector<8x32xf32>
    %681 = vector.extract_strided_slice %679 {offsets = [0, 32], sizes = [8, 32], strides = [1, 1]} : vector<8x128xf32> to vector<8x32xf32>
    %682 = vector.extract_strided_slice %679 {offsets = [0, 96], sizes = [8, 32], strides = [1, 1]} : vector<8x128xf32> to vector<8x32xf32>
    %683 = vector.extract_strided_slice %675 {offsets = [0, 64], sizes = [8, 32], strides = [1, 1]} : vector<8x128xf32> to vector<8x32xf32>
    %684 = arith.mulf %681, %669 : vector<8x32xf32>
    %685 = arith.mulf %680, %683 : vector<8x32xf32>
    %686 = arith.addf %684, %685 : vector<8x32xf32>
    %687 = math.tanh %686 : vector<8x32xf32>
    %688 = arith.mulf %682, %687 : vector<8x32xf32>
    %689 = vector.extract_strided_slice %601 {offsets = [40, 0], sizes = [8, 128], strides = [1, 1]} : vector<64x128xf32> to vector<8x128xf32>
    %cst_167 = arith.constant dense<0.000000e+00> : vector<8x128xf32>
    %690 = tpu.matmul %688, %596, %cst_167 {dimension_numbers = #tpu.dot_dimension_numbers<[1], [0], [0], [1], [0, 0, 1, 1], [], []>} : vector<8x32xf32>, vector<32x128xf32>, vector<8x128xf32> -> vector<8x128xf32>
    %691 = arith.addf %689, %690 : vector<8x128xf32>
    %692 = math.tanh %691 : vector<8x128xf32>
    %cst_168 = arith.constant 5.000000e-01 : f32
    %693 = vector.broadcast %cst_168 : f32 to vector<8x128xf32>
    %694 = arith.mulf %693, %692 : vector<8x128xf32>
    %cst_169 = arith.constant 5.000000e-01 : f32
    %695 = vector.broadcast %cst_169 : f32 to vector<8x128xf32>
    %696 = arith.addf %694, %695 : vector<8x128xf32>
    %697 = vector.extract_strided_slice %696 {offsets = [0, 0], sizes = [8, 32], strides = [1, 1]} : vector<8x128xf32> to vector<8x32xf32>
    %698 = vector.extract_strided_slice %696 {offsets = [0, 32], sizes = [8, 32], strides = [1, 1]} : vector<8x128xf32> to vector<8x32xf32>
    %699 = vector.extract_strided_slice %696 {offsets = [0, 96], sizes = [8, 32], strides = [1, 1]} : vector<8x128xf32> to vector<8x32xf32>
    %700 = vector.extract_strided_slice %692 {offsets = [0, 64], sizes = [8, 32], strides = [1, 1]} : vector<8x128xf32> to vector<8x32xf32>
    %701 = arith.mulf %698, %686 : vector<8x32xf32>
    %702 = arith.mulf %697, %700 : vector<8x32xf32>
    %703 = arith.addf %701, %702 : vector<8x32xf32>
    %704 = math.tanh %703 : vector<8x32xf32>
    %705 = arith.mulf %699, %704 : vector<8x32xf32>
    %706 = vector.extract_strided_slice %601 {offsets = [48, 0], sizes = [8, 128], strides = [1, 1]} : vector<64x128xf32> to vector<8x128xf32>
    %cst_170 = arith.constant dense<0.000000e+00> : vector<8x128xf32>
    %707 = tpu.matmul %705, %596, %cst_170 {dimension_numbers = #tpu.dot_dimension_numbers<[1], [0], [0], [1], [0, 0, 1, 1], [], []>} : vector<8x32xf32>, vector<32x128xf32>, vector<8x128xf32> -> vector<8x128xf32>
    %708 = arith.addf %706, %707 : vector<8x128xf32>
    %709 = math.tanh %708 : vector<8x128xf32>
    %cst_171 = arith.constant 5.000000e-01 : f32
    %710 = vector.broadcast %cst_171 : f32 to vector<8x128xf32>
    %711 = arith.mulf %710, %709 : vector<8x128xf32>
    %cst_172 = arith.constant 5.000000e-01 : f32
    %712 = vector.broadcast %cst_172 : f32 to vector<8x128xf32>
    %713 = arith.addf %711, %712 : vector<8x128xf32>
    %714 = vector.extract_strided_slice %713 {offsets = [0, 0], sizes = [8, 32], strides = [1, 1]} : vector<8x128xf32> to vector<8x32xf32>
    %715 = vector.extract_strided_slice %713 {offsets = [0, 32], sizes = [8, 32], strides = [1, 1]} : vector<8x128xf32> to vector<8x32xf32>
    %716 = vector.extract_strided_slice %713 {offsets = [0, 96], sizes = [8, 32], strides = [1, 1]} : vector<8x128xf32> to vector<8x32xf32>
    %717 = vector.extract_strided_slice %709 {offsets = [0, 64], sizes = [8, 32], strides = [1, 1]} : vector<8x128xf32> to vector<8x32xf32>
    %718 = arith.mulf %715, %703 : vector<8x32xf32>
    %719 = arith.mulf %714, %717 : vector<8x32xf32>
    %720 = arith.addf %718, %719 : vector<8x32xf32>
    %721 = math.tanh %720 : vector<8x32xf32>
    %722 = arith.mulf %716, %721 : vector<8x32xf32>
    %723 = vector.extract_strided_slice %601 {offsets = [56, 0], sizes = [8, 128], strides = [1, 1]} : vector<64x128xf32> to vector<8x128xf32>
    %cst_173 = arith.constant dense<0.000000e+00> : vector<8x128xf32>
    %724 = tpu.matmul %722, %596, %cst_173 {dimension_numbers = #tpu.dot_dimension_numbers<[1], [0], [0], [1], [0, 0, 1, 1], [], []>} : vector<8x32xf32>, vector<32x128xf32>, vector<8x128xf32> -> vector<8x128xf32>
    %725 = arith.addf %723, %724 : vector<8x128xf32>
    %726 = math.tanh %725 : vector<8x128xf32>
    %cst_174 = arith.constant 5.000000e-01 : f32
    %727 = vector.broadcast %cst_174 : f32 to vector<8x128xf32>
    %728 = arith.mulf %727, %726 : vector<8x128xf32>
    %cst_175 = arith.constant 5.000000e-01 : f32
    %729 = vector.broadcast %cst_175 : f32 to vector<8x128xf32>
    %730 = arith.addf %728, %729 : vector<8x128xf32>
    %731 = vector.extract_strided_slice %730 {offsets = [0, 0], sizes = [8, 32], strides = [1, 1]} : vector<8x128xf32> to vector<8x32xf32>
    %732 = vector.extract_strided_slice %730 {offsets = [0, 32], sizes = [8, 32], strides = [1, 1]} : vector<8x128xf32> to vector<8x32xf32>
    %733 = vector.extract_strided_slice %730 {offsets = [0, 96], sizes = [8, 32], strides = [1, 1]} : vector<8x128xf32> to vector<8x32xf32>
    %734 = vector.extract_strided_slice %726 {offsets = [0, 64], sizes = [8, 32], strides = [1, 1]} : vector<8x128xf32> to vector<8x32xf32>
    %735 = arith.mulf %732, %720 : vector<8x32xf32>
    %736 = arith.mulf %731, %734 : vector<8x32xf32>
    %737 = arith.addf %735, %736 : vector<8x32xf32>
    %738 = math.tanh %737 : vector<8x32xf32>
    %739 = arith.mulf %733, %738 : vector<8x32xf32>
    %c0_176 = arith.constant 0 : index
    %c0_177 = arith.constant 0 : index
    %740 = vector.load %arg4[%c0_176, %c0_177] : memref<32x1xf32, #tpu.memory_space<vmem>>, vector<32x1xf32>
    %cst_178 = arith.constant dense<0.000000e+00> : vector<8x1xf32>
    %741 = tpu.matmul %739, %740, %cst_178 {dimension_numbers = #tpu.dot_dimension_numbers<[1], [0], [0], [1], [0, 0, 1, 1], [], []>} : vector<8x32xf32>, vector<32x1xf32>, vector<8x1xf32> -> vector<8x1xf32>
    %c0_179 = arith.constant 0 : index
    %c0_180 = arith.constant 0 : index
    %742 = vector.load %arg5[%c0_179, %c0_180] : memref<1x1xf32, #tpu.memory_space<vmem>>, vector<1x1xf32>
    %743 = vector.broadcast %742 : vector<1x1xf32> to vector<8x1xf32>
    %744 = arith.addf %741, %743 : vector<8x1xf32>
    %c0_181 = arith.constant 0 : index
    %c0_182 = arith.constant 0 : index
    %745 = vector.load %arg6[%c0_181, %c0_182] : memref<8x1xf32, #tpu.memory_space<vmem>>, vector<8x1xf32>
    tpu.vector_store %arg6[%c0_181, %c0_182], %744 {strides = array<i32>} : memref<8x1xf32, #tpu.memory_space<vmem>>, vector<8x1xf32>,
    return
  }
}

</mosaic_0001>

<bundles_post_ra>
// kernel: tpu_custom_call.1
= control target key start
LH: loop header
LB: loop body
LE: loop exit
PB: predicated region body
PF: predicated region fallthrough
CT: control target
= control target key end

     0   :  { %s6727_s0 = inlined_call_operand.vmem [shape: f32[64,32], index: 0, kind: input, shape index: {}]   ;;  %s6728_s1 = inlined_call_operand.hbm [shape: f32[5,32,128], index: 1, kind: input, shape index: {}]   ;;  %s6729_s2 = inlined_call_operand.hbm [shape: f32[5,32,128], index: 2, kind: input, shape index: {}]   ;;  %s6730_s3 = inlined_call_operand.vmem [shape: f32[5,1,128], index: 3, kind: input, shape index: {}]   ;;  %s6731_s4 = inlined_call_operand.vmem [shape: f32[32,1], index: 4, kind: input, shape index: {}]   ;;  %s6732_s5 = inlined_call_operand.<no memory space> [shape: f32[1,1], index: 5, kind: input, shape index: {}]   ;;  %s6733_s6 = inlined_call_operand.vmem [shape: f32[8,1], index: 6, kind: output, shape index: {}]  }
   0x1   :  { %v11_v0 = vstv %s6732_s5 }
   0x2   :  { %12 = vst [vmem:[#allocation2] sm:$0x1] %v11_v0 }
   0x3   :  { %13 = vsyncpa [#allocation4], 0 }
   0x4   :  { %14 = vsyncpa [#allocation6], 0  ;;  %s5744_s23 = smov [#allocation3]  }
   0x5   :  { %s22_s24 = sshll.u32 %s5744_s23, 4  ;;  %s23_s24 = int_to_ptr.vmem [resolvable:$true] %s22_s24 }
   0x6   :  { %s5708_s25 = scalar_lea.vmem %s23_s24, 2560  ;;  %p5713_p1 = scmp.lt.s32.totalorder %s23_s24, %s23_s24 }
   0x7   :  { %p5709_p0 = scmp.ne.s32.totalorder %s23_s24, %s5708_s25  ;;  %p5714_p2 = scmp.lt.s32.totalorder %s5708_s25, %s5708_s25 }
   0x9   :  { %p5715_p3 = por %p5714_p2, %p5713_p1 }
   0xb   :  { %p5716_p4 = pnand %p5715_p3, %p5709_p0 }
   0xd   :  { %5719 = shalt.err (!%p5716_p4)
}
   0xe   :  { %s5745_s26 = smov 128   ;;  %s5746_s27 = smov 8  }
   0xf   :  { %28 = dma.hbm_to_vmem [thread:$0]  %s6728_s1, 2560, %s23_s24, [#allocation4], %s5745_s26, %s5745_s26, %s5746_s27  }
  0x10   :  { %s5747_s5 = smov [#allocation5]  }
  0x11   :  { %s34_s30 = sshll.u32 %s5747_s5, 4  ;;  %s35_s30 = int_to_ptr.vmem [resolvable:$true] %s34_s30 }
  0x12   :  { %s5728_s7 = scalar_lea.vmem %s35_s30, 2560  ;;  %p5733_p6 = scmp.lt.s32.totalorder %s35_s30, %s35_s30 }
  0x13   :  { %p5729_p5 = scmp.ne.s32.totalorder %s35_s30, %s5728_s7  ;;  %p5734_p7 = scmp.lt.s32.totalorder %s5728_s7, %s5728_s7 }
  0x15   :  { %p5735_p8 = por %p5734_p7, %p5733_p6 }
  0x17   :  { %p5736_p9 = pnand %p5735_p8, %p5729_p5 }
  0x19   :  { %5739 = shalt.err (!%p5736_p9)
}
  0x1a   :  { %40 = dma.hbm_to_vmem [thread:$0]  %s6729_s2, 2560, %s35_s30, [#allocation6], %s5745_s26, %s5745_s26, %s5746_s27  }
  0x1b   :  { %5740 = dma.done.wait [#allocation4], 2560  }
  0x1c   :  { %5741 = vsyncadd [#allocation4], 4294964736 }
  0x1d   :  { %5742 = dma.done.wait [#allocation6], 2560  }
  0x1e   :  { %5743 = vsyncadd [#allocation6], 4294964736  ;;  %v5748_v1 = vmov 0.0   ;;  %vm5749_vm0 = vmmov 0   ;;  %v64_v2 = vld [vmem:[#allocation3 + $0x18] sm:$0xff]  ;;  %v63_v3 = vld [vmem:[#allocation3 + $0x10] sm:$0xff] }
  0x1f   :  { %5001 = vmatprep.subr.mxu1 %v5748_v1  ;;  %5009 = vmatprep.mubr.msk.f32.mxu1 %vm5749_vm0, %v5748_v1  ;;  %v5799_v4 = vld [vmem:[#allocation5 + $0x18] sm:$0xff]  ;;  %v5802_v5 = vld [vmem:[#allocation5 + $0x10] sm:$0xff]  ;;  %v62_v6 = vld [vmem:[#allocation3 + $0x8] sm:$0xff]  ;;  %vm76_vm1 = vcmask 261120   ;;  %s5750_s14 = smov 64   ;;  %s5751_s15 = smov 32  }
  0x20   :  { %4981 = vmatprep.subr.mxu0 %v64_v2  ;;  %5002 = vmatpush3.msra.mxu1 %v5799_v4  ;;  %v53_v7 = vld [vmem:[%s6727_s0] sm:$0xff]  ;;  %v5809_v8 = vld [vmem:[#allocation5 + $0x8] sm:$0xff]  ;;  %v56_v44 = vld [vmem:[%s6727_s0 + $0x18] sm:$0xff]  ;;  %vm4622_vm2 = vcmask 7168  }
  0x21   :  { %4982 = vmatpush3.msra.mxu0 %v64_v2  ;;  %5003 = vmatprep.subr.mxu1 %v5748_v1  ;;  %v61_v9 = vld [vmem:[#allocation3] sm:$0xff]  ;;  %v5846_v14 = vld [vmem:[%s6730_s3] ss:$0 sm:$0xff]  ;;  %v55_v43 = vld [vmem:[%s6727_s0 + $0x10] sm:$0xff] }
  0x22   :  { %4983 = vmatprep.subr.mxu0 %v63_v3  ;;  %5004 = vmatpush3.msra.mxu1 %v5802_v5  ;;  %v5813_v10 = vld [vmem:[#allocation5] sm:$0xff]  ;;  %v59_v47 = vld [vmem:[%s6727_s0 + $0x30] sm:$0xff]  ;;  %v60_v48 = vld [vmem:[%s6727_s0 + $0x38] sm:$0xff] }
  0x23   :  { %4984 = vmatpush3.msra.mxu0 %v63_v3  ;;  %5005 = vmatprep.subr.mxu1 %v5748_v1  ;;  %v54_v11 = vld [vmem:[%s6727_s0 + $0x8] sm:$0xff]  ;;  %v57_v45 = vld [vmem:[%s6727_s0 + $0x20] sm:$0xff] }
  0x24   :  { %4985 = vmatprep.subr.mxu0 %v62_v6  ;;  %4989 = vmatprep.mubr.msk.f32.mxu0 %vm76_vm1, %v53_v7  ;;  %v58_v46 = vld [vmem:[%s6727_s0 + $0x28] sm:$0xff] }
  0x25   :  { %4986 = vmatpush3.msra.mxu0 %v62_v6  ;;  %5006 = vmatpush3.msra.mxu1 %v5809_v8 }
  0x26   :  { %4987 = vmatprep.subr.mxu0 %v61_v9  ;;  %5007 = vmatprep.subr.mxu1 %v5748_v1 }
  0x27   :  { %4988 = vmatpush3.msra.mxu0 %v61_v9  ;;  %5008 = vmatpush3.msra.mxu1 %v5813_v10 }
  0x28   :  { %4990 = vmatmul.mubr.msk.f32.vlgmr.msra.gmra.mxu0 %vm76_vm1, %v54_v11  ;;  %5010 = vmatmul.mubr.f32.vlgmr.msra.gmra.mxu1 %v5748_v1 }
  0x29   :  { %5012 = vmatprep.subr.mxu1 %v5748_v1  ;;  %5020 = vmatprep.mubr.msk.f32.mxu1 %vm5749_vm0, %v5748_v1 }
  0x2a   :  { %5013 = vmatpush3.msra.mxu1 %v5799_v4  ;;  %5023 = vmatprep.subr.mxu0 %v5748_v1 }
  0x2b   :  { %5014 = vmatprep.subr.mxu1 %v5748_v1  ;;  %5024 = vmatpush3.msra.mxu0 %v5799_v4 }
  0x2c   :  { %5015 = vmatpush3.msra.mxu1 %v5802_v5  ;;  %5025 = vmatprep.subr.mxu0 %v5748_v1 }
  0x2d   :  { %5016 = vmatprep.subr.mxu1 %v5748_v1  ;;  %5026 = vmatpush3.msra.mxu0 %v5802_v5 }
  0x2e   :  { %5017 = vmatpush3.msra.mxu1 %v5809_v8  ;;  %5027 = vmatprep.subr.mxu0 %v5748_v1 }
  0x2f   :  { %5018 = vmatprep.subr.mxu1 %v5748_v1  ;;  %5028 = vmatpush3.msra.mxu0 %v5809_v8 }
  0x30   :  { %5019 = vmatpush3.msra.mxu1 %v5813_v10  ;;  %5029 = vmatprep.subr.mxu0 %v5748_v1 }
  0x31   :  { %5030 = vmatpush3.msra.mxu0 %v5813_v10  ;;  %5034 = vmatprep.subr.mxu1 %v5748_v1 }
  0x32   :  { %5045 = vmatprep.subr.mxu0 %v5748_v1  ;;  %4992 = vmatprep.mubr.msk.f32.mxu0 %vm76_vm1, %v55_v43 }
  0x33   :  { %4993 = vmatmul.mubr.msk.f32.gmra.mxu0 %vm76_vm1, %v56_v44 }
  0x34   :  { %4995 = vmatprep.mubr.msk.f32.mxu0 %vm76_vm1, %v57_v45 }
  0x37   :  { %4996 = vmatmul.mubr.msk.f32.gmra.mxu0 %vm76_vm1, %v58_v46 }
  0x38   :  { %4998 = vmatprep.mubr.msk.f32.mxu0 %vm76_vm1, %v59_v47 }
  0x3b   :  { %4999 = vmatmul.mubr.msk.f32.gmra.mxu0 %vm76_vm1, %v60_v48 }
  0x3c   :  { %5031 = vmatprep.mubr.msk.f32.mxu0 %vm5749_vm0, %v5748_v1 }
  0xe8   :  { %v4991_v12 = vpop.f32.mrf.mxu0  ;;  %v275_v13 = vpop.f32.mrf.mxu1 }
  0xe9   :  { %v173_v31 = vadd.f32 %v4991_v12, %v5846_v14 }
  0xea   :  { %v167_v15 = vpop.f32.mrf.mxu0  ;;  %v5011_v16 = vpop.f32.mrf.mxu1 }
  0xeb   :  { %v168_v17 = vadd.f32 %v5846_v14, %v167_v15 }
  0xed   :  { %v279_v18 = vadd.f32 %v275_v13, %v168_v17 }
  0xef   :  { %5540 = vtanh.f32 %v279_v18 }
  0xf3   :  { %v4994_v53 = vpop.f32.mrf.mxu0 }
  0xf4   :  { %v183_v17 = vadd.f32 %v4994_v53, %v5846_v14 }
  0xf5   :  { %v177_v54 = vpop.f32.mrf.mxu0 }
  0xf6   :  { %v178_v59 = vadd.f32 %v5846_v14, %v177_v54 }
  0xf7   :  { %v5912_v55 = vpop.f32.mrf.mxu0 }
  0xf9   :  { %v5914_v56 = vpop.f32.mrf.mxu0 }
  0xfb   :  { %v5916_v57 = vpop.f32.mrf.mxu0 }
  0xfc   :  { %v5541_v19 = vpop.eup %5540 }
  0xfd   :  { %285 = vrot.lane.b32.xlu0 %v5541_v19, %s5750_s14  ;;  %v281_v20 = vmul.f32 0.5, %v5541_v19  ;;  %v5918_v58 = vpop.f32.mrf.mxu0 }
  0xff   :  { %v282_v21 = vadd.f32 0.5, %v281_v20 }
 0x101   :  { %v283_v24 = vmul.f32 0.0, %v282_v21 }
 0x16f   :  { %v286_v22 = vpop.permute.xlu0 %285 }
 0x170   :  { %v288_v23 = vmul.f32 %v286_v22, %v282_v21 }
 0x172   :  { %290 = vrot.lane.b32.xlu0 %v288_v23, %s5751_s15 }
 0x1e4   :  { %v291_v25 = vpop.permute.xlu0 %290 }
 0x1e5   :  { %v293_v26 = vadd.f32 %v291_v25, %v283_v24 }
 0x1e7   :  { %5542 = vtanh.f32 %v293_v26 }
 0x1f4   :  { %v5543_v27 = vpop.eup %5542 }
 0x1f5   :  { %296 = vrot.lane.b32.xlu1 %v5543_v27, %s5750_s14 }
 0x267   :  { %v297_v28 = vpop.permute.xlu1 %296 }
 0x268   :  { %v299_v29 = vmul.f32 %v297_v28, %v282_v21 }
 0x26a   :  { %301 = vrot.lane.b32.xlu1 %v299_v29, %s5751_s15 }
 0x2dc   :  { %v5853_v30 = vpop.permute.xlu1 %301 }
 0x2dd   :  { %5021 = vmatmul.mubr.msk.f32.vlgmr.msra.gmra.mxu1 %vm76_vm1, %v5853_v30 }
 0x2de   :  { %5035 = vmatpush3.msra.mxu1 %v5799_v4  ;;  %5042 = vmatprep.mubr.msk.f32.mxu1 %vm5749_vm0, %v5748_v1 }
 0x2df   :  { %5036 = vmatprep.subr.mxu1 %v5748_v1 }
 0x2e0   :  { %5037 = vmatpush3.msra.mxu1 %v5802_v5 }
 0x2e1   :  { %5038 = vmatprep.subr.mxu1 %v5748_v1 }
 0x2e2   :  { %5039 = vmatpush3.msra.mxu1 %v5809_v8 }
 0x2e3   :  { %5040 = vmatprep.subr.mxu1 %v5748_v1 }
 0x2e4   :  { %5041 = vmatpush3.msra.mxu1 %v5813_v10 }
 0x2e5   :  { %5056 = vmatprep.subr.mxu1 %v5748_v1 }
 0x39d   :  { %v371_v32 = vpop.f32.mrf.mxu1 }
 0x39e   :  { %v375_v33 = vadd.f32 %v371_v32, %v173_v31 }
 0x39f   :  { %v5022_v34 = vpop.f32.mrf.mxu1 }
 0x3a0   :  { %5544 = vtanh.f32 %v375_v33  ;;  %v188_v34 = vadd.f32 %v5846_v14, %v5914_v56 }
 0x3ad   :  { %v5545_v35 = vpop.eup %5544 }
 0x3ae   :  { %381 = vrot.lane.b32.xlu0 %v5545_v35, %s5750_s14  ;;  %v377_v36 = vmul.f32 0.5, %v5545_v35 }
 0x3b0   :  { %v378_v37 = vadd.f32 0.5, %v377_v36 }
 0x3b2   :  { %v379_v40 = vmul.f32 %v378_v37, %v293_v26 }
 0x420   :  { %v382_v38 = vpop.permute.xlu0 %381 }
 0x421   :  { %v384_v39 = vmul.f32 %v382_v38, %v378_v37 }
 0x423   :  { %386 = vrot.lane.b32.xlu1 %v384_v39, %s5751_s15 }
 0x495   :  { %v387_v41 = vpop.permute.xlu1 %386 }
 0x496   :  { %v389_v42 = vadd.f32 %v387_v41, %v379_v40 }
 0x498   :  { %5546 = vtanh.f32 %v389_v42 }
 0x4a5   :  { %v5547_v49 = vpop.eup %5546 }
 0x4a6   :  { %392 = vrot.lane.b32.xlu0 %v5547_v49, %s5750_s14 }
 0x518   :  { %v393_v50 = vpop.permute.xlu0 %392 }
 0x519   :  { %v395_v51 = vmul.f32 %v393_v50, %v378_v37 }
 0x51b   :  { %397 = vrot.lane.b32.xlu1 %v395_v51, %s5751_s15 }
 0x58d   :  { %v5898_v52 = vpop.permute.xlu1 %397 }
 0x58e   :  { %5032 = vmatmul.mubr.msk.f32.vlgmr.msra.gmra.mxu0 %vm76_vm1, %v5898_v52 }
 0x58f   :  { %5046 = vmatpush3.msra.mxu0 %v5799_v4  ;;  %5053 = vmatprep.mubr.msk.f32.mxu0 %vm5749_vm0, %v5748_v1 }
 0x590   :  { %5047 = vmatprep.subr.mxu0 %v5748_v1 }
 0x591   :  { %5048 = vmatpush3.msra.mxu0 %v5802_v5 }
 0x592   :  { %5049 = vmatprep.subr.mxu0 %v5748_v1 }
 0x593   :  { %5050 = vmatpush3.msra.mxu0 %v5809_v8 }
 0x594   :  { %5051 = vmatprep.subr.mxu0 %v5748_v1 }
 0x595   :  { %5052 = vmatpush3.msra.mxu0 %v5813_v10 }
 0x596   :  { %5067 = vmatprep.subr.mxu0 %v5748_v1 }
 0x64e   :  { %v467_v60 = vpop.f32.mrf.mxu0 }
 0x64f   :  { %v471_v61 = vadd.f32 %v467_v60, %v178_v59 }
 0x650   :  { %v5033_v62 = vpop.f32.mrf.mxu0 }
 0x651   :  { %5548 = vtanh.f32 %v471_v61  ;;  %v976_v62 = vld [vmem:[#allocation3 + $0x38] sm:$0xff] }
 0x65e   :  { %v5549_v63 = vpop.eup %5548 }
 0x65f   :  { %477 = vrot.lane.b32.xlu0 %v5549_v63, %s5750_s14  ;;  %v473_v0 = vmul.f32 0.5, %v5549_v63 }
 0x661   :  { %v474_v2 = vadd.f32 0.5, %v473_v0 }
 0x663   :  { %v475_v7 = vmul.f32 %v474_v2, %v389_v42 }
 0x6d1   :  { %v478_v3 = vpop.permute.xlu0 %477 }
 0x6d2   :  { %v480_v6 = vmul.f32 %v478_v3, %v474_v2  ;;  %v975_v3 = vld [vmem:[#allocation3 + $0x30] sm:$0xff] }
 0x6d4   :  { %482 = vrot.lane.b32.xlu1 %v480_v6, %s5751_s15  ;;  %v974_v6 = vld [vmem:[#allocation3 + $0x28] sm:$0xff] }
 0x746   :  { %v483_v9 = vpop.permute.xlu1 %482 }
 0x747   :  { %v485_v11 = vadd.f32 %v483_v9, %v475_v7  ;;  %v973_v7 = vld [vmem:[#allocation3 + $0x20] sm:$0xff] }
 0x749   :  { %5550 = vtanh.f32 %v485_v11 }
 0x756   :  { %v5551_v12 = vpop.eup %5550 }
 0x757   :  { %488 = vrot.lane.b32.xlu0 %v5551_v12, %s5750_s14 }
 0x7c9   :  { %v489_v13 = vpop.permute.xlu0 %488 }
 0x7ca   :  { %v491_v15 = vmul.f32 %v489_v13, %v474_v2 }
 0x7cc   :  { %493 = vrot.lane.b32.xlu1 %v491_v15, %s5751_s15 }
 0x83e   :  { %v5925_v16 = vpop.permute.xlu1 %493 }
 0x83f   :  { %5043 = vmatmul.mubr.msk.f32.vlgmr.msra.gmra.mxu1 %vm76_vm1, %v5925_v16 }
 0x840   :  { %5057 = vmatpush3.msra.mxu1 %v5799_v4  ;;  %5064 = vmatprep.mubr.msk.f32.mxu1 %vm5749_vm0, %v5748_v1 }
 0x841   :  { %5058 = vmatprep.subr.mxu1 %v5748_v1 }
 0x842   :  { %5059 = vmatpush3.msra.mxu1 %v5802_v5 }
 0x843   :  { %5060 = vmatprep.subr.mxu1 %v5748_v1 }
 0x844   :  { %5061 = vmatpush3.msra.mxu1 %v5809_v8 }
 0x845   :  { %5062 = vmatprep.subr.mxu1 %v5748_v1 }
 0x846   :  { %5063 = vmatpush3.msra.mxu1 %v5813_v10 }
 0x847   :  { %5078 = vmatprep.subr.mxu1 %v5748_v1 }
 0x8ff   :  { %v563_v18 = vpop.f32.mrf.mxu1 }
 0x900   :  { %v567_v19 = vadd.f32 %v563_v18, %v183_v17 }
 0x901   :  { %v5044_v20 = vpop.f32.mrf.mxu1 }
 0x902   :  { %5552 = vtanh.f32 %v567_v19 }
 0x90f   :  { %v5553_v21 = vpop.eup %5552 }
 0x910   :  { %573 = vrot.lane.b32.xlu0 %v5553_v21, %s5750_s14  ;;  %v569_v22 = vmul.f32 0.5, %v5553_v21  ;;  %v6000_v21 = vld [vmem:[#allocation5 + $0x38] sm:$0xff] }
 0x912   :  { %v570_v23 = vadd.f32 0.5, %v569_v22  ;;  %v6003_v22 = vld [vmem:[#allocation5 + $0x30] sm:$0xff] }
 0x914   :  { %v571_v26 = vmul.f32 %v570_v23, %v485_v11 }
 0x982   :  { %v574_v24 = vpop.permute.xlu0 %573 }
 0x983   :  { %v576_v25 = vmul.f32 %v574_v24, %v570_v23  ;;  %v6011_v24 = vld [vmem:[#allocation5 + $0x20] sm:$0xff] }
 0x985   :  { %578 = vrot.lane.b32.xlu1 %v576_v25, %s5751_s15 }
 0x9f7   :  { %v579_v27 = vpop.permute.xlu1 %578 }
 0x9f8   :  { %v581_v28 = vadd.f32 %v579_v27, %v571_v26 }
 0x9fa   :  { %5554 = vtanh.f32 %v581_v28 }
 0xa07   :  { %v5555_v29 = vpop.eup %5554 }
 0xa08   :  { %584 = vrot.lane.b32.xlu0 %v5555_v29, %s5750_s14 }
 0xa7a   :  { %v585_v31 = vpop.permute.xlu0 %584 }
 0xa7b   :  { %v587_v32 = vmul.f32 %v585_v31, %v570_v23  ;;  %v6007_v23 = vld [vmem:[#allocation5 + $0x28] sm:$0xff] }
 0xa7d   :  { %589 = vrot.lane.b32.xlu1 %v587_v32, %s5751_s15 }
 0xaef   :  { %v5944_v33 = vpop.permute.xlu1 %589 }
 0xaf0   :  { %5054 = vmatmul.mubr.msk.f32.vlgmr.msra.gmra.mxu0 %vm76_vm1, %v5944_v33 }
 0xaf1   :  { %5068 = vmatpush3.msra.mxu0 %v5799_v4  ;;  %5075 = vmatprep.mubr.msk.f32.mxu0 %vm5749_vm0, %v5748_v1 }
 0xaf2   :  { %5069 = vmatprep.subr.mxu0 %v5748_v1 }
 0xaf3   :  { %5070 = vmatpush3.msra.mxu0 %v5802_v5 }
 0xaf4   :  { %5071 = vmatprep.subr.mxu0 %v5748_v1 }
 0xaf5   :  { %5072 = vmatpush3.msra.mxu0 %v5809_v8 }
 0xaf6   :  { %5073 = vmatprep.subr.mxu0 %v5748_v1 }
 0xaf7   :  { %5074 = vmatpush3.msra.mxu0 %v5813_v10 }
 0xaf8   :  { %5089 = vmatprep.subr.mxu0 %v976_v62 }
 0xbb0   :  { %v659_v35 = vpop.f32.mrf.mxu0 }
 0xbb1   :  { %v663_v36 = vadd.f32 %v659_v35, %v188_v34  ;;  %v6045_v35 = vld [vmem:[%s6730_s3 + $0x1] ss:$0 sm:$0xff] }
 0xbb2   :  { %v5055_v37 = vpop.f32.mrf.mxu0 }
 0xbb3   :  { %5556 = vtanh.f32 %v663_v36 }
 0xbc0   :  { %v5557_v38 = vpop.eup %5556 }
 0xbc1   :  { %669 = vrot.lane.b32.xlu0 %v5557_v38, %s5750_s14  ;;  %v665_v39 = vmul.f32 0.5, %v5557_v38 }
 0xbc3   :  { %v666_v40 = vadd.f32 0.5, %v665_v39 }
 0xbc5   :  { %v667_v43 = vmul.f32 %v666_v40, %v581_v28  ;;  %v203_v28 = vadd.f32 %v5916_v57, %v5846_v14 }
 0xc33   :  { %v670_v41 = vpop.permute.xlu0 %669 }
 0xc34   :  { %v672_v42 = vmul.f32 %v670_v41, %v666_v40 }
 0xc36   :  { %674 = vrot.lane.b32.xlu1 %v672_v42, %s5751_s15 }
 0xca8   :  { %v675_v44 = vpop.permute.xlu1 %674 }
 0xca9   :  { %v677_v45 = vadd.f32 %v675_v44, %v667_v43 }
 0xcab   :  { %5558 = vtanh.f32 %v677_v45 }
 0xcb8   :  { %v5559_v46 = vpop.eup %5558 }
 0xcb9   :  { %680 = vrot.lane.b32.xlu0 %v5559_v46, %s5750_s14 }
 0xd2b   :  { %v681_v47 = vpop.permute.xlu0 %680 }
 0xd2c   :  { %v683_v48 = vmul.f32 %v681_v47, %v666_v40 }
 0xd2e   :  { %685 = vrot.lane.b32.xlu1 %v683_v48, %s5751_s15 }
 0xda0   :  { %v686_v49 = vpop.permute.xlu1 %685 }
 0xda1   :  { %5065 = vmatmul.mubr.msk.f32.vlgmr.msra.gmra.mxu1 %vm76_vm1, %v686_v49 }
 0xda2   :  { %5079 = vmatpush3.msra.mxu1 %v5799_v4  ;;  %5086 = vmatprep.mubr.msk.f32.mxu1 %vm5749_vm0, %v5748_v1  ;;  %v193_v4 = vadd.f32 %v5912_v55, %v5846_v14 }
 0xda3   :  { %5080 = vmatprep.subr.mxu1 %v5748_v1 }
 0xda4   :  { %5081 = vmatpush3.msra.mxu1 %v5802_v5 }
 0xda5   :  { %5082 = vmatprep.subr.mxu1 %v5748_v1 }
 0xda6   :  { %5083 = vmatpush3.msra.mxu1 %v5809_v8 }
 0xda7   :  { %5084 = vmatprep.subr.mxu1 %v5748_v1 }
 0xda8   :  { %5085 = vmatpush3.msra.mxu1 %v5813_v10 }
 0xda9   :  { %5109 = vmatprep.subr.mxu1 %v5748_v1 }
 0xe61   :  { %v755_v50 = vpop.f32.mrf.mxu1 }
 0xe62   :  { %v759_v51 = vadd.f32 %v755_v50, %v193_v4 }
 0xe63   :  { %v5066_v53 = vpop.f32.mrf.mxu1 }
 0xe64   :  { %5560 = vtanh.f32 %v759_v51 }
 0xe71   :  { %v5561_v54 = vpop.eup %5560 }
 0xe72   :  { %765 = vrot.lane.b32.xlu0 %v5561_v54, %s5750_s14  ;;  %v761_v5 = vmul.f32 0.5, %v5561_v54 }
 0xe74   :  { %v762_v56 = vadd.f32 0.5, %v761_v5 }
 0xe76   :  { %v763_v60 = vmul.f32 %v762_v56, %v677_v45 }
 0xee4   :  { %v766_v59 = vpop.permute.xlu0 %765 }
 0xee5   :  { %v768_v8 = vmul.f32 %v766_v59, %v762_v56 }
 0xee7   :  { %770 = vrot.lane.b32.xlu1 %v768_v8, %s5751_s15 }
 0xf59   :  { %v771_v10 = vpop.permute.xlu1 %770 }
 0xf5a   :  { %v773_v61 = vadd.f32 %v771_v10, %v763_v60 }
 0xf5c   :  { %5562 = vtanh.f32 %v773_v61 }
 0xf69   :  { %v5563_v55 = vpop.eup %5562 }
 0xf6a   :  { %776 = vrot.lane.b32.xlu0 %v5563_v55, %s5750_s14 }
 0xfdc   :  { %v777_v63 = vpop.permute.xlu0 %776 }
 0xfdd   :  { %v779_v0 = vmul.f32 %v777_v63, %v762_v56 }
 0xfdf   :  { %781 = vrot.lane.b32.xlu1 %v779_v0, %s5751_s15 }
0x1051   :  { %v782_v2 = vpop.permute.xlu1 %781 }
0x1052   :  { %5076 = vmatmul.mubr.msk.f32.vlgmr.msra.gmra.mxu0 %vm76_vm1, %v782_v2 }
0x1053   :  { %5090 = vmatpush3.msra.mxu0 %v976_v62  ;;  %5097 = vmatprep.mubr.msk.f32.mxu0 %vm76_vm1, %v5853_v30  ;;  %v198_v30 = vadd.f32 %v5846_v14, %v5918_v58 }
0x1054   :  { %5091 = vmatprep.subr.mxu0 %v975_v3 }
0x1055   :  { %5092 = vmatpush3.msra.mxu0 %v975_v3 }
0x1056   :  { %5093 = vmatprep.subr.mxu0 %v974_v6 }
0x1057   :  { %5094 = vmatpush3.msra.mxu0 %v974_v6 }
0x1058   :  { %5095 = vmatprep.subr.mxu0 %v973_v7 }
0x1059   :  { %5096 = vmatpush3.msra.mxu0 %v973_v7 }
0x105a   :  { %5098 = vmatmul.mubr.msk.f32.vlgmr.msra.gmra.mxu0 %vm76_vm1, %v5898_v52  ;;  %5131 = vmatprep.subr.mxu0 %v5748_v1 }
0x105b   :  { %5100 = vmatprep.mubr.msk.f32.mxu0 %vm76_vm1, %v5925_v16  ;;  %5132 = vmatpush3.msra.mxu0 %v6000_v21 }
0x105c   :  { %5133 = vmatprep.subr.mxu0 %v5748_v1 }
0x105d   :  { %5134 = vmatpush3.msra.mxu0 %v6003_v22 }
0x105e   :  { %5101 = vmatmul.mubr.msk.f32.gmra.mxu0 %vm76_vm1, %v5944_v33  ;;  %5135 = vmatprep.subr.mxu0 %v5748_v1 }
0x105f   :  { %5103 = vmatprep.mubr.msk.f32.mxu0 %vm76_vm1, %v686_v49  ;;  %5136 = vmatpush3.msra.mxu0 %v6007_v23 }
0x1060   :  { %5137 = vmatprep.subr.mxu0 %v5748_v1 }
0x1061   :  { %5138 = vmatpush3.msra.mxu0 %v6011_v24 }
0x1062   :  { %5104 = vmatmul.mubr.msk.f32.gmra.mxu0 %vm76_vm1, %v782_v2  ;;  %5153 = vmatprep.subr.mxu0 %v5748_v1 }
0x1112   :  { %v851_v9 = vpop.f32.mrf.mxu0 }
0x1113   :  { %v855_v11 = vadd.f32 %v851_v9, %v198_v30 }
0x1114   :  { %v5077_v12 = vpop.f32.mrf.mxu0 }
0x1115   :  { %5564 = vtanh.f32 %v855_v11 }
0x111a   :  { %v5099_v29 = vpop.f32.mrf.mxu0 }
0x111c   :  { %v1061_v34 = vpop.f32.mrf.mxu0 }
0x111d   :  { %v1062_v36 = vadd.f32 %v6045_v35, %v1061_v34 }
0x1122   :  { %v5565_v52 = vpop.eup %5564 }
0x1123   :  { %861 = vrot.lane.b32.xlu0 %v5565_v52, %s5750_s14  ;;  %v857_v13 = vmul.f32 0.5, %v5565_v52 }
0x1125   :  { %v858_v15 = vadd.f32 0.5, %v857_v13 }
0x1127   :  { %v859_v18 = vmul.f32 %v858_v15, %v773_v61  ;;  %v1067_v61 = vadd.f32 %v5099_v29, %v6045_v35 }
0x1195   :  { %v862_v16 = vpop.permute.xlu0 %861 }
0x1196   :  { %v864_v17 = vmul.f32 %v862_v16, %v858_v15 }
0x1198   :  { %866 = vrot.lane.b32.xlu1 %v864_v17, %s5751_s15  ;;  %v5102_v17 = vpop.f32.mrf.mxu0 }
0x120a   :  { %v867_v19 = vpop.permute.xlu1 %866 }
0x120b   :  { %v5996_v20 = vadd.f32 %v867_v19, %v859_v18  ;;  %v1071_v18 = vpop.f32.mrf.mxu0 }
0x120d   :  { %5566 = vtanh.f32 %v5996_v20  ;;  %v6093_v19 = vpop.f32.mrf.mxu0 }
0x121a   :  { %v5567_v58 = vpop.eup %5566 }
0x121b   :  { %872 = vrot.lane.b32.xlu0 %v5567_v58, %s5750_s14 }
0x128d   :  { %v873_v25 = vpop.permute.xlu0 %872 }
0x128e   :  { %v875_v26 = vmul.f32 %v873_v25, %v858_v15 }
0x1290   :  { %877 = vrot.lane.b32.xlu1 %v875_v26, %s5751_s15  ;;  %v1072_v26 = vadd.f32 %v6045_v35, %v1071_v18 }
0x1302   :  { %v878_v27 = vpop.permute.xlu1 %877 }
0x1303   :  { %5087 = vmatmul.mubr.msk.f32.vlgmr.msra.gmra.mxu1 %vm76_vm1, %v878_v27  ;;  %5106 = vmatprep.mubr.msk.f32.mxu0 %vm76_vm1, %v878_v27 }
0x1304   :  { %5110 = vmatpush3.msra.mxu1 %v6000_v21  ;;  %5117 = vmatprep.mubr.msk.f32.mxu1 %vm5749_vm0, %v5748_v1 }
0x1305   :  { %5111 = vmatprep.subr.mxu1 %v5748_v1 }
0x1306   :  { %5112 = vmatpush3.msra.mxu1 %v6003_v22 }
0x1307   :  { %5113 = vmatprep.subr.mxu1 %v5748_v1 }
0x1308   :  { %5114 = vmatpush3.msra.mxu1 %v6007_v23 }
0x1309   :  { %5115 = vmatprep.subr.mxu1 %v5748_v1 }
0x130a   :  { %5116 = vmatpush3.msra.mxu1 %v6011_v24 }
0x130b   :  { %5118 = vmatmul.mubr.f32.vlgmr.msra.gmra.mxu1 %v5748_v1  ;;  %5120 = vmatprep.subr.mxu1 %v5748_v1 }
0x130c   :  { %5121 = vmatpush3.msra.mxu1 %v6000_v21  ;;  %5128 = vmatprep.mubr.msk.f32.mxu1 %vm5749_vm0, %v5748_v1 }
0x130d   :  { %5122 = vmatprep.subr.mxu1 %v5748_v1 }
0x130e   :  { %5123 = vmatpush3.msra.mxu1 %v6003_v22 }
0x130f   :  { %5124 = vmatprep.subr.mxu1 %v5748_v1 }
0x1310   :  { %5125 = vmatpush3.msra.mxu1 %v6007_v23 }
0x1311   :  { %5126 = vmatprep.subr.mxu1 %v5748_v1 }
0x1312   :  { %5127 = vmatpush3.msra.mxu1 %v6011_v24 }
0x1313   :  { %5142 = vmatprep.subr.mxu1 %v5748_v1 }
0x13c3   :  { %v947_v31 = vpop.f32.mrf.mxu1 }
0x13c4   :  { %v951_v32 = vadd.f32 %v947_v31, %v203_v28 }
0x13c5   :  { %v5088_v33 = vpop.f32.mrf.mxu1 }
0x13cb   :  { %v1166_v37 = vpop.f32.mrf.mxu1 }
0x13cc   :  { %v1170_v38 = vadd.f32 %v1166_v37, %v1062_v36 }
0x13cd   :  { %v5119_v39 = vpop.f32.mrf.mxu1 }
0x13ce   :  { %5568 = vtanh.f32 %v1170_v38 }
0x13db   :  { %v5569_v40 = vpop.eup %5568 }
0x13dc   :  { %1176 = vrot.lane.b32.xlu0 %v5569_v40, %s5750_s14  ;;  %v1172_v14 = vmul.f32 0.5, %v5569_v40 }
0x13de   :  { %v1173_v57 = vadd.f32 0.5, %v1172_v14 }
0x13e0   :  { %v1174_v43 = vmul.f32 0.0, %v1173_v57 }
0x144e   :  { %v1177_v41 = vpop.permute.xlu0 %1176 }
0x144f   :  { %v1179_v42 = vmul.f32 %v1177_v41, %v1173_v57 }
0x1451   :  { %1181 = vrot.lane.b32.xlu1 %v1179_v42, %s5751_s15  ;;  %v1077_v42 = vadd.f32 %v5102_v17, %v6045_v35 }
0x14c3   :  { %v1182_v44 = vpop.permute.xlu1 %1181 }
0x14c4   :  { %v1184_v45 = vadd.f32 %v1182_v44, %v1174_v43 }
0x14c6   :  { %5570 = vtanh.f32 %v1184_v45 }
0x14c7   :  { %5572 = vtanh.f32 %v951_v32 }
0x14d3   :  { %v5571_v46 = vpop.eup %5570 }
0x14d4   :  { %1187 = vrot.lane.b32.xlu0 %v5571_v46, %s5750_s14  ;;  %v5573_v47 = vpop.eup %5572 }
0x14d5   :  { %v953_v48 = vmul.f32 0.5, %v5573_v47 }
0x14d7   :  { %v954_v50 = vadd.f32 0.5, %v953_v48 }
0x14d8   :  { %957 = vrot.lane.b32.xlu0 %v5573_v47, %s5750_s14 }
0x14d9   :  { %v955_v5 = vmul.f32 %v954_v50, %v5996_v20  ;;  %v6095_v20 = vpop.f32.mrf.mxu0 }
0x1546   :  { %v1188_v49 = vpop.permute.xlu0 %1187 }
0x1547   :  { %v1190_v4 = vmul.f32 %v1188_v49, %v1173_v57 }
0x1549   :  { %1192 = vrot.lane.b32.xlu1 %v1190_v4, %s5751_s15 }
0x154a   :  { %v958_v51 = vpop.permute.xlu0 %957 }
0x154b   :  { %v960_v53 = vmul.f32 %v958_v51, %v954_v50 }
0x154d   :  { %962 = vrot.lane.b32.xlu0 %v960_v53, %s5751_s15 }
0x15bb   :  { %v6054_v54 = vpop.permute.xlu1 %1192 }
0x15bc   :  { %5129 = vmatmul.mubr.msk.f32.vlgmr.msra.gmra.mxu1 %vm76_vm1, %v6054_v54 }
0x15bd   :  { %5143 = vmatpush3.msra.mxu1 %v6000_v21  ;;  %5150 = vmatprep.mubr.msk.f32.mxu1 %vm5749_vm0, %v5748_v1 }
0x15be   :  { %5144 = vmatprep.subr.mxu1 %v5748_v1 }
0x15bf   :  { %v963_v56 = vpop.permute.xlu0 %962  ;;  %5145 = vmatpush3.msra.mxu1 %v6003_v22 }
0x15c0   :  { %v965_v59 = vadd.f32 %v963_v56, %v955_v5  ;;  %5146 = vmatprep.subr.mxu1 %v5748_v1 }
0x15c1   :  { %5147 = vmatpush3.msra.mxu1 %v6007_v23 }
0x15c2   :  { %5574 = vtanh.f32 %v965_v59  ;;  %5148 = vmatprep.subr.mxu1 %v5748_v1 }
0x15c3   :  { %5149 = vmatpush3.msra.mxu1 %v6011_v24 }
0x15c4   :  { %5164 = vmatprep.subr.mxu1 %v5748_v1 }
0x15cf   :  { %v5575_v8 = vpop.eup %5574 }
0x15d0   :  { %968 = vrot.lane.b32.xlu0 %v5575_v8, %s5750_s14 }
0x1642   :  { %v969_v60 = vpop.permute.xlu0 %968 }
0x1643   :  { %v971_v10 = vmul.f32 %v969_v60, %v954_v50  ;;  %v1082_v60 = vadd.f32 %v6045_v35, %v6095_v20 }
0x1645   :  { %991 = vrot.lane.b32.xlu0 %v971_v10, %s5751_s15 }
0x167c   :  { %v1262_v62 = vpop.f32.mrf.mxu1 }
0x167d   :  { %v1266_v55 = vadd.f32 %v1262_v62, %v1067_v61 }
0x167e   :  { %v5130_v63 = vpop.f32.mrf.mxu1 }
0x167f   :  { %5576 = vtanh.f32 %v1266_v55 }
0x168c   :  { %v5577_v0 = vpop.eup %5576 }
0x168d   :  { %1272 = vrot.lane.b32.xlu1 %v5577_v0, %s5750_s14  ;;  %v1268_v3 = vmul.f32 0.5, %v5577_v0 }
0x168f   :  { %v1269_v6 = vadd.f32 0.5, %v1268_v3 }
0x1691   :  { %v1270_v9 = vmul.f32 %v1269_v6, %v1184_v45 }
0x16b7   :  { %v992_v2 = vpop.permute.xlu0 %991 }
0x16b8   :  { %5107 = vmatmul.mubr.msk.f32.gmra.mxu0 %vm76_vm1, %v992_v2 }
0x16b9   :  { %5139 = vmatprep.mubr.msk.f32.mxu0 %vm5749_vm0, %v5748_v1 }
0x16ff   :  { %v1273_v7 = vpop.permute.xlu1 %1272 }
0x1700   :  { %v1275_v30 = vmul.f32 %v1273_v7, %v1269_v6 }
0x1702   :  { %1277 = vrot.lane.b32.xlu1 %v1275_v30, %s5751_s15 }
0x1774   :  { %v1278_v11 = vpop.permute.xlu1 %1277 }
0x1775   :  { %v1280_v12 = vadd.f32 %v1278_v11, %v1270_v9 }
0x1777   :  { %5578 = vtanh.f32 %v1280_v12 }
0x1778   :  { %v6097_v58 = vpop.f32.mrf.mxu0 }
0x177a   :  { %v6099_v25 = vpop.f32.mrf.mxu0 }
0x1784   :  { %v5579_v52 = vpop.eup %5578 }
0x1785   :  { %1283 = vrot.lane.b32.xlu1 %v5579_v52, %s5750_s14 }
0x17f7   :  { %v1284_v13 = vpop.permute.xlu1 %1283 }
0x17f8   :  { %v1286_v15 = vmul.f32 %v1284_v13, %v1269_v6 }
0x17fa   :  { %1288 = vrot.lane.b32.xlu1 %v1286_v15, %s5751_s15 }
0x186c   :  { %v6079_v16 = vpop.permute.xlu1 %1288 }
0x186d   :  { %5140 = vmatmul.mubr.msk.f32.vlgmr.msra.gmra.mxu0 %vm76_vm1, %v6079_v16 }
0x186e   :  { %5154 = vmatpush3.msra.mxu0 %v6000_v21  ;;  %5161 = vmatprep.mubr.msk.f32.mxu0 %vm5749_vm0, %v5748_v1 }
0x186f   :  { %5155 = vmatprep.subr.mxu0 %v5748_v1 }
0x1870   :  { %5156 = vmatpush3.msra.mxu0 %v6003_v22 }
0x1871   :  { %5157 = vmatprep.subr.mxu0 %v5748_v1 }
0x1872   :  { %5158 = vmatpush3.msra.mxu0 %v6007_v23 }
0x1873   :  { %5159 = vmatprep.subr.mxu0 %v5748_v1 }
0x1874   :  { %5160 = vmatpush3.msra.mxu0 %v6011_v24 }
0x1875   :  { %5175 = vmatprep.subr.mxu0 %v5748_v1 }
0x192d   :  { %v1358_v27 = vpop.f32.mrf.mxu0 }
0x192e   :  { %v1362_v28 = vadd.f32 %v1358_v27, %v1072_v26 }
0x192f   :  { %v5141_v29 = vpop.f32.mrf.mxu0 }
0x1930   :  { %5580 = vtanh.f32 %v1362_v28  ;;  %v1867_v29 = vld [vmem:[#allocation3 + $0x58] sm:$0xff] }
0x193d   :  { %v5581_v31 = vpop.eup %5580 }
0x193e   :  { %1368 = vrot.lane.b32.xlu0 %v5581_v31, %s5750_s14  ;;  %v1364_v32 = vmul.f32 0.5, %v5581_v31 }
0x1940   :  { %v1365_v33 = vadd.f32 0.5, %v1364_v32 }
0x1942   :  { %v1366_v37 = vmul.f32 %v1365_v33, %v1280_v12 }
0x19b0   :  { %v1369_v34 = vpop.permute.xlu0 %1368 }
0x19b1   :  { %v1371_v36 = vmul.f32 %v1369_v34, %v1365_v33  ;;  %v1866_v34 = vld [vmem:[#allocation3 + $0x50] sm:$0xff] }
0x19b3   :  { %1373 = vrot.lane.b32.xlu1 %v1371_v36, %s5751_s15  ;;  %v1865_v36 = vld [vmem:[#allocation3 + $0x48] sm:$0xff] }
0x1a25   :  { %v1374_v38 = vpop.permute.xlu1 %1373 }
0x1a26   :  { %v1376_v39 = vadd.f32 %v1374_v38, %v1366_v37  ;;  %v1864_v37 = vld [vmem:[#allocation3 + $0x40] sm:$0xff] }
0x1a28   :  { %5582 = vtanh.f32 %v1376_v39 }
0x1a35   :  { %v5583_v40 = vpop.eup %5582 }
0x1a36   :  { %1379 = vrot.lane.b32.xlu0 %v5583_v40, %s5750_s14 }
0x1aa8   :  { %v1380_v14 = vpop.permute.xlu0 %1379 }
0x1aa9   :  { %v1382_v57 = vmul.f32 %v1380_v14, %v1365_v33 }
0x1aab   :  { %1384 = vrot.lane.b32.xlu1 %v1382_v57, %s5751_s15 }
0x1b1d   :  { %v6106_v41 = vpop.permute.xlu1 %1384 }
0x1b1e   :  { %5151 = vmatmul.mubr.msk.f32.vlgmr.msra.gmra.mxu1 %vm76_vm1, %v6106_v41 }
0x1b1f   :  { %5165 = vmatpush3.msra.mxu1 %v6000_v21  ;;  %5172 = vmatprep.mubr.msk.f32.mxu1 %vm5749_vm0, %v5748_v1 }
0x1b20   :  { %5166 = vmatprep.subr.mxu1 %v5748_v1 }
0x1b21   :  { %5167 = vmatpush3.msra.mxu1 %v6003_v22 }
0x1b22   :  { %5168 = vmatprep.subr.mxu1 %v5748_v1 }
0x1b23   :  { %5169 = vmatpush3.msra.mxu1 %v6007_v23 }
0x1b24   :  { %5170 = vmatprep.subr.mxu1 %v5748_v1 }
0x1b25   :  { %5171 = vmatpush3.msra.mxu1 %v6011_v24 }
0x1b26   :  { %5186 = vmatprep.subr.mxu1 %v5748_v1 }
0x1bde   :  { %v1454_v43 = vpop.f32.mrf.mxu1 }
0x1bdf   :  { %v1458_v44 = vadd.f32 %v1454_v43, %v1077_v42 }
0x1be0   :  { %v5152_v45 = vpop.f32.mrf.mxu1 }
0x1be1   :  { %5584 = vtanh.f32 %v1458_v44 }
0x1bee   :  { %v5585_v46 = vpop.eup %5584 }
0x1bef   :  { %1464 = vrot.lane.b32.xlu0 %v5585_v46, %s5750_s14  ;;  %v1460_v47 = vmul.f32 0.5, %v5585_v46  ;;  %v6181_v46 = vld [vmem:[#allocation5 + $0x58] sm:$0xff] }
0x1bf1   :  { %v1461_v48 = vadd.f32 0.5, %v1460_v47  ;;  %v6184_v47 = vld [vmem:[#allocation5 + $0x50] sm:$0xff] }
0x1bf3   :  { %v1462_v50 = vmul.f32 %v1461_v48, %v1376_v39 }
0x1c61   :  { %v1465_v49 = vpop.permute.xlu0 %1464 }
0x1c62   :  { %v1467_v4 = vmul.f32 %v1465_v49, %v1461_v48  ;;  %v6192_v49 = vld [vmem:[#allocation5 + $0x40] sm:$0xff] }
0x1c64   :  { %1469 = vrot.lane.b32.xlu1 %v1467_v4, %s5751_s15 }
0x1cd6   :  { %v1470_v51 = vpop.permute.xlu1 %1469 }
0x1cd7   :  { %v1472_v53 = vadd.f32 %v1470_v51, %v1462_v50 }
0x1cd9   :  { %5586 = vtanh.f32 %v1472_v53 }
0x1ce6   :  { %v5587_v5 = vpop.eup %5586 }
0x1ce7   :  { %1475 = vrot.lane.b32.xlu0 %v5587_v5, %s5750_s14 }
0x1d59   :  { %v1476_v56 = vpop.permute.xlu0 %1475 }
0x1d5a   :  { %v1478_v59 = vmul.f32 %v1476_v56, %v1461_v48  ;;  %v6188_v48 = vld [vmem:[#allocation5 + $0x48] sm:$0xff] }
0x1d5c   :  { %1480 = vrot.lane.b32.xlu1 %v1478_v59, %s5751_s15 }
0x1dce   :  { %v6125_v8 = vpop.permute.xlu1 %1480 }
0x1dcf   :  { %5162 = vmatmul.mubr.msk.f32.vlgmr.msra.gmra.mxu0 %vm76_vm1, %v6125_v8 }
0x1dd0   :  { %5176 = vmatpush3.msra.mxu0 %v6000_v21  ;;  %5183 = vmatprep.mubr.msk.f32.mxu0 %vm5749_vm0, %v5748_v1 }
0x1dd1   :  { %5177 = vmatprep.subr.mxu0 %v5748_v1 }
0x1dd2   :  { %5178 = vmatpush3.msra.mxu0 %v6003_v22 }
0x1dd3   :  { %5179 = vmatprep.subr.mxu0 %v5748_v1 }
0x1dd4   :  { %5180 = vmatpush3.msra.mxu0 %v6007_v23 }
0x1dd5   :  { %5181 = vmatprep.subr.mxu0 %v5748_v1 }
0x1dd6   :  { %5182 = vmatpush3.msra.mxu0 %v6011_v24 }
0x1dd7   :  { %5197 = vmatprep.subr.mxu0 %v1867_v29 }
0x1e8f   :  { %v1550_v10 = vpop.f32.mrf.mxu0 }
0x1e90   :  { %v1554_v61 = vadd.f32 %v1550_v10, %v1082_v60  ;;  %v6226_v10 = vld [vmem:[%s6730_s3 + $0x2] ss:$0 sm:$0xff] }
0x1e91   :  { %v5163_v62 = vpop.f32.mrf.mxu0 }
0x1e92   :  { %5588 = vtanh.f32 %v1554_v61 }
0x1e9f   :  { %v5589_v55 = vpop.eup %5588 }
0x1ea0   :  { %1560 = vrot.lane.b32.xlu0 %v5589_v55, %s5750_s14  ;;  %v1556_v63 = vmul.f32 0.5, %v5589_v55 }
0x1ea2   :  { %v1557_v0 = vadd.f32 0.5, %v1556_v63 }
0x1ea4   :  { %v1558_v6 = vmul.f32 %v1557_v0, %v1472_v53  ;;  %v1097_v53 = vadd.f32 %v6097_v58, %v6045_v35 }
0x1f12   :  { %v1561_v2 = vpop.permute.xlu0 %1560 }
0x1f13   :  { %v1563_v3 = vmul.f32 %v1561_v2, %v1557_v0 }
0x1f15   :  { %1565 = vrot.lane.b32.xlu1 %v1563_v3, %s5751_s15 }
0x1f87   :  { %v1566_v7 = vpop.permute.xlu1 %1565 }
0x1f88   :  { %v1568_v30 = vadd.f32 %v1566_v7, %v1558_v6 }
0x1f8a   :  { %5590 = vtanh.f32 %v1568_v30 }
0x1f97   :  { %v5591_v9 = vpop.eup %5590 }
0x1f98   :  { %1571 = vrot.lane.b32.xlu0 %v5591_v9, %s5750_s14 }
0x200a   :  { %v1572_v11 = vpop.permute.xlu0 %1571 }
0x200b   :  { %v1574_v12 = vmul.f32 %v1572_v11, %v1557_v0 }
0x200d   :  { %1576 = vrot.lane.b32.xlu1 %v1574_v12, %s5751_s15 }
0x207f   :  { %v1577_v52 = vpop.permute.xlu1 %1576 }
0x2080   :  { %5173 = vmatmul.mubr.msk.f32.vlgmr.msra.gmra.mxu1 %vm76_vm1, %v1577_v52 }
0x2081   :  { %5187 = vmatpush3.msra.mxu1 %v6000_v21  ;;  %5194 = vmatprep.mubr.msk.f32.mxu1 %vm5749_vm0, %v5748_v1  ;;  %v1087_v21 = vadd.f32 %v6093_v19, %v6045_v35 }
0x2082   :  { %5188 = vmatprep.subr.mxu1 %v5748_v1 }
0x2083   :  { %5189 = vmatpush3.msra.mxu1 %v6003_v22 }
0x2084   :  { %5190 = vmatprep.subr.mxu1 %v5748_v1 }
0x2085   :  { %5191 = vmatpush3.msra.mxu1 %v6007_v23 }
0x2086   :  { %5192 = vmatprep.subr.mxu1 %v5748_v1 }
0x2087   :  { %5193 = vmatpush3.msra.mxu1 %v6011_v24 }
0x2088   :  { %5217 = vmatprep.subr.mxu1 %v5748_v1 }
0x2140   :  { %v1646_v13 = vpop.f32.mrf.mxu1 }
0x2141   :  { %v1650_v15 = vadd.f32 %v1646_v13, %v1087_v21 }
0x2142   :  { %v5174_v17 = vpop.f32.mrf.mxu1 }
0x2143   :  { %5592 = vtanh.f32 %v1650_v15 }
0x2150   :  { %v5593_v18 = vpop.eup %5592 }
0x2151   :  { %1656 = vrot.lane.b32.xlu0 %v5593_v18, %s5750_s14  ;;  %v1652_v22 = vmul.f32 0.5, %v5593_v18 }
0x2153   :  { %v1653_v20 = vadd.f32 0.5, %v1652_v22 }
0x2155   :  { %v1654_v27 = vmul.f32 %v1653_v20, %v1568_v30 }
0x21c3   :  { %v1657_v26 = vpop.permute.xlu0 %1656 }
0x21c4   :  { %v1659_v23 = vmul.f32 %v1657_v26, %v1653_v20 }
0x21c6   :  { %1661 = vrot.lane.b32.xlu1 %v1659_v23, %s5751_s15 }
0x2238   :  { %v1662_v24 = vpop.permute.xlu1 %1661 }
0x2239   :  { %v1664_v28 = vadd.f32 %v1662_v24, %v1654_v27 }
0x223b   :  { %5594 = vtanh.f32 %v1664_v28 }
0x2248   :  { %v5595_v19 = vpop.eup %5594 }
0x2249   :  { %1667 = vrot.lane.b32.xlu0 %v5595_v19, %s5750_s14 }
0x22bb   :  { %v1668_v31 = vpop.permute.xlu0 %1667 }
0x22bc   :  { %v1670_v32 = vmul.f32 %v1668_v31, %v1653_v20 }
0x22be   :  { %1672 = vrot.lane.b32.xlu1 %v1670_v32, %s5751_s15 }
0x2330   :  { %v1673_v33 = vpop.permute.xlu1 %1672 }
0x2331   :  { %5184 = vmatmul.mubr.msk.f32.vlgmr.msra.gmra.mxu0 %vm76_vm1, %v1673_v33 }
0x2332   :  { %5198 = vmatpush3.msra.mxu0 %v1867_v29  ;;  %5205 = vmatprep.mubr.msk.f32.mxu0 %vm76_vm1, %v6054_v54  ;;  %v1092_v54 = vadd.f32 %v6045_v35, %v6099_v25 }
0x2333   :  { %5199 = vmatprep.subr.mxu0 %v1866_v34 }
0x2334   :  { %5200 = vmatpush3.msra.mxu0 %v1866_v34 }
0x2335   :  { %5201 = vmatprep.subr.mxu0 %v1865_v36 }
0x2336   :  { %5202 = vmatpush3.msra.mxu0 %v1865_v36 }
0x2337   :  { %5203 = vmatprep.subr.mxu0 %v1864_v37 }
0x2338   :  { %5204 = vmatpush3.msra.mxu0 %v1864_v37 }
0x2339   :  { %5206 = vmatmul.mubr.msk.f32.vlgmr.msra.gmra.mxu0 %vm76_vm1, %v6079_v16  ;;  %5239 = vmatprep.subr.mxu0 %v5748_v1 }
0x233a   :  { %5208 = vmatprep.mubr.msk.f32.mxu0 %vm76_vm1, %v6106_v41  ;;  %5240 = vmatpush3.msra.mxu0 %v6181_v46 }
0x233b   :  { %5241 = vmatprep.subr.mxu0 %v5748_v1 }
0x233c   :  { %5242 = vmatpush3.msra.mxu0 %v6184_v47 }
0x233d   :  { %5209 = vmatmul.mubr.msk.f32.gmra.mxu0 %vm76_vm1, %v6125_v8  ;;  %5243 = vmatprep.subr.mxu0 %v5748_v1 }
0x233e   :  { %5211 = vmatprep.mubr.msk.f32.mxu0 %vm76_vm1, %v1577_v52  ;;  %5244 = vmatpush3.msra.mxu0 %v6188_v48 }
0x233f   :  { %5245 = vmatprep.subr.mxu0 %v5748_v1 }
0x2340   :  { %5246 = vmatpush3.msra.mxu0 %v6192_v49 }
0x2341   :  { %5212 = vmatmul.mubr.msk.f32.gmra.mxu0 %vm76_vm1, %v1673_v33  ;;  %5261 = vmatprep.subr.mxu0 %v5748_v1 }
0x23f1   :  { %v1742_v38 = vpop.f32.mrf.mxu0 }
0x23f2   :  { %v1746_v39 = vadd.f32 %v1742_v38, %v1092_v54 }
0x23f3   :  { %v5185_v40 = vpop.f32.mrf.mxu0 }
0x23f4   :  { %5596 = vtanh.f32 %v1746_v39 }
0x23f9   :  { %v5207_v5 = vpop.f32.mrf.mxu0 }
0x23fb   :  { %v1952_v60 = vpop.f32.mrf.mxu0 }
0x23fc   :  { %v1953_v61 = vadd.f32 %v6226_v10, %v1952_v60 }
0x2401   :  { %v5597_v16 = vpop.eup %5596 }
0x2402   :  { %1752 = vrot.lane.b32.xlu0 %v5597_v16, %s5750_s14  ;;  %v1748_v14 = vmul.f32 0.5, %v5597_v16 }
0x2404   :  { %v1749_v57 = vadd.f32 0.5, %v1748_v14 }
0x2406   :  { %v1750_v43 = vmul.f32 %v1749_v57, %v1664_v28  ;;  %v1958_v28 = vadd.f32 %v5207_v5, %v6226_v10 }
0x2474   :  { %v1753_v41 = vpop.permute.xlu0 %1752 }
0x2475   :  { %v1755_v42 = vmul.f32 %v1753_v41, %v1749_v57 }
0x2477   :  { %1757 = vrot.lane.b32.xlu1 %v1755_v42, %s5751_s15  ;;  %v5210_v42 = vpop.f32.mrf.mxu0 }
0x24e9   :  { %v1758_v44 = vpop.permute.xlu1 %1757 }
0x24ea   :  { %v6177_v45 = vadd.f32 %v1758_v44, %v1750_v43  ;;  %v1962_v43 = vpop.f32.mrf.mxu0 }
0x24ec   :  { %5598 = vtanh.f32 %v6177_v45  ;;  %v6274_v44 = vpop.f32.mrf.mxu0 }
0x24f9   :  { %v5599_v25 = vpop.eup %5598 }
0x24fa   :  { %1763 = vrot.lane.b32.xlu0 %v5599_v25, %s5750_s14 }
0x256c   :  { %v1764_v4 = vpop.permute.xlu0 %1763 }
0x256d   :  { %v1766_v50 = vmul.f32 %v1764_v4, %v1749_v57 }
0x256f   :  { %1768 = vrot.lane.b32.xlu1 %v1766_v50, %s5751_s15  ;;  %v1963_v50 = vadd.f32 %v6226_v10, %v1962_v43 }
0x25e1   :  { %v1769_v51 = vpop.permute.xlu1 %1768 }
0x25e2   :  { %5195 = vmatmul.mubr.msk.f32.vlgmr.msra.gmra.mxu1 %vm76_vm1, %v1769_v51  ;;  %5214 = vmatprep.mubr.msk.f32.mxu0 %vm76_vm1, %v1769_v51 }
0x25e3   :  { %5218 = vmatpush3.msra.mxu1 %v6181_v46  ;;  %5225 = vmatprep.mubr.msk.f32.mxu1 %vm5749_vm0, %v5748_v1 }
0x25e4   :  { %5219 = vmatprep.subr.mxu1 %v5748_v1 }
0x25e5   :  { %5220 = vmatpush3.msra.mxu1 %v6184_v47 }
0x25e6   :  { %5221 = vmatprep.subr.mxu1 %v5748_v1 }
0x25e7   :  { %5222 = vmatpush3.msra.mxu1 %v6188_v48 }
0x25e8   :  { %5223 = vmatprep.subr.mxu1 %v5748_v1 }
0x25e9   :  { %5224 = vmatpush3.msra.mxu1 %v6192_v49 }
0x25ea   :  { %5226 = vmatmul.mubr.f32.vlgmr.msra.gmra.mxu1 %v5748_v1  ;;  %5228 = vmatprep.subr.mxu1 %v5748_v1 }
0x25eb   :  { %5229 = vmatpush3.msra.mxu1 %v6181_v46  ;;  %5236 = vmatprep.mubr.msk.f32.mxu1 %vm5749_vm0, %v5748_v1 }
0x25ec   :  { %5230 = vmatprep.subr.mxu1 %v5748_v1 }
0x25ed   :  { %5231 = vmatpush3.msra.mxu1 %v6184_v47 }
0x25ee   :  { %5232 = vmatprep.subr.mxu1 %v5748_v1 }
0x25ef   :  { %5233 = vmatpush3.msra.mxu1 %v6188_v48 }
0x25f0   :  { %5234 = vmatprep.subr.mxu1 %v5748_v1 }
0x25f1   :  { %5235 = vmatpush3.msra.mxu1 %v6192_v49 }
0x25f2   :  { %5250 = vmatprep.subr.mxu1 %v5748_v1 }
0x26a2   :  { %v1838_v56 = vpop.f32.mrf.mxu1 }
0x26a3   :  { %v1842_v59 = vadd.f32 %v1838_v56, %v1097_v53 }
0x26a4   :  { %v5196_v8 = vpop.f32.mrf.mxu1 }
0x26aa   :  { %v2057_v62 = vpop.f32.mrf.mxu1 }
0x26ab   :  { %v2061_v55 = vadd.f32 %v2057_v62, %v1953_v61 }
0x26ac   :  { %v5227_v63 = vpop.f32.mrf.mxu1 }
0x26ad   :  { %5600 = vtanh.f32 %v2061_v55 }
0x26ba   :  { %v5601_v0 = vpop.eup %5600 }
0x26bb   :  { %2067 = vrot.lane.b32.xlu0 %v5601_v0, %s5750_s14  ;;  %v2063_v35 = vmul.f32 0.5, %v5601_v0 }
0x26bd   :  { %v2064_v58 = vadd.f32 0.5, %v2063_v35 }
0x26bf   :  { %v2065_v6 = vmul.f32 0.0, %v2064_v58 }
0x272d   :  { %v2068_v2 = vpop.permute.xlu0 %2067 }
0x272e   :  { %v2070_v3 = vmul.f32 %v2068_v2, %v2064_v58 }
0x2730   :  { %2072 = vrot.lane.b32.xlu1 %v2070_v3, %s5751_s15  ;;  %v1968_v3 = vadd.f32 %v5210_v42, %v6226_v10 }
0x27a2   :  { %v2073_v7 = vpop.permute.xlu1 %2072 }
0x27a3   :  { %v2075_v30 = vadd.f32 %v2073_v7, %v2065_v6 }
0x27a5   :  { %5602 = vtanh.f32 %v2075_v30 }
0x27a6   :  { %5604 = vtanh.f32 %v1842_v59 }
0x27b2   :  { %v5603_v9 = vpop.eup %5602 }
0x27b3   :  { %2078 = vrot.lane.b32.xlu0 %v5603_v9, %s5750_s14  ;;  %v5605_v11 = vpop.eup %5604 }
0x27b4   :  { %v1844_v12 = vmul.f32 0.5, %v5605_v11 }
0x27b6   :  { %v1845_v13 = vadd.f32 0.5, %v1844_v12 }
0x27b7   :  { %1848 = vrot.lane.b32.xlu0 %v5605_v11, %s5750_s14 }
0x27b8   :  { %v1846_v22 = vmul.f32 %v1845_v13, %v6177_v45  ;;  %v6276_v45 = vpop.f32.mrf.mxu0 }
0x2825   :  { %v2079_v52 = vpop.permute.xlu0 %2078 }
0x2826   :  { %v2081_v21 = vmul.f32 %v2079_v52, %v2064_v58 }
0x2828   :  { %2083 = vrot.lane.b32.xlu1 %v2081_v21, %s5751_s15 }
0x2829   :  { %v1849_v15 = vpop.permute.xlu0 %1848 }
0x282a   :  { %v1851_v17 = vmul.f32 %v1849_v15, %v1845_v13 }
0x282c   :  { %1853 = vrot.lane.b32.xlu0 %v1851_v17, %s5751_s15 }
0x289a   :  { %v6235_v18 = vpop.permute.xlu1 %2083 }
0x289b   :  { %5237 = vmatmul.mubr.msk.f32.vlgmr.msra.gmra.mxu1 %vm76_vm1, %v6235_v18 }
0x289c   :  { %5251 = vmatpush3.msra.mxu1 %v6181_v46  ;;  %5258 = vmatprep.mubr.msk.f32.mxu1 %vm5749_vm0, %v5748_v1 }
0x289d   :  { %5252 = vmatprep.subr.mxu1 %v5748_v1 }
0x289e   :  { %v1854_v20 = vpop.permute.xlu0 %1853  ;;  %5253 = vmatpush3.msra.mxu1 %v6184_v47 }
0x289f   :  { %v1856_v26 = vadd.f32 %v1854_v20, %v1846_v22  ;;  %5254 = vmatprep.subr.mxu1 %v5748_v1 }
0x28a0   :  { %5255 = vmatpush3.msra.mxu1 %v6188_v48 }
0x28a1   :  { %5606 = vtanh.f32 %v1856_v26  ;;  %5256 = vmatprep.subr.mxu1 %v5748_v1 }
0x28a2   :  { %5257 = vmatpush3.msra.mxu1 %v6192_v49 }
0x28a3   :  { %5272 = vmatprep.subr.mxu1 %v5748_v1 }
0x28ae   :  { %v5607_v23 = vpop.eup %5606 }
0x28af   :  { %1859 = vrot.lane.b32.xlu0 %v5607_v23, %s5750_s14 }
0x2921   :  { %v1860_v27 = vpop.permute.xlu0 %1859 }
0x2922   :  { %v1862_v24 = vmul.f32 %v1860_v27, %v1845_v13  ;;  %v1973_v27 = vadd.f32 %v6226_v10, %v6276_v45 }
0x2924   :  { %1882 = vrot.lane.b32.xlu0 %v1862_v24, %s5751_s15 }
0x295b   :  { %v2153_v29 = vpop.f32.mrf.mxu1 }
0x295c   :  { %v2157_v19 = vadd.f32 %v2153_v29, %v1958_v28 }
0x295d   :  { %v5238_v31 = vpop.f32.mrf.mxu1 }
0x295e   :  { %5608 = vtanh.f32 %v2157_v19 }
0x296b   :  { %v5609_v32 = vpop.eup %5608 }
0x296c   :  { %2163 = vrot.lane.b32.xlu1 %v5609_v32, %s5750_s14  ;;  %v2159_v34 = vmul.f32 0.5, %v5609_v32 }
0x296e   :  { %v2160_v36 = vadd.f32 0.5, %v2159_v34 }
0x2970   :  { %v2161_v38 = vmul.f32 %v2160_v36, %v2075_v30 }
0x2996   :  { %v1883_v33 = vpop.permute.xlu0 %1882 }
0x2997   :  { %5215 = vmatmul.mubr.msk.f32.gmra.mxu0 %vm76_vm1, %v1883_v33 }
0x2998   :  { %5247 = vmatprep.mubr.msk.f32.mxu0 %vm5749_vm0, %v5748_v1 }
0x29de   :  { %v2164_v37 = vpop.permute.xlu1 %2163 }
0x29df   :  { %v2166_v54 = vmul.f32 %v2164_v37, %v2160_v36 }
0x29e1   :  { %2168 = vrot.lane.b32.xlu1 %v2166_v54, %s5751_s15 }
0x2a53   :  { %v2169_v39 = vpop.permute.xlu1 %2168 }
0x2a54   :  { %v2171_v40 = vadd.f32 %v2169_v39, %v2161_v38 }
0x2a56   :  { %5610 = vtanh.f32 %v2171_v40 }
0x2a57   :  { %v6278_v25 = vpop.f32.mrf.mxu0 }
0x2a59   :  { %v6280_v4 = vpop.f32.mrf.mxu0 }
0x2a63   :  { %v5611_v16 = vpop.eup %5610 }
0x2a64   :  { %2174 = vrot.lane.b32.xlu1 %v5611_v16, %s5750_s14 }
0x2ad6   :  { %v2175_v14 = vpop.permute.xlu1 %2174 }
0x2ad7   :  { %v2177_v57 = vmul.f32 %v2175_v14, %v2160_v36 }
0x2ad9   :  { %2179 = vrot.lane.b32.xlu1 %v2177_v57, %s5751_s15 }
0x2b4b   :  { %v6260_v41 = vpop.permute.xlu1 %2179 }
0x2b4c   :  { %5248 = vmatmul.mubr.msk.f32.vlgmr.msra.gmra.mxu0 %vm76_vm1, %v6260_v41 }
0x2b4d   :  { %5262 = vmatpush3.msra.mxu0 %v6181_v46  ;;  %5269 = vmatprep.mubr.msk.f32.mxu0 %vm5749_vm0, %v5748_v1 }
0x2b4e   :  { %5263 = vmatprep.subr.mxu0 %v5748_v1 }
0x2b4f   :  { %5264 = vmatpush3.msra.mxu0 %v6184_v47 }
0x2b50   :  { %5265 = vmatprep.subr.mxu0 %v5748_v1 }
0x2b51   :  { %5266 = vmatpush3.msra.mxu0 %v6188_v48 }
0x2b52   :  { %5267 = vmatprep.subr.mxu0 %v5748_v1 }
0x2b53   :  { %5268 = vmatpush3.msra.mxu0 %v6192_v49 }
0x2b54   :  { %5283 = vmatprep.subr.mxu0 %v5748_v1 }
0x2c0c   :  { %v2249_v51 = vpop.f32.mrf.mxu0 }
0x2c0d   :  { %v2253_v53 = vadd.f32 %v2249_v51, %v1963_v50 }
0x2c0e   :  { %v5249_v5 = vpop.f32.mrf.mxu0 }
0x2c0f   :  { %5612 = vtanh.f32 %v2253_v53  ;;  %v2758_v5 = vld [vmem:[#allocation3 + $0x78] sm:$0xff] }
0x2c1c   :  { %v5613_v56 = vpop.eup %5612 }
0x2c1d   :  { %2259 = vrot.lane.b32.xlu0 %v5613_v56, %s5750_s14  ;;  %v2255_v59 = vmul.f32 0.5, %v5613_v56 }
0x2c1f   :  { %v2256_v8 = vadd.f32 0.5, %v2255_v59 }
0x2c21   :  { %v2257_v62 = vmul.f32 %v2256_v8, %v2171_v40 }
0x2c8f   :  { %v2260_v60 = vpop.permute.xlu0 %2259 }
0x2c90   :  { %v2262_v61 = vmul.f32 %v2260_v60, %v2256_v8  ;;  %v2757_v60 = vld [vmem:[#allocation3 + $0x70] sm:$0xff] }
0x2c92   :  { %2264 = vrot.lane.b32.xlu1 %v2262_v61, %s5751_s15  ;;  %v2756_v61 = vld [vmem:[#allocation3 + $0x68] sm:$0xff] }
0x2d04   :  { %v2265_v55 = vpop.permute.xlu1 %2264 }
0x2d05   :  { %v2267_v63 = vadd.f32 %v2265_v55, %v2257_v62  ;;  %v2755_v62 = vld [vmem:[#allocation3 + $0x60] sm:$0xff] }
0x2d07   :  { %5614 = vtanh.f32 %v2267_v63 }
0x2d14   :  { %v5615_v0 = vpop.eup %5614 }
0x2d15   :  { %2270 = vrot.lane.b32.xlu0 %v5615_v0, %s5750_s14 }
0x2d87   :  { %v2271_v35 = vpop.permute.xlu0 %2270 }
0x2d88   :  { %v2273_v58 = vmul.f32 %v2271_v35, %v2256_v8 }
0x2d8a   :  { %2275 = vrot.lane.b32.xlu1 %v2273_v58, %s5751_s15 }
0x2dfc   :  { %v6287_v2 = vpop.permute.xlu1 %2275 }
0x2dfd   :  { %5259 = vmatmul.mubr.msk.f32.vlgmr.msra.gmra.mxu1 %vm76_vm1, %v6287_v2 }
0x2dfe   :  { %5273 = vmatpush3.msra.mxu1 %v6181_v46  ;;  %5280 = vmatprep.mubr.msk.f32.mxu1 %vm5749_vm0, %v5748_v1 }
0x2dff   :  { %5274 = vmatprep.subr.mxu1 %v5748_v1 }
0x2e00   :  { %5275 = vmatpush3.msra.mxu1 %v6184_v47 }
0x2e01   :  { %5276 = vmatprep.subr.mxu1 %v5748_v1 }
0x2e02   :  { %5277 = vmatpush3.msra.mxu1 %v6188_v48 }
0x2e03   :  { %5278 = vmatprep.subr.mxu1 %v5748_v1 }
0x2e04   :  { %5279 = vmatpush3.msra.mxu1 %v6192_v49 }
0x2e05   :  { %5294 = vmatprep.subr.mxu1 %v5748_v1 }
0x2ebd   :  { %v2345_v6 = vpop.f32.mrf.mxu1 }
0x2ebe   :  { %v2349_v7 = vadd.f32 %v2345_v6, %v1968_v3 }
0x2ebf   :  { %v5260_v30 = vpop.f32.mrf.mxu1 }
0x2ec0   :  { %5616 = vtanh.f32 %v2349_v7 }
0x2ecd   :  { %v5617_v9 = vpop.eup %5616 }
0x2ece   :  { %2355 = vrot.lane.b32.xlu0 %v5617_v9, %s5750_s14  ;;  %v2351_v11 = vmul.f32 0.5, %v5617_v9  ;;  %v6362_v9 = vld [vmem:[#allocation5 + $0x78] sm:$0xff] }
0x2ed0   :  { %v2352_v12 = vadd.f32 0.5, %v2351_v11  ;;  %v6365_v11 = vld [vmem:[#allocation5 + $0x70] sm:$0xff] }
0x2ed2   :  { %v2353_v13 = vmul.f32 %v2352_v12, %v2267_v63 }
0x2f40   :  { %v2356_v52 = vpop.permute.xlu0 %2355 }
0x2f41   :  { %v2358_v21 = vmul.f32 %v2356_v52, %v2352_v12  ;;  %v6373_v52 = vld [vmem:[#allocation5 + $0x60] sm:$0xff] }
0x2f43   :  { %2360 = vrot.lane.b32.xlu1 %v2358_v21, %s5751_s15 }
0x2fb5   :  { %v2361_v15 = vpop.permute.xlu1 %2360 }
0x2fb6   :  { %v2363_v17 = vadd.f32 %v2361_v15, %v2353_v13 }
0x2fb8   :  { %5618 = vtanh.f32 %v2363_v17 }
0x2fc5   :  { %v5619_v22 = vpop.eup %5618 }
0x2fc6   :  { %2366 = vrot.lane.b32.xlu0 %v5619_v22, %s5750_s14 }
0x3038   :  { %v2367_v20 = vpop.permute.xlu0 %2366 }
0x3039   :  { %v2369_v26 = vmul.f32 %v2367_v20, %v2352_v12  ;;  %v6369_v12 = vld [vmem:[#allocation5 + $0x68] sm:$0xff] }
0x303b   :  { %2371 = vrot.lane.b32.xlu1 %v2369_v26, %s5751_s15 }
0x30ad   :  { %v6306_v23 = vpop.permute.xlu1 %2371 }
0x30ae   :  { %5270 = vmatmul.mubr.msk.f32.vlgmr.msra.gmra.mxu0 %vm76_vm1, %v6306_v23 }
0x30af   :  { %5284 = vmatpush3.msra.mxu0 %v6181_v46  ;;  %5291 = vmatprep.mubr.msk.f32.mxu0 %vm5749_vm0, %v5748_v1 }
0x30b0   :  { %5285 = vmatprep.subr.mxu0 %v5748_v1 }
0x30b1   :  { %5286 = vmatpush3.msra.mxu0 %v6184_v47 }
0x30b2   :  { %5287 = vmatprep.subr.mxu0 %v5748_v1 }
0x30b3   :  { %5288 = vmatpush3.msra.mxu0 %v6188_v48 }
0x30b4   :  { %5289 = vmatprep.subr.mxu0 %v5748_v1 }
0x30b5   :  { %5290 = vmatpush3.msra.mxu0 %v6192_v49 }
0x30b6   :  { %5305 = vmatprep.subr.mxu0 %v2758_v5 }
0x316e   :  { %v2441_v24 = vpop.f32.mrf.mxu0 }
0x316f   :  { %v2445_v28 = vadd.f32 %v2441_v24, %v1973_v27  ;;  %v6407_v24 = vld [vmem:[%s6730_s3 + $0x3] ss:$0 sm:$0xff] }
0x3170   :  { %v5271_v29 = vpop.f32.mrf.mxu0 }
0x3171   :  { %5620 = vtanh.f32 %v2445_v28 }
0x317e   :  { %v5621_v19 = vpop.eup %5620 }
0x317f   :  { %2451 = vrot.lane.b32.xlu0 %v5621_v19, %s5750_s14  ;;  %v2447_v31 = vmul.f32 0.5, %v5621_v19 }
0x3181   :  { %v2448_v32 = vadd.f32 0.5, %v2447_v31 }
0x3183   :  { %v2449_v36 = vmul.f32 %v2448_v32, %v2363_v17  ;;  %v1988_v17 = vadd.f32 %v6278_v25, %v6226_v10 }
0x31f1   :  { %v2452_v33 = vpop.permute.xlu0 %2451 }
0x31f2   :  { %v2454_v34 = vmul.f32 %v2452_v33, %v2448_v32 }
0x31f4   :  { %2456 = vrot.lane.b32.xlu1 %v2454_v34, %s5751_s15 }
0x3266   :  { %v2457_v37 = vpop.permute.xlu1 %2456 }
0x3267   :  { %v2459_v54 = vadd.f32 %v2457_v37, %v2449_v36 }
0x3269   :  { %5622 = vtanh.f32 %v2459_v54 }
0x3276   :  { %v5623_v38 = vpop.eup %5622 }
0x3277   :  { %2462 = vrot.lane.b32.xlu0 %v5623_v38, %s5750_s14 }
0x32e9   :  { %v2463_v39 = vpop.permute.xlu0 %2462 }
0x32ea   :  { %v2465_v40 = vmul.f32 %v2463_v39, %v2448_v32 }
0x32ec   :  { %2467 = vrot.lane.b32.xlu1 %v2465_v40, %s5751_s15 }
0x335e   :  { %v2468_v16 = vpop.permute.xlu1 %2467 }
0x335f   :  { %5281 = vmatmul.mubr.msk.f32.vlgmr.msra.gmra.mxu1 %vm76_vm1, %v2468_v16 }
0x3360   :  { %5295 = vmatpush3.msra.mxu1 %v6181_v46  ;;  %5302 = vmatprep.mubr.msk.f32.mxu1 %vm5749_vm0, %v5748_v1  ;;  %v1978_v46 = vadd.f32 %v6274_v44, %v6226_v10 }
0x3361   :  { %5296 = vmatprep.subr.mxu1 %v5748_v1 }
0x3362   :  { %5297 = vmatpush3.msra.mxu1 %v6184_v47 }
0x3363   :  { %5298 = vmatprep.subr.mxu1 %v5748_v1 }
0x3364   :  { %5299 = vmatpush3.msra.mxu1 %v6188_v48 }
0x3365   :  { %5300 = vmatprep.subr.mxu1 %v5748_v1 }
0x3366   :  { %5301 = vmatpush3.msra.mxu1 %v6192_v49 }
0x3367   :  { %5325 = vmatprep.subr.mxu1 %v5748_v1 }
0x341f   :  { %v2537_v14 = vpop.f32.mrf.mxu1 }
0x3420   :  { %v2541_v57 = vadd.f32 %v2537_v14, %v1978_v46 }
0x3421   :  { %v5282_v42 = vpop.f32.mrf.mxu1 }
0x3422   :  { %5624 = vtanh.f32 %v2541_v57 }
0x342f   :  { %v5625_v43 = vpop.eup %5624 }
0x3430   :  { %2547 = vrot.lane.b32.xlu0 %v5625_v43, %s5750_s14  ;;  %v2543_v47 = vmul.f32 0.5, %v5625_v43 }
0x3432   :  { %v2544_v45 = vadd.f32 0.5, %v2543_v47 }
0x3434   :  { %v2545_v51 = vmul.f32 %v2544_v45, %v2459_v54 }
0x34a2   :  { %v2548_v50 = vpop.permute.xlu0 %2547 }
0x34a3   :  { %v2550_v48 = vmul.f32 %v2548_v50, %v2544_v45 }
0x34a5   :  { %2552 = vrot.lane.b32.xlu1 %v2550_v48, %s5751_s15 }
0x3517   :  { %v2553_v49 = vpop.permute.xlu1 %2552 }
0x3518   :  { %v2555_v53 = vadd.f32 %v2553_v49, %v2545_v51 }
0x351a   :  { %5626 = vtanh.f32 %v2555_v53 }
0x3527   :  { %v5627_v44 = vpop.eup %5626 }
0x3528   :  { %2558 = vrot.lane.b32.xlu0 %v5627_v44, %s5750_s14 }
0x359a   :  { %v2559_v56 = vpop.permute.xlu0 %2558 }
0x359b   :  { %v2561_v59 = vmul.f32 %v2559_v56, %v2544_v45 }
0x359d   :  { %2563 = vrot.lane.b32.xlu1 %v2561_v59, %s5751_s15 }
0x360f   :  { %v2564_v8 = vpop.permute.xlu1 %2563 }
0x3610   :  { %5292 = vmatmul.mubr.msk.f32.vlgmr.msra.gmra.mxu0 %vm76_vm1, %v2564_v8 }
0x3611   :  { %5306 = vmatpush3.msra.mxu0 %v2758_v5  ;;  %5313 = vmatprep.mubr.msk.f32.mxu0 %vm76_vm1, %v6235_v18  ;;  %v1983_v18 = vadd.f32 %v6226_v10, %v6280_v4 }
0x3612   :  { %5307 = vmatprep.subr.mxu0 %v2757_v60 }
0x3613   :  { %5308 = vmatpush3.msra.mxu0 %v2757_v60 }
0x3614   :  { %5309 = vmatprep.subr.mxu0 %v2756_v61 }
0x3615   :  { %5310 = vmatpush3.msra.mxu0 %v2756_v61 }
0x3616   :  { %5311 = vmatprep.subr.mxu0 %v2755_v62 }
0x3617   :  { %5312 = vmatpush3.msra.mxu0 %v2755_v62 }
0x3618   :  { %5314 = vmatmul.mubr.msk.f32.vlgmr.msra.gmra.mxu0 %vm76_vm1, %v6260_v41  ;;  %5347 = vmatprep.subr.mxu0 %v5748_v1 }
0x3619   :  { %5316 = vmatprep.mubr.msk.f32.mxu0 %vm76_vm1, %v6287_v2  ;;  %5348 = vmatpush3.msra.mxu0 %v6362_v9 }
0x361a   :  { %5349 = vmatprep.subr.mxu0 %v5748_v1 }
0x361b   :  { %5350 = vmatpush3.msra.mxu0 %v6365_v11 }
0x361c   :  { %5317 = vmatmul.mubr.msk.f32.gmra.mxu0 %vm76_vm1, %v6306_v23  ;;  %5351 = vmatprep.subr.mxu0 %v5748_v1 }
0x361d   :  { %5319 = vmatprep.mubr.msk.f32.mxu0 %vm76_vm1, %v2468_v16  ;;  %5352 = vmatpush3.msra.mxu0 %v6369_v12 }
0x361e   :  { %5353 = vmatprep.subr.mxu0 %v5748_v1 }
0x361f   :  { %5354 = vmatpush3.msra.mxu0 %v6373_v52 }
0x3620   :  { %5320 = vmatmul.mubr.msk.f32.gmra.mxu0 %vm76_vm1, %v2564_v8  ;;  %5369 = vmatprep.subr.mxu0 %v5748_v1 }
0x36d0   :  { %v2633_v55 = vpop.f32.mrf.mxu0 }
0x36d1   :  { %v2637_v63 = vadd.f32 %v2633_v55, %v1983_v18 }
0x36d2   :  { %v5293_v0 = vpop.f32.mrf.mxu0 }
0x36d3   :  { %5628 = vtanh.f32 %v2637_v63 }
0x36d8   :  { %v5315_v22 = vpop.f32.mrf.mxu0 }
0x36da   :  { %v2843_v27 = vpop.f32.mrf.mxu0 }
0x36db   :  { %v2844_v28 = vadd.f32 %v6407_v24, %v2843_v27 }
0x36e0   :  { %v5629_v41 = vpop.eup %5628 }
0x36e1   :  { %2643 = vrot.lane.b32.xlu0 %v5629_v41, %s5750_s14  ;;  %v2639_v35 = vmul.f32 0.5, %v5629_v41 }
0x36e3   :  { %v2640_v58 = vadd.f32 0.5, %v2639_v35 }
0x36e5   :  { %v2641_v6 = vmul.f32 %v2640_v58, %v2555_v53  ;;  %v2849_v53 = vadd.f32 %v5315_v22, %v6407_v24 }
0x3753   :  { %v2644_v2 = vpop.permute.xlu0 %2643 }
0x3754   :  { %v2646_v3 = vmul.f32 %v2644_v2, %v2640_v58 }
0x3756   :  { %2648 = vrot.lane.b32.xlu1 %v2646_v3, %s5751_s15  ;;  %v5318_v3 = vpop.f32.mrf.mxu0 }
0x37c8   :  { %v2649_v7 = vpop.permute.xlu1 %2648 }
0x37c9   :  { %v6358_v30 = vadd.f32 %v2649_v7, %v2641_v6  ;;  %v2853_v6 = vpop.f32.mrf.mxu0 }
0x37cb   :  { %5630 = vtanh.f32 %v6358_v30  ;;  %v6455_v7 = vpop.f32.mrf.mxu0 }
0x37d8   :  { %v5631_v4 = vpop.eup %5630 }
0x37d9   :  { %2654 = vrot.lane.b32.xlu0 %v5631_v4, %s5750_s14 }
0x384b   :  { %v2655_v21 = vpop.permute.xlu0 %2654 }
0x384c   :  { %v2657_v13 = vmul.f32 %v2655_v21, %v2640_v58 }
0x384e   :  { %2659 = vrot.lane.b32.xlu1 %v2657_v13, %s5751_s15  ;;  %v2854_v13 = vadd.f32 %v6407_v24, %v2853_v6 }
0x38c0   :  { %v2660_v15 = vpop.permute.xlu1 %2659 }
0x38c1   :  { %5303 = vmatmul.mubr.msk.f32.vlgmr.msra.gmra.mxu1 %vm76_vm1, %v2660_v15  ;;  %5322 = vmatprep.mubr.msk.f32.mxu0 %vm76_vm1, %v2660_v15 }
0x38c2   :  { %5326 = vmatpush3.msra.mxu1 %v6362_v9  ;;  %5333 = vmatprep.mubr.msk.f32.mxu1 %vm5749_vm0, %v5748_v1 }
0x38c3   :  { %5327 = vmatprep.subr.mxu1 %v5748_v1 }
0x38c4   :  { %5328 = vmatpush3.msra.mxu1 %v6365_v11 }
0x38c5   :  { %5329 = vmatprep.subr.mxu1 %v5748_v1 }
0x38c6   :  { %5330 = vmatpush3.msra.mxu1 %v6369_v12 }
0x38c7   :  { %5331 = vmatprep.subr.mxu1 %v5748_v1 }
0x38c8   :  { %5332 = vmatpush3.msra.mxu1 %v6373_v52 }
0x38c9   :  { %5334 = vmatmul.mubr.f32.vlgmr.msra.gmra.mxu1 %v5748_v1  ;;  %5336 = vmatprep.subr.mxu1 %v5748_v1 }
0x38ca   :  { %5337 = vmatpush3.msra.mxu1 %v6362_v9  ;;  %5344 = vmatprep.mubr.msk.f32.mxu1 %vm5749_vm0, %v5748_v1 }
0x38cb   :  { %5338 = vmatprep.subr.mxu1 %v5748_v1 }
0x38cc   :  { %5339 = vmatpush3.msra.mxu1 %v6365_v11 }
0x38cd   :  { %5340 = vmatprep.subr.mxu1 %v5748_v1 }
0x38ce   :  { %5341 = vmatpush3.msra.mxu1 %v6369_v12 }
0x38cf   :  { %5342 = vmatprep.subr.mxu1 %v5748_v1 }
0x38d0   :  { %5343 = vmatpush3.msra.mxu1 %v6373_v52 }
0x38d1   :  { %5358 = vmatprep.subr.mxu1 %v5748_v1 }
0x3981   :  { %v2729_v20 = vpop.f32.mrf.mxu1 }
0x3982   :  { %v2733_v26 = vadd.f32 %v2729_v20, %v1988_v17 }
0x3983   :  { %v5304_v23 = vpop.f32.mrf.mxu1 }
0x3989   :  { %v2948_v29 = vpop.f32.mrf.mxu1 }
0x398a   :  { %v2952_v19 = vadd.f32 %v2948_v29, %v2844_v28 }
0x398b   :  { %v5335_v31 = vpop.f32.mrf.mxu1 }
0x398c   :  { %5632 = vtanh.f32 %v2952_v19 }
0x3999   :  { %v5633_v32 = vpop.eup %5632 }
0x399a   :  { %2958 = vrot.lane.b32.xlu0 %v5633_v32, %s5750_s14  ;;  %v2954_v10 = vmul.f32 0.5, %v5633_v32 }
0x399c   :  { %v2955_v25 = vadd.f32 0.5, %v2954_v10 }
0x399e   :  { %v2956_v36 = vmul.f32 0.0, %v2955_v25 }
0x3a0c   :  { %v2959_v33 = vpop.permute.xlu0 %2958 }
0x3a0d   :  { %v2961_v34 = vmul.f32 %v2959_v33, %v2955_v25 }
0x3a0f   :  { %2963 = vrot.lane.b32.xlu1 %v2961_v34, %s5751_s15  ;;  %v2859_v34 = vadd.f32 %v5318_v3, %v6407_v24 }
0x3a81   :  { %v2964_v37 = vpop.permute.xlu1 %2963 }
0x3a82   :  { %v2966_v54 = vadd.f32 %v2964_v37, %v2956_v36 }
0x3a84   :  { %5634 = vtanh.f32 %v2966_v54 }
0x3a85   :  { %5636 = vtanh.f32 %v2733_v26 }
0x3a91   :  { %v5635_v38 = vpop.eup %5634 }
0x3a92   :  { %2969 = vrot.lane.b32.xlu0 %v5635_v38, %s5750_s14  ;;  %v5637_v39 = vpop.eup %5636 }
0x3a93   :  { %v2735_v40 = vmul.f32 0.5, %v5637_v39 }
0x3a95   :  { %v2736_v14 = vadd.f32 0.5, %v2735_v40 }
0x3a96   :  { %2739 = vrot.lane.b32.xlu0 %v5637_v39, %s5750_s14 }
0x3a97   :  { %v2737_v47 = vmul.f32 %v2736_v14, %v6358_v30  ;;  %v6457_v30 = vpop.f32.mrf.mxu0 }
0x3b04   :  { %v2970_v16 = vpop.permute.xlu0 %2969 }
0x3b05   :  { %v2972_v46 = vmul.f32 %v2970_v16, %v2955_v25 }
0x3b07   :  { %2974 = vrot.lane.b32.xlu1 %v2972_v46, %s5751_s15 }
0x3b08   :  { %v2740_v57 = vpop.permute.xlu0 %2739 }
0x3b09   :  { %v2742_v42 = vmul.f32 %v2740_v57, %v2736_v14 }
0x3b0b   :  { %2744 = vrot.lane.b32.xlu0 %v2742_v42, %s5751_s15 }
0x3b79   :  { %v6416_v43 = vpop.permute.xlu1 %2974 }
0x3b7a   :  { %5345 = vmatmul.mubr.msk.f32.vlgmr.msra.gmra.mxu1 %vm76_vm1, %v6416_v43 }
0x3b7b   :  { %5359 = vmatpush3.msra.mxu1 %v6362_v9  ;;  %5366 = vmatprep.mubr.msk.f32.mxu1 %vm5749_vm0, %v5748_v1 }
0x3b7c   :  { %5360 = vmatprep.subr.mxu1 %v5748_v1 }
0x3b7d   :  { %v2745_v45 = vpop.permute.xlu0 %2744  ;;  %5361 = vmatpush3.msra.mxu1 %v6365_v11 }
0x3b7e   :  { %v2747_v50 = vadd.f32 %v2745_v45, %v2737_v47  ;;  %5362 = vmatprep.subr.mxu1 %v5748_v1 }
0x3b7f   :  { %5363 = vmatpush3.msra.mxu1 %v6369_v12 }
0x3b80   :  { %5638 = vtanh.f32 %v2747_v50  ;;  %5364 = vmatprep.subr.mxu1 %v5748_v1 }
0x3b81   :  { %5365 = vmatpush3.msra.mxu1 %v6373_v52 }
0x3b82   :  { %5380 = vmatprep.subr.mxu1 %v5748_v1 }
0x3b8d   :  { %v5639_v48 = vpop.eup %5638 }
0x3b8e   :  { %2750 = vrot.lane.b32.xlu0 %v5639_v48, %s5750_s14 }
0x3c00   :  { %v2751_v51 = vpop.permute.xlu0 %2750 }
0x3c01   :  { %v2753_v49 = vmul.f32 %v2751_v51, %v2736_v14  ;;  %v2864_v51 = vadd.f32 %v6407_v24, %v6457_v30 }
0x3c03   :  { %2773 = vrot.lane.b32.xlu0 %v2753_v49, %s5751_s15 }
0x3c3a   :  { %v3044_v5 = vpop.f32.mrf.mxu1 }
0x3c3b   :  { %v3048_v44 = vadd.f32 %v3044_v5, %v2849_v53 }
0x3c3c   :  { %v5346_v56 = vpop.f32.mrf.mxu1 }
0x3c3d   :  { %5640 = vtanh.f32 %v3048_v44 }
0x3c4a   :  { %v5641_v59 = vpop.eup %5640 }
0x3c4b   :  { %3054 = vrot.lane.b32.xlu1 %v5641_v59, %s5750_s14  ;;  %v3050_v60 = vmul.f32 0.5, %v5641_v59 }
0x3c4d   :  { %v3051_v61 = vadd.f32 0.5, %v3050_v60 }
0x3c4f   :  { %v3052_v55 = vmul.f32 %v3051_v61, %v2966_v54 }
0x3c75   :  { %v2774_v8 = vpop.permute.xlu0 %2773 }
0x3c76   :  { %5323 = vmatmul.mubr.msk.f32.gmra.mxu0 %vm76_vm1, %v2774_v8 }
0x3c77   :  { %5355 = vmatprep.mubr.msk.f32.mxu0 %vm5749_vm0, %v5748_v1 }
0x3cbd   :  { %v3055_v62 = vpop.permute.xlu1 %3054 }
0x3cbe   :  { %v3057_v18 = vmul.f32 %v3055_v62, %v3051_v61 }
0x3cc0   :  { %3059 = vrot.lane.b32.xlu1 %v3057_v18, %s5751_s15 }
0x3d32   :  { %v3060_v63 = vpop.permute.xlu1 %3059 }
0x3d33   :  { %v3062_v0 = vadd.f32 %v3060_v63, %v3052_v55 }
0x3d35   :  { %5642 = vtanh.f32 %v3062_v0 }
0x3d36   :  { %v6459_v4 = vpop.f32.mrf.mxu0 }
0x3d38   :  { %v6461_v21 = vpop.f32.mrf.mxu0 }
0x3d42   :  { %v5643_v41 = vpop.eup %5642 }
0x3d43   :  { %3065 = vrot.lane.b32.xlu1 %v5643_v41, %s5750_s14 }
0x3db5   :  { %v3066_v35 = vpop.permute.xlu1 %3065 }
0x3db6   :  { %v3068_v58 = vmul.f32 %v3066_v35, %v3051_v61 }
0x3db8   :  { %3070 = vrot.lane.b32.xlu1 %v3068_v58, %s5751_s15 }
0x3e2a   :  { %v6441_v2 = vpop.permute.xlu1 %3070 }
0x3e2b   :  { %5356 = vmatmul.mubr.msk.f32.vlgmr.msra.gmra.mxu0 %vm76_vm1, %v6441_v2 }
0x3e2c   :  { %5370 = vmatpush3.msra.mxu0 %v6362_v9  ;;  %5377 = vmatprep.mubr.msk.f32.mxu0 %vm5749_vm0, %v5748_v1 }
0x3e2d   :  { %5371 = vmatprep.subr.mxu0 %v5748_v1 }
0x3e2e   :  { %5372 = vmatpush3.msra.mxu0 %v6365_v11 }
0x3e2f   :  { %5373 = vmatprep.subr.mxu0 %v5748_v1 }
0x3e30   :  { %5374 = vmatpush3.msra.mxu0 %v6369_v12 }
0x3e31   :  { %5375 = vmatprep.subr.mxu0 %v5748_v1 }
0x3e32   :  { %5376 = vmatpush3.msra.mxu0 %v6373_v52 }
0x3e33   :  { %5391 = vmatprep.subr.mxu0 %v5748_v1 }
0x3eeb   :  { %v3140_v15 = vpop.f32.mrf.mxu0 }
0x3eec   :  { %v3144_v17 = vadd.f32 %v3140_v15, %v2854_v13 }
0x3eed   :  { %v5357_v22 = vpop.f32.mrf.mxu0 }
0x3eee   :  { %5644 = vtanh.f32 %v3144_v17  ;;  %v3649_v22 = vld [vmem:[#allocation3 + $0x98] sm:$0xff] }
0x3efb   :  { %v5645_v20 = vpop.eup %5644 }
0x3efc   :  { %3150 = vrot.lane.b32.xlu0 %v5645_v20, %s5750_s14  ;;  %v3146_v26 = vmul.f32 0.5, %v5645_v20 }
0x3efe   :  { %v3147_v23 = vadd.f32 0.5, %v3146_v26 }
0x3f00   :  { %v3148_v29 = vmul.f32 %v3147_v23, %v3062_v0 }
0x3f6e   :  { %v3151_v27 = vpop.permute.xlu0 %3150 }
0x3f6f   :  { %v3153_v28 = vmul.f32 %v3151_v27, %v3147_v23  ;;  %v3648_v27 = vld [vmem:[#allocation3 + $0x90] sm:$0xff] }
0x3f71   :  { %3155 = vrot.lane.b32.xlu1 %v3153_v28, %s5751_s15  ;;  %v3647_v28 = vld [vmem:[#allocation3 + $0x88] sm:$0xff] }
0x3fe3   :  { %v3156_v19 = vpop.permute.xlu1 %3155 }
0x3fe4   :  { %v3158_v31 = vadd.f32 %v3156_v19, %v3148_v29  ;;  %v3646_v29 = vld [vmem:[#allocation3 + $0x80] sm:$0xff] }
0x3fe6   :  { %5646 = vtanh.f32 %v3158_v31 }
0x3ff3   :  { %v5647_v32 = vpop.eup %5646 }
0x3ff4   :  { %3161 = vrot.lane.b32.xlu0 %v5647_v32, %s5750_s14 }
0x4066   :  { %v3162_v10 = vpop.permute.xlu0 %3161 }
0x4067   :  { %v3164_v25 = vmul.f32 %v3162_v10, %v3147_v23 }
0x4069   :  { %3166 = vrot.lane.b32.xlu1 %v3164_v25, %s5751_s15 }
0x40db   :  { %v6468_v33 = vpop.permute.xlu1 %3166 }
0x40dc   :  { %5367 = vmatmul.mubr.msk.f32.vlgmr.msra.gmra.mxu1 %vm76_vm1, %v6468_v33 }
0x40dd   :  { %5381 = vmatpush3.msra.mxu1 %v6362_v9  ;;  %5388 = vmatprep.mubr.msk.f32.mxu1 %vm5749_vm0, %v5748_v1 }
0x40de   :  { %5382 = vmatprep.subr.mxu1 %v5748_v1 }
0x40df   :  { %5383 = vmatpush3.msra.mxu1 %v6365_v11 }
0x40e0   :  { %5384 = vmatprep.subr.mxu1 %v5748_v1 }
0x40e1   :  { %5385 = vmatpush3.msra.mxu1 %v6369_v12 }
0x40e2   :  { %5386 = vmatprep.subr.mxu1 %v5748_v1 }
0x40e3   :  { %5387 = vmatpush3.msra.mxu1 %v6373_v52 }
0x40e4   :  { %5402 = vmatprep.subr.mxu1 %v5748_v1 }
0x419c   :  { %v3236_v36 = vpop.f32.mrf.mxu1 }
0x419d   :  { %v3240_v37 = vadd.f32 %v3236_v36, %v2859_v34 }
0x419e   :  { %v5368_v54 = vpop.f32.mrf.mxu1 }
0x419f   :  { %5648 = vtanh.f32 %v3240_v37 }
0x41ac   :  { %v5649_v38 = vpop.eup %5648 }
0x41ad   :  { %3246 = vrot.lane.b32.xlu0 %v5649_v38, %s5750_s14  ;;  %v3242_v39 = vmul.f32 0.5, %v5649_v38  ;;  %v6543_v38 = vld [vmem:[#allocation5 + $0x98] sm:$0xff] }
0x41af   :  { %v3243_v40 = vadd.f32 0.5, %v3242_v39  ;;  %v6546_v39 = vld [vmem:[#allocation5 + $0x90] sm:$0xff] }
0x41b1   :  { %v3244_v14 = vmul.f32 %v3243_v40, %v3158_v31 }
0x421f   :  { %v3247_v16 = vpop.permute.xlu0 %3246 }
0x4220   :  { %v3249_v46 = vmul.f32 %v3247_v16, %v3243_v40  ;;  %v6554_v16 = vld [vmem:[#allocation5 + $0x80] sm:$0xff] }
0x4222   :  { %3251 = vrot.lane.b32.xlu1 %v3249_v46, %s5751_s15 }
0x4294   :  { %v3252_v57 = vpop.permute.xlu1 %3251 }
0x4295   :  { %v3254_v42 = vadd.f32 %v3252_v57, %v3244_v14 }
0x4297   :  { %5650 = vtanh.f32 %v3254_v42 }
0x42a4   :  { %v5651_v47 = vpop.eup %5650 }
0x42a5   :  { %3257 = vrot.lane.b32.xlu0 %v5651_v47, %s5750_s14 }
0x4317   :  { %v3258_v45 = vpop.permute.xlu0 %3257 }
0x4318   :  { %v3260_v50 = vmul.f32 %v3258_v45, %v3243_v40  ;;  %v6550_v40 = vld [vmem:[#allocation5 + $0x88] sm:$0xff] }
0x431a   :  { %3262 = vrot.lane.b32.xlu1 %v3260_v50, %s5751_s15 }
0x438c   :  { %v6487_v48 = vpop.permute.xlu1 %3262 }
0x438d   :  { %5378 = vmatmul.mubr.msk.f32.vlgmr.msra.gmra.mxu0 %vm76_vm1, %v6487_v48 }
0x438e   :  { %5392 = vmatpush3.msra.mxu0 %v6362_v9  ;;  %5399 = vmatprep.mubr.msk.f32.mxu0 %vm5749_vm0, %v5748_v1 }
0x438f   :  { %5393 = vmatprep.subr.mxu0 %v5748_v1 }
0x4390   :  { %5394 = vmatpush3.msra.mxu0 %v6365_v11 }
0x4391   :  { %5395 = vmatprep.subr.mxu0 %v5748_v1 }
0x4392   :  { %5396 = vmatpush3.msra.mxu0 %v6369_v12 }
0x4393   :  { %5397 = vmatprep.subr.mxu0 %v5748_v1 }
0x4394   :  { %5398 = vmatpush3.msra.mxu0 %v6373_v52 }
0x4395   :  { %5413 = vmatprep.subr.mxu0 %v3649_v22 }
0x444d   :  { %v3332_v49 = vpop.f32.mrf.mxu0 }
0x444e   :  { %v3336_v53 = vadd.f32 %v3332_v49, %v2864_v51  ;;  %v6588_v49 = vld [vmem:[%s6730_s3 + $0x4] ss:$0 sm:$0xff] }
0x444f   :  { %v5379_v5 = vpop.f32.mrf.mxu0 }
0x4450   :  { %5652 = vtanh.f32 %v3336_v53 }
0x445d   :  { %v5653_v44 = vpop.eup %5652 }
0x445e   :  { %3342 = vrot.lane.b32.xlu0 %v5653_v44, %s5750_s14  ;;  %v3338_v56 = vmul.f32 0.5, %v5653_v44 }
0x4460   :  { %v3339_v59 = vadd.f32 0.5, %v3338_v56 }
0x4462   :  { %v3340_v61 = vmul.f32 %v3339_v59, %v3254_v42  ;;  %v2879_v42 = vadd.f32 %v6459_v4, %v6407_v24 }
0x44d0   :  { %v3343_v8 = vpop.permute.xlu0 %3342 }
0x44d1   :  { %v3345_v60 = vmul.f32 %v3343_v8, %v3339_v59 }
0x44d3   :  { %3347 = vrot.lane.b32.xlu1 %v3345_v60, %s5751_s15 }
0x4545   :  { %v3348_v62 = vpop.permute.xlu1 %3347 }
0x4546   :  { %v3350_v18 = vadd.f32 %v3348_v62, %v3340_v61 }
0x4548   :  { %5654 = vtanh.f32 %v3350_v18 }
0x4555   :  { %v5655_v55 = vpop.eup %5654 }
0x4556   :  { %3353 = vrot.lane.b32.xlu0 %v5655_v55, %s5750_s14 }
0x45c8   :  { %v3354_v63 = vpop.permute.xlu0 %3353 }
0x45c9   :  { %v3356_v0 = vmul.f32 %v3354_v63, %v3339_v59 }
0x45cb   :  { %3358 = vrot.lane.b32.xlu1 %v3356_v0, %s5751_s15 }
0x463d   :  { %v3359_v41 = vpop.permute.xlu1 %3358 }
0x463e   :  { %5389 = vmatmul.mubr.msk.f32.vlgmr.msra.gmra.mxu1 %vm76_vm1, %v3359_v41 }
0x463f   :  { %5403 = vmatpush3.msra.mxu1 %v6362_v9  ;;  %5410 = vmatprep.mubr.msk.f32.mxu1 %vm5749_vm0, %v5748_v1  ;;  %v2869_v9 = vadd.f32 %v6455_v7, %v6407_v24 }
0x4640   :  { %5404 = vmatprep.subr.mxu1 %v5748_v1 }
0x4641   :  { %5405 = vmatpush3.msra.mxu1 %v6365_v11 }
0x4642   :  { %5406 = vmatprep.subr.mxu1 %v5748_v1 }
0x4643   :  { %5407 = vmatpush3.msra.mxu1 %v6369_v12 }
0x4644   :  { %5408 = vmatprep.subr.mxu1 %v5748_v1 }
0x4645   :  { %5409 = vmatpush3.msra.mxu1 %v6373_v52 }
0x4646   :  { %5433 = vmatprep.subr.mxu1 %v5748_v1 }
0x46fe   :  { %v3428_v35 = vpop.f32.mrf.mxu1 }
0x46ff   :  { %v3432_v58 = vadd.f32 %v3428_v35, %v2869_v9 }
0x4700   :  { %v5390_v3 = vpop.f32.mrf.mxu1 }
0x4701   :  { %5656 = vtanh.f32 %v3432_v58 }
0x470e   :  { %v5657_v6 = vpop.eup %5656 }
0x470f   :  { %3438 = vrot.lane.b32.xlu0 %v5657_v6, %s5750_s14  ;;  %v3434_v11 = vmul.f32 0.5, %v5657_v6 }
0x4711   :  { %v3435_v30 = vadd.f32 0.5, %v3434_v11 }
0x4713   :  { %v3436_v15 = vmul.f32 %v3435_v30, %v3350_v18 }
0x4781   :  { %v3439_v13 = vpop.permute.xlu0 %3438 }
0x4782   :  { %v3441_v12 = vmul.f32 %v3439_v13, %v3435_v30 }
0x4784   :  { %3443 = vrot.lane.b32.xlu1 %v3441_v12, %s5751_s15 }
0x47f6   :  { %v3444_v52 = vpop.permute.xlu1 %3443 }
0x47f7   :  { %v3446_v17 = vadd.f32 %v3444_v52, %v3436_v15 }
0x47f9   :  { %5658 = vtanh.f32 %v3446_v17 }
0x4806   :  { %v5659_v7 = vpop.eup %5658 }
0x4807   :  { %3449 = vrot.lane.b32.xlu0 %v5659_v7, %s5750_s14 }
0x4879   :  { %v3450_v20 = vpop.permute.xlu0 %3449 }
0x487a   :  { %v3452_v26 = vmul.f32 %v3450_v20, %v3435_v30 }
0x487c   :  { %3454 = vrot.lane.b32.xlu1 %v3452_v26, %s5751_s15 }
0x48ee   :  { %v3455_v23 = vpop.permute.xlu1 %3454 }
0x48ef   :  { %5400 = vmatmul.mubr.msk.f32.vlgmr.msra.gmra.mxu0 %vm76_vm1, %v3455_v23 }
0x48f0   :  { %5414 = vmatpush3.msra.mxu0 %v3649_v22  ;;  %5421 = vmatprep.mubr.msk.f32.mxu0 %vm76_vm1, %v6416_v43  ;;  %v2874_v43 = vadd.f32 %v6407_v24, %v6461_v21 }
0x48f1   :  { %5415 = vmatprep.subr.mxu0 %v3648_v27 }
0x48f2   :  { %5416 = vmatpush3.msra.mxu0 %v3648_v27 }
0x48f3   :  { %5417 = vmatprep.subr.mxu0 %v3647_v28 }
0x48f4   :  { %5418 = vmatpush3.msra.mxu0 %v3647_v28 }
0x48f5   :  { %5419 = vmatprep.subr.mxu0 %v3646_v29 }
0x48f6   :  { %5420 = vmatpush3.msra.mxu0 %v3646_v29 }
0x48f7   :  { %5422 = vmatmul.mubr.msk.f32.vlgmr.msra.gmra.mxu0 %vm76_vm1, %v6441_v2  ;;  %5455 = vmatprep.subr.mxu0 %v5748_v1 }
0x48f8   :  { %5424 = vmatprep.mubr.msk.f32.mxu0 %vm76_vm1, %v6468_v33  ;;  %5456 = vmatpush3.msra.mxu0 %v6543_v38 }
0x48f9   :  { %5457 = vmatprep.subr.mxu0 %v5748_v1 }
0x48fa   :  { %5458 = vmatpush3.msra.mxu0 %v6546_v39 }
0x48fb   :  { %5425 = vmatmul.mubr.msk.f32.gmra.mxu0 %vm76_vm1, %v6487_v48  ;;  %5459 = vmatprep.subr.mxu0 %v5748_v1 }
0x48fc   :  { %5427 = vmatprep.mubr.msk.f32.mxu0 %vm76_vm1, %v3359_v41  ;;  %5460 = vmatpush3.msra.mxu0 %v6550_v40 }
0x48fd   :  { %5461 = vmatprep.subr.mxu0 %v5748_v1 }
0x48fe   :  { %5462 = vmatpush3.msra.mxu0 %v6554_v16 }
0x48ff   :  { %5428 = vmatmul.mubr.msk.f32.gmra.mxu0 %vm76_vm1, %v3455_v23  ;;  %5477 = vmatprep.subr.mxu0 %v5748_v1 }
0x49af   :  { %v3524_v19 = vpop.f32.mrf.mxu0 }
0x49b0   :  { %v3528_v31 = vadd.f32 %v3524_v19, %v2874_v43 }
0x49b1   :  { %v5401_v32 = vpop.f32.mrf.mxu0 }
0x49b2   :  { %5660 = vtanh.f32 %v3528_v31 }
0x49b7   :  { %v5423_v47 = vpop.f32.mrf.mxu0 }
0x49b9   :  { %v3734_v51 = vpop.f32.mrf.mxu0 }
0x49ba   :  { %v3735_v53 = vadd.f32 %v6588_v49, %v3734_v51 }
0x49bf   :  { %v5661_v2 = vpop.eup %5660 }
0x49c0   :  { %3534 = vrot.lane.b32.xlu0 %v5661_v2, %s5750_s14  ;;  %v3530_v10 = vmul.f32 0.5, %v5661_v2 }
0x49c2   :  { %v3531_v25 = vadd.f32 0.5, %v3530_v10 }
0x49c4   :  { %v3532_v36 = vmul.f32 %v3531_v25, %v3446_v17  ;;  %v3740_v17 = vadd.f32 %v5423_v47, %v6588_v49 }
0x4a32   :  { %v3535_v33 = vpop.permute.xlu0 %3534 }
0x4a33   :  { %v3537_v34 = vmul.f32 %v3535_v33, %v3531_v25 }
0x4a35   :  { %3539 = vrot.lane.b32.xlu1 %v3537_v34, %s5751_s15  ;;  %v5426_v34 = vpop.f32.mrf.mxu0 }
0x4aa7   :  { %v3540_v37 = vpop.permute.xlu1 %3539 }
0x4aa8   :  { %v6539_v54 = vadd.f32 %v3540_v37, %v3532_v36  ;;  %v3744_v36 = vpop.f32.mrf.mxu0 }
0x4aaa   :  { %5662 = vtanh.f32 %v6539_v54  ;;  %v6630_v37 = vpop.f32.mrf.mxu0 }
0x4ab7   :  { %v5663_v21 = vpop.eup %5662 }
0x4ab8   :  { %3545 = vrot.lane.b32.xlu0 %v5663_v21, %s5750_s14 }
0x4b2a   :  { %v3546_v46 = vpop.permute.xlu0 %3545 }
0x4b2b   :  { %v3548_v14 = vmul.f32 %v3546_v46, %v3531_v25 }
0x4b2d   :  { %3550 = vrot.lane.b32.xlu1 %v3548_v14, %s5751_s15  ;;  %v3745_v14 = vadd.f32 %v6588_v49, %v3744_v36 }
0x4b9f   :  { %v3551_v57 = vpop.permute.xlu1 %3550 }
0x4ba0   :  { %5411 = vmatmul.mubr.msk.f32.vlgmr.msra.gmra.mxu1 %vm76_vm1, %v3551_v57  ;;  %5430 = vmatprep.mubr.msk.f32.mxu0 %vm76_vm1, %v3551_v57 }
0x4ba1   :  { %5434 = vmatpush3.msra.mxu1 %v6543_v38  ;;  %5441 = vmatprep.mubr.msk.f32.mxu1 %vm5749_vm0, %v5748_v1 }
0x4ba2   :  { %5435 = vmatprep.subr.mxu1 %v5748_v1 }
0x4ba3   :  { %5436 = vmatpush3.msra.mxu1 %v6546_v39 }
0x4ba4   :  { %5437 = vmatprep.subr.mxu1 %v5748_v1 }
0x4ba5   :  { %5438 = vmatpush3.msra.mxu1 %v6550_v40 }
0x4ba6   :  { %5439 = vmatprep.subr.mxu1 %v5748_v1 }
0x4ba7   :  { %5440 = vmatpush3.msra.mxu1 %v6554_v16 }
0x4ba8   :  { %5442 = vmatmul.mubr.f32.vlgmr.msra.gmra.mxu1 %v5748_v1  ;;  %5444 = vmatprep.subr.mxu1 %v5748_v1 }
0x4ba9   :  { %5445 = vmatpush3.msra.mxu1 %v6543_v38  ;;  %5452 = vmatprep.mubr.msk.f32.mxu1 %vm5749_vm0, %v5748_v1 }
0x4baa   :  { %5446 = vmatprep.subr.mxu1 %v5748_v1 }
0x4bab   :  { %5447 = vmatpush3.msra.mxu1 %v6546_v39 }
0x4bac   :  { %5448 = vmatprep.subr.mxu1 %v5748_v1 }
0x4bad   :  { %5449 = vmatpush3.msra.mxu1 %v6550_v40 }
0x4bae   :  { %5450 = vmatprep.subr.mxu1 %v5748_v1 }
0x4baf   :  { %5451 = vmatpush3.msra.mxu1 %v6554_v16 }
0x4bb0   :  { %5466 = vmatprep.subr.mxu1 %v5748_v1 }
0x4c60   :  { %v3620_v45 = vpop.f32.mrf.mxu1 }
0x4c61   :  { %v3624_v50 = vadd.f32 %v3620_v45, %v2879_v42 }
0x4c62   :  { %v5412_v48 = vpop.f32.mrf.mxu1 }
0x4c68   :  { %v3839_v5 = vpop.f32.mrf.mxu1 }
0x4c69   :  { %v3843_v44 = vadd.f32 %v3839_v5, %v3735_v53 }
0x4c6a   :  { %v5443_v56 = vpop.f32.mrf.mxu1 }
0x4c6b   :  { %5664 = vtanh.f32 %v3843_v44 }
0x4c78   :  { %v5665_v59 = vpop.eup %5664 }
0x4c79   :  { %3849 = vrot.lane.b32.xlu0 %v5665_v59, %s5750_s14  ;;  %v3845_v24 = vmul.f32 0.5, %v5665_v59 }
0x4c7b   :  { %v3846_v4 = vadd.f32 0.5, %v3845_v24 }
0x4c7d   :  { %v3847_v61 = vmul.f32 0.0, %v3846_v4 }
0x4ceb   :  { %v3850_v8 = vpop.permute.xlu0 %3849 }
0x4cec   :  { %v3852_v60 = vmul.f32 %v3850_v8, %v3846_v4 }
0x4cee   :  { %3854 = vrot.lane.b32.xlu1 %v3852_v60, %s5751_s15  ;;  %v3750_v60 = vadd.f32 %v5426_v34, %v6588_v49 }
0x4d60   :  { %v3855_v62 = vpop.permute.xlu1 %3854 }
0x4d61   :  { %v3857_v18 = vadd.f32 %v3855_v62, %v3847_v61 }
0x4d63   :  { %5666 = vtanh.f32 %v3857_v18 }
0x4d64   :  { %5668 = vtanh.f32 %v3624_v50 }
0x4d70   :  { %v5667_v55 = vpop.eup %5666 }
0x4d71   :  { %3860 = vrot.lane.b32.xlu0 %v5667_v55, %s5750_s14  ;;  %v5669_v63 = vpop.eup %5668 }
0x4d72   :  { %v3626_v0 = vmul.f32 0.5, %v5669_v63 }
0x4d74   :  { %v3627_v35 = vadd.f32 0.5, %v3626_v0 }
0x4d75   :  { %3630 = vrot.lane.b32.xlu0 %v5669_v63, %s5750_s14 }
0x4d76   :  { %v3628_v11 = vmul.f32 %v3627_v35, %v6539_v54  ;;  %v6632_v54 = vpop.f32.mrf.mxu0 }
0x4de3   :  { %v3861_v41 = vpop.permute.xlu0 %3860 }
0x4de4   :  { %v3863_v9 = vmul.f32 %v3861_v41, %v3846_v4 }
0x4de6   :  { %3865 = vrot.lane.b32.xlu1 %v3863_v9, %s5751_s15 }
0x4de7   :  { %v3631_v58 = vpop.permute.xlu0 %3630 }
0x4de8   :  { %v3633_v3 = vmul.f32 %v3631_v58, %v3627_v35 }
0x4dea   :  { %3635 = vrot.lane.b32.xlu0 %v3633_v3, %s5751_s15 }
0x4e58   :  { %v3866_v6 = vpop.permute.xlu1 %3865 }
0x4e59   :  { %5453 = vmatmul.mubr.msk.f32.vlgmr.msra.gmra.mxu1 %vm76_vm1, %v3866_v6 }
0x4e5a   :  { %5467 = vmatpush3.msra.mxu1 %v6543_v38  ;;  %5474 = vmatprep.mubr.msk.f32.mxu1 %vm5749_vm0, %v5748_v1 }
0x4e5b   :  { %5468 = vmatprep.subr.mxu1 %v5748_v1 }
0x4e5c   :  { %v3636_v30 = vpop.permute.xlu0 %3635  ;;  %5469 = vmatpush3.msra.mxu1 %v6546_v39 }
0x4e5d   :  { %v3638_v13 = vadd.f32 %v3636_v30, %v3628_v11  ;;  %5470 = vmatprep.subr.mxu1 %v5748_v1 }
0x4e5e   :  { %5471 = vmatpush3.msra.mxu1 %v6550_v40 }
0x4e5f   :  { %5670 = vtanh.f32 %v3638_v13  ;;  %5472 = vmatprep.subr.mxu1 %v5748_v1 }
0x4e60   :  { %5473 = vmatpush3.msra.mxu1 %v6554_v16 }
0x4e61   :  { %5488 = vmatprep.subr.mxu1 %v5748_v1 }
0x4e6c   :  { %v5671_v12 = vpop.eup %5670 }
0x4e6d   :  { %3641 = vrot.lane.b32.xlu0 %v5671_v12, %s5750_s14  ;;  %v3755_v12 = vadd.f32 %v6588_v49, %v6632_v54 }
0x4edf   :  { %v3642_v15 = vpop.permute.xlu0 %3641 }
0x4ee0   :  { %v3644_v52 = vmul.f32 %v3642_v15, %v3627_v35 }
0x4ee2   :  { %3664 = vrot.lane.b32.xlu0 %v3644_v52, %s5751_s15 }
0x4f19   :  { %v3935_v22 = vpop.f32.mrf.mxu1 }
0x4f1a   :  { %v3939_v7 = vadd.f32 %v3935_v22, %v3740_v17 }
0x4f1b   :  { %v5454_v20 = vpop.f32.mrf.mxu1 }
0x4f1c   :  { %5672 = vtanh.f32 %v3939_v7 }
0x4f29   :  { %v5673_v26 = vpop.eup %5672 }
0x4f2a   :  { %3945 = vrot.lane.b32.xlu1 %v5673_v26, %s5750_s14  ;;  %v3941_v27 = vmul.f32 0.5, %v5673_v26 }
0x4f2c   :  { %v3942_v28 = vadd.f32 0.5, %v3941_v27 }
0x4f2e   :  { %v3943_v19 = vmul.f32 %v3942_v28, %v3857_v18 }
0x4f54   :  { %v3665_v23 = vpop.permute.xlu0 %3664 }
0x4f55   :  { %5431 = vmatmul.mubr.msk.f32.gmra.mxu0 %vm76_vm1, %v3665_v23 }
0x4f56   :  { %5463 = vmatprep.mubr.msk.f32.mxu0 %vm5749_vm0, %v5748_v1 }
0x4f9c   :  { %v3946_v29 = vpop.permute.xlu1 %3945 }
0x4f9d   :  { %v3948_v43 = vmul.f32 %v3946_v29, %v3942_v28 }
0x4f9f   :  { %3950 = vrot.lane.b32.xlu1 %v3948_v43, %s5751_s15 }
0x5011   :  { %v3951_v31 = vpop.permute.xlu1 %3950 }
0x5012   :  { %v3953_v32 = vadd.f32 %v3951_v31, %v3943_v19 }
0x5014   :  { %5674 = vtanh.f32 %v3953_v32 }
0x5015   :  { %v6634_v21 = vpop.f32.mrf.mxu0 }
0x5017   :  { %v6636_v46 = vpop.f32.mrf.mxu0 }
0x5021   :  { %v5675_v2 = vpop.eup %5674 }
0x5022   :  { %3956 = vrot.lane.b32.xlu1 %v5675_v2, %s5750_s14  ;;  %v3760_v2 = vadd.f32 %v6630_v37, %v6588_v49 }
0x5094   :  { %v3957_v10 = vpop.permute.xlu1 %3956 }
0x5095   :  { %v3959_v25 = vmul.f32 %v3957_v10, %v3942_v28 }
0x5097   :  { %3961 = vrot.lane.b32.xlu1 %v3959_v25, %s5751_s15 }
0x5109   :  { %v3962_v33 = vpop.permute.xlu1 %3961 }
0x510a   :  { %5464 = vmatmul.mubr.msk.f32.vlgmr.msra.gmra.mxu0 %vm76_vm1, %v3962_v33 }
0x510b   :  { %5478 = vmatpush3.msra.mxu0 %v6543_v38  ;;  %5485 = vmatprep.mubr.msk.f32.mxu0 %vm5749_vm0, %v5748_v1 }
0x510c   :  { %5479 = vmatprep.subr.mxu0 %v5748_v1 }
0x510d   :  { %5480 = vmatpush3.msra.mxu0 %v6546_v39 }
0x510e   :  { %5481 = vmatprep.subr.mxu0 %v5748_v1 }
0x510f   :  { %5482 = vmatpush3.msra.mxu0 %v6550_v40 }
0x5110   :  { %5483 = vmatprep.subr.mxu0 %v5748_v1 }
0x5111   :  { %5484 = vmatpush3.msra.mxu0 %v6554_v16 }
0x5112   :  { %5499 = vmatprep.subr.mxu0 %v5748_v1 }
0x51ca   :  { %v4031_v57 = vpop.f32.mrf.mxu0 }
0x51cb   :  { %v4035_v42 = vadd.f32 %v4031_v57, %v3745_v14 }
0x51cc   :  { %v5465_v47 = vpop.f32.mrf.mxu0 }
0x51cd   :  { %5676 = vtanh.f32 %v4035_v42 }
0x51da   :  { %v5677_v45 = vpop.eup %5676 }
0x51db   :  { %4041 = vrot.lane.b32.xlu0 %v5677_v45, %s5750_s14  ;;  %v4037_v50 = vmul.f32 0.5, %v5677_v45  ;;  %v3765_v45 = vadd.f32 %v6588_v49, %v6636_v46 }
0x51dd   :  { %v4038_v48 = vadd.f32 0.5, %v4037_v50 }
0x51df   :  { %v4039_v5 = vmul.f32 %v4038_v48, %v3953_v32 }
0x524d   :  { %v4042_v51 = vpop.permute.xlu0 %4041 }
0x524e   :  { %v4044_v53 = vmul.f32 %v4042_v51, %v4038_v48 }
0x5250   :  { %4046 = vrot.lane.b32.xlu1 %v4044_v53, %s5751_s15 }
0x52c2   :  { %v4047_v44 = vpop.permute.xlu1 %4046 }
0x52c3   :  { %v4049_v56 = vadd.f32 %v4047_v44, %v4039_v5 }
0x52c5   :  { %5678 = vtanh.f32 %v4049_v56 }
0x52d2   :  { %v5679_v59 = vpop.eup %5678 }
0x52d3   :  { %4052 = vrot.lane.b32.xlu0 %v5679_v59, %s5750_s14 }
0x5345   :  { %v4053_v24 = vpop.permute.xlu0 %4052 }
0x5346   :  { %v4055_v4 = vmul.f32 %v4053_v24, %v4038_v48 }
0x5348   :  { %4057 = vrot.lane.b32.xlu1 %v4055_v4, %s5751_s15 }
0x53ba   :  { %v4058_v8 = vpop.permute.xlu1 %4057 }
0x53bb   :  { %5475 = vmatmul.mubr.msk.f32.vlgmr.msra.gmra.mxu1 %vm76_vm1, %v4058_v8 }
0x53bc   :  { %5489 = vmatpush3.msra.mxu1 %v6543_v38  ;;  %5496 = vmatprep.mubr.msk.f32.mxu1 %vm5749_vm0, %v5748_v1 }
0x53bd   :  { %5490 = vmatprep.subr.mxu1 %v5748_v1 }
0x53be   :  { %5491 = vmatpush3.msra.mxu1 %v6546_v39 }
0x53bf   :  { %5492 = vmatprep.subr.mxu1 %v5748_v1 }
0x53c0   :  { %5493 = vmatpush3.msra.mxu1 %v6550_v40 }
0x53c1   :  { %5494 = vmatprep.subr.mxu1 %v5748_v1 }
0x53c2   :  { %5495 = vmatpush3.msra.mxu1 %v6554_v16 }
0x53c3   :  { %5510 = vmatprep.subr.mxu1 %v5748_v1 }
0x547b   :  { %v4127_v61 = vpop.f32.mrf.mxu1 }
0x547c   :  { %v4131_v62 = vadd.f32 %v4127_v61, %v3750_v60 }
0x547d   :  { %v5476_v18 = vpop.f32.mrf.mxu1 }
0x547e   :  { %5680 = vtanh.f32 %v4131_v62  ;;  %v3770_v18 = vadd.f32 %v6634_v21, %v6588_v49  ;;  %v4539_v49 = vld [vmem:[%s6731_s4 + $0x18] sm:$0xff]  ;;  %v4538_v21 = vld [vmem:[%s6731_s4 + $0x10] sm:$0xff] }
0x548b   :  { %v5681_v55 = vpop.eup %5680 }
0x548c   :  { %4137 = vrot.lane.b32.xlu0 %v5681_v55, %s5750_s14  ;;  %v4133_v63 = vmul.f32 0.5, %v5681_v55 }
0x548e   :  { %v4134_v0 = vadd.f32 0.5, %v4133_v63 }
0x5490   :  { %v4135_v35 = vmul.f32 %v4134_v0, %v4049_v56 }
0x54fe   :  { %v4138_v41 = vpop.permute.xlu0 %4137 }
0x54ff   :  { %v4140_v9 = vmul.f32 %v4138_v41, %v4134_v0 }
0x5501   :  { %4142 = vrot.lane.b32.xlu1 %v4140_v9, %s5751_s15 }
0x5573   :  { %v4143_v58 = vpop.permute.xlu1 %4142 }
0x5574   :  { %v4145_v3 = vadd.f32 %v4143_v58, %v4135_v35 }
0x5576   :  { %5682 = vtanh.f32 %v4145_v3 }
0x5583   :  { %v5683_v6 = vpop.eup %5682 }
0x5584   :  { %4148 = vrot.lane.b32.xlu0 %v5683_v6, %s5750_s14 }
0x55f6   :  { %v4149_v11 = vpop.permute.xlu0 %4148 }
0x55f7   :  { %v4151_v30 = vmul.f32 %v4149_v11, %v4134_v0 }
0x55f9   :  { %4153 = vrot.lane.b32.xlu1 %v4151_v30, %s5751_s15 }
0x566b   :  { %v4154_v13 = vpop.permute.xlu1 %4153 }
0x566c   :  { %5486 = vmatmul.mubr.msk.f32.vlgmr.msra.gmra.mxu0 %vm76_vm1, %v4154_v13  ;;  %v4537_v13 = vld [vmem:[%s6731_s4 + $0x8] sm:$0xff] }
0x566d   :  { %5500 = vmatpush3.msra.mxu0 %v6543_v38  ;;  %5507 = vmatprep.mubr.msk.f32.mxu0 %vm5749_vm0, %v5748_v1 }
0x566e   :  { %5501 = vmatprep.subr.mxu0 %v5748_v1 }
0x566f   :  { %5502 = vmatpush3.msra.mxu0 %v6546_v39 }
0x5670   :  { %5503 = vmatprep.subr.mxu0 %v5748_v1 }
0x5671   :  { %5504 = vmatpush3.msra.mxu0 %v6550_v40 }
0x5672   :  { %5505 = vmatprep.subr.mxu0 %v5748_v1 }
0x5673   :  { %5506 = vmatpush3.msra.mxu0 %v6554_v16 }
0x5674   :  { %5521 = vmatprep.subr.mxu0 %v5748_v1 }
0x572c   :  { %v4223_v15 = vpop.f32.mrf.mxu0 }
0x572d   :  { %v4227_v52 = vadd.f32 %v4223_v15, %v3755_v12  ;;  %v4536_v12 = vld [vmem:[%s6731_s4] sm:$0xff] }
0x572e   :  { %v5487_v17 = vpop.f32.mrf.mxu0 }
0x572f   :  { %5684 = vtanh.f32 %v4227_v52 }
0x573c   :  { %v5685_v22 = vpop.eup %5684 }
0x573d   :  { %4233 = vrot.lane.b32.xlu0 %v5685_v22, %s5750_s14  ;;  %v4229_v7 = vmul.f32 0.5, %v5685_v22 }
0x573f   :  { %v4230_v20 = vadd.f32 0.5, %v4229_v7  ;;  %v4714_v7 = vld [vmem:[#allocation2] ss:$0 sm:$0xff] }
0x5741   :  { %v4231_v27 = vmul.f32 %v4230_v20, %v4145_v3 }
0x57af   :  { %v4234_v26 = vpop.permute.xlu0 %4233 }
0x57b0   :  { %v4236_v23 = vmul.f32 %v4234_v26, %v4230_v20 }
0x57b2   :  { %4238 = vrot.lane.b32.xlu1 %v4236_v23, %s5751_s15 }
0x5824   :  { %v4239_v28 = vpop.permute.xlu1 %4238 }
0x5825   :  { %v4241_v29 = vadd.f32 %v4239_v28, %v4231_v27 }
0x5827   :  { %5686 = vtanh.f32 %v4241_v29 }
0x5834   :  { %v5687_v43 = vpop.eup %5686 }
0x5835   :  { %4244 = vrot.lane.b32.xlu0 %v5687_v43, %s5750_s14 }
0x58a7   :  { %v4245_v19 = vpop.permute.xlu0 %4244 }
0x58a8   :  { %v4247_v31 = vmul.f32 %v4245_v19, %v4230_v20 }
0x58aa   :  { %4249 = vrot.lane.b32.xlu1 %v4247_v31, %s5751_s15 }
0x591c   :  { %v4250_v32 = vpop.permute.xlu1 %4249 }
0x591d   :  { %5497 = vmatmul.mubr.msk.f32.vlgmr.msra.gmra.mxu1 %vm76_vm1, %v4250_v32 }
0x591e   :  { %5511 = vmatpush3.msra.mxu1 %v6543_v38  ;;  %5518 = vmatprep.mubr.msk.f32.mxu1 %vm5749_vm0, %v5748_v1 }
0x591f   :  { %5512 = vmatprep.subr.mxu1 %v5748_v1 }
0x5920   :  { %5513 = vmatpush3.msra.mxu1 %v6546_v39 }
0x5921   :  { %5514 = vmatprep.subr.mxu1 %v5748_v1 }
0x5922   :  { %5515 = vmatpush3.msra.mxu1 %v6550_v40 }
0x5923   :  { %5516 = vmatprep.subr.mxu1 %v5748_v1 }
0x5924   :  { %5517 = vmatpush3.msra.mxu1 %v6554_v16 }
0x59dd   :  { %v4319_v10 = vpop.f32.mrf.mxu1 }
0x59de   :  { %v4323_v38 = vadd.f32 %v4319_v10, %v3760_v2 }
0x59df   :  { %v5498_v25 = vpop.f32.mrf.mxu1 }
0x59e0   :  { %5688 = vtanh.f32 %v4323_v38 }
0x59ed   :  { %v5689_v33 = vpop.eup %5688 }
0x59ee   :  { %4329 = vrot.lane.b32.xlu0 %v5689_v33, %s5750_s14  ;;  %v4325_v34 = vmul.f32 0.5, %v5689_v33 }
0x59f0   :  { %v4326_v39 = vadd.f32 0.5, %v4325_v34 }
0x59f2   :  { %v4327_v40 = vmul.f32 %v4326_v39, %v4241_v29 }
0x5a60   :  { %v4330_v36 = vpop.permute.xlu0 %4329 }
0x5a61   :  { %v4332_v54 = vmul.f32 %v4330_v36, %v4326_v39 }
0x5a63   :  { %4334 = vrot.lane.b32.xlu1 %v4332_v54, %s5751_s15 }
0x5ad5   :  { %v4335_v14 = vpop.permute.xlu1 %4334 }
0x5ad6   :  { %v4337_v57 = vadd.f32 %v4335_v14, %v4327_v40 }
0x5ad8   :  { %5690 = vtanh.f32 %v4337_v57 }
0x5ae5   :  { %v5691_v16 = vpop.eup %5690 }
0x5ae6   :  { %4340 = vrot.lane.b32.xlu0 %v5691_v16, %s5750_s14 }
0x5b58   :  { %v4341_v37 = vpop.permute.xlu0 %4340 }
0x5b59   :  { %v4343_v42 = vmul.f32 %v4341_v37, %v4326_v39 }
0x5b5b   :  { %4345 = vrot.lane.b32.xlu1 %v4343_v42, %s5751_s15 }
0x5bcd   :  { %v4346_v47 = vpop.permute.xlu1 %4345 }
0x5bce   :  { %5508 = vmatmul.mubr.msk.f32.vlgmr.msra.gmra.mxu0 %vm76_vm1, %v4346_v47 }
0x5bcf   :  { %5529 = vmatprep.mubr.msk.f32.mxu0 %vm5749_vm0, %v5748_v1  ;;  %5522 = vmatpush3.msra.mxu0 %v4539_v49 }
0x5bd0   :  { %5523 = vmatprep.subr.mxu0 %v5748_v1 }
0x5bd1   :  { %5524 = vmatpush3.msra.mxu0 %v4538_v21 }
0x5bd2   :  { %5525 = vmatprep.subr.mxu0 %v5748_v1 }
0x5bd3   :  { %5526 = vmatpush3.msra.mxu0 %v4537_v13 }
0x5bd4   :  { %5527 = vmatprep.subr.mxu0 %v5748_v1 }
0x5bd5   :  { %5528 = vmatpush3.msra.mxu0 %v4536_v12 }
0x5c8e   :  { %v4415_v50 = vpop.f32.mrf.mxu0 }
0x5c8f   :  { %v4419_v48 = vadd.f32 %v4415_v50, %v3765_v45 }
0x5c90   :  { %v5509_v51 = vpop.f32.mrf.mxu0 }
0x5c91   :  { %5692 = vtanh.f32 %v4419_v48 }
0x5c9e   :  { %v5693_v53 = vpop.eup %5692 }
0x5c9f   :  { %4425 = vrot.lane.b32.xlu0 %v5693_v53, %s5750_s14  ;;  %v4421_v5 = vmul.f32 0.5, %v5693_v53 }
0x5ca1   :  { %v4422_v44 = vadd.f32 0.5, %v4421_v5 }
0x5ca3   :  { %v4423_v24 = vmul.f32 %v4422_v44, %v4337_v57 }
0x5d11   :  { %v4426_v56 = vpop.permute.xlu0 %4425 }
0x5d12   :  { %v4428_v59 = vmul.f32 %v4426_v56, %v4422_v44 }
0x5d14   :  { %4430 = vrot.lane.b32.xlu1 %v4428_v59, %s5751_s15 }
0x5d86   :  { %v4431_v4 = vpop.permute.xlu1 %4430 }
0x5d87   :  { %v4433_v8 = vadd.f32 %v4431_v4, %v4423_v24 }
0x5d89   :  { %5694 = vtanh.f32 %v4433_v8 }
0x5d96   :  { %v5695_v60 = vpop.eup %5694 }
0x5d97   :  { %4436 = vrot.lane.b32.xlu0 %v5695_v60, %s5750_s14 }
0x5e09   :  { %v4437_v46 = vpop.permute.xlu0 %4436 }
0x5e0a   :  { %v4439_v61 = vmul.f32 %v4437_v46, %v4422_v44 }
0x5e0c   :  { %4441 = vrot.lane.b32.xlu1 %v4439_v61, %s5751_s15 }
0x5e7e   :  { %v4442_v62 = vpop.permute.xlu1 %4441 }
0x5e7f   :  { %5519 = vmatmul.mubr.msk.f32.vlgmr.msra.gmra.mxu1 %vm76_vm1, %v4442_v62 }
0x5f3f   :  { %v4511_v55 = vpop.f32.mrf.mxu1 }
0x5f40   :  { %v4515_v63 = vadd.f32 %v4511_v55, %v3770_v18 }
0x5f41   :  { %v5520_v0 = vpop.f32.mrf.mxu1 }
0x5f42   :  { %5696 = vtanh.f32 %v4515_v63 }
0x5f4f   :  { %v5697_v41 = vpop.eup %5696 }
0x5f50   :  { %4521 = vrot.lane.b32.xlu0 %v5697_v41, %s5750_s14  ;;  %v4517_v9 = vmul.f32 0.5, %v5697_v41 }
0x5f52   :  { %v4518_v35 = vadd.f32 0.5, %v4517_v9 }
0x5f54   :  { %v4519_v6 = vmul.f32 %v4518_v35, %v4433_v8 }
0x5fc2   :  { %v4522_v58 = vpop.permute.xlu0 %4521 }
0x5fc3   :  { %v4524_v3 = vmul.f32 %v4522_v58, %v4518_v35 }
0x5fc5   :  { %4526 = vrot.lane.b32.xlu1 %v4524_v3, %s5751_s15 }
0x6037   :  { %v4527_v11 = vpop.permute.xlu1 %4526 }
0x6038   :  { %v4529_v30 = vadd.f32 %v4527_v11, %v4519_v6 }
0x603a   :  { %5698 = vtanh.f32 %v4529_v30 }
0x6047   :  { %v5699_v15 = vpop.eup %5698 }
0x6048   :  { %4532 = vrot.lane.b32.xlu0 %v5699_v15, %s5750_s14 }
0x60ba   :  { %v4533_v52 = vpop.permute.xlu0 %4532 }
0x60bb   :  { %v4535_v17 = vmul.f32 %v4533_v52, %v4518_v35 }
0x60bd   :  { %4548 = vrot.lane.b32.xlu1 %v4535_v17, %s5751_s15 }
0x612f   :  { %v4549_v22 = vpop.permute.xlu1 %4548 }
0x6130   :  { %5530 = vmatmul.mubr.msk.f32.vlgmr.msra.gmra.mxu0 %vm76_vm1, %v4549_v22 }
0x61f0   :  { %v4618_v20 = vpop.f32.mrf.mxu0 }
0x61f1   :  { %v4619_v26 = vadd.f32 %v4714_v7, %v4618_v20 }
0x61f2   :  { %v5531_v23 = vpop.f32.mrf.mxu0 }
0x61f3   :  { %4623 = vst.msk [vmem:[%s6733_s6] sm:$0xff] %vm4622_vm2, %v4619_v26 }
0x61f4   :  { %4628 = vsyncpa [#allocation4], 1 }
0x61f5   :  { %4629 = vsyncpa [#allocation6], 1 }

</bundles_post_ra>
